<compile_context>
chip_gen: v5e
topology: v5e:2x2
jax: 0.10.0
libtpu: 0.0.40
codegen_flags: <defaults>
</compile_context>

<pallas_src>
import numpy as np
import jax
import jax.numpy as jnp
from jax import lax
from jax.experimental import pallas as pl
from jax.experimental.pallas import tpu as pltpu

BN_EPS = 1e-5
LANE = 128          # class dim padded to a full lane width for a dense store
NEG_BIG = -1e30     # bias for padded (fake) classes -> exp() underflows to 0
_APPROX_RECIP = True  # EUP approximate reciprocal (~1e-3 rel) vs exact divide


def _recip(x):
    # TODO(synk): the PyTorch reference uses exact division for the 1/d 3-NN
    # weights; the EUP approximate reciprocal deviates by ~1e-3 relative.
    if _APPROX_RECIP:
        return pl.reciprocal(x, approx=True)
    return 1.0 / x


# ---------------------------------------------------------------------------
# In-kernel building blocks
# ---------------------------------------------------------------------------
def _fp_stage(xyzq, xyzst, p1, p2, w1a, w1b, b1, w2, b2):
    """One PointNetFeaturePropagation stage, entirely in VMEM/vregs.

    xyzq:  [N, 3] f32 query positions.
    xyzst: [3, S] f32 source positions (pre-transposed in the wrapper).
    p1:    [N, D1] (bf16/f32) or None (skip-connection features).
    p2:    [S, D2] (bf16/f32) features to interpolate.
    w1a/w1b/w2: bf16 conv1x1 weights with BatchNorm folded in; b1/b2: f32.
    Returns [N, C2] f32.
    """
    n = xyzq.shape[0]
    s = xyzst.shape[1]

    # Squared pairwise distances via |q|^2 + |s|^2 - 2 q.s ; the K=3
    # contraction runs on the (otherwise idle) MXU in f32 (coordinates stay
    # exact), the rest is 3 VPU ops per [N,S] element.  Clamp >= 0 against
    # cancellation when query and source points coincide.
    cross = jnp.dot(xyzq, xyzst, preferred_element_type=jnp.float32)   # [N,S]
    qsq = jnp.sum(xyzq * xyzq, axis=-1, keepdims=True)                 # [N,1]
    ssq = jnp.sum(xyzst * xyzst, axis=0, keepdims=True)                # [1,S]
    d = jnp.maximum(qsq - 2.0 * cross + ssq, 0.0)

    # 3-NN inverse-distance weights built as a dense [N,S] matrix (three
    # argmin passes; first index wins ties, matching torch.sort order).  Only
    # d / w / wsum stay live across passes; iota is a single (1,S) row.
    iota = lax.broadcasted_iota(jnp.int32, (1, s), 1)
    w = jnp.zeros((n, s), jnp.float32)
    wsum = jnp.zeros((n, 1), jnp.float32)
    for _ in range(3):
        dmin = jnp.min(d, axis=-1, keepdims=True)                              # [N,1]
        sel = jnp.min(jnp.where(d <= dmin, iota, s), axis=-1, keepdims=True)   # [N,1]
        mask = iota == sel
        r = _recip(dmin + 1e-8)                                                # EUP slot
        w = jnp.where(mask, r, w)
        wsum = wsum + r
        d = jnp.where(mask, jnp.float32(jnp.inf), d)

    # interpolated_points = normalize(W) @ points2 -> [N, D2]; bf16 MXU
    # operands, f32 accumulation; 1/sum(w) normalization folded into epilogue.
    interp = jnp.dot(w.astype(jnp.bfloat16), p2.astype(jnp.bfloat16),
                     preferred_element_type=jnp.float32)
    interp = interp * _recip(wsum)

    # layer 1: cat([points1, interp]) @ W1 + b1 with the concat folded into a
    # split matmul; BN folded into W/b; ReLU.  MXU operands bf16, f32 acc.
    h = jnp.dot(interp.astype(jnp.bfloat16), w1b,
                preferred_element_type=jnp.float32)
    if p1 is not None:
        h = h + jnp.dot(p1.astype(jnp.bfloat16), w1a,
                        preferred_element_type=jnp.float32)
    h = jnp.maximum(h + b1, 0.0)

    # layer 2: conv1x1 + BN + ReLU
    h = jnp.dot(h.astype(jnp.bfloat16), w2,
                preferred_element_type=jnp.float32) + b2
    return jnp.maximum(h, 0.0)


def _decoder_kernel(xyz0_ref, xyz1_ref, xyz2_ref, xyz3_ref,
                    x1t_ref, x2t_ref, x3t_ref, x4t_ref,
                    f1_ref, f2_ref, f3_ref, f4_ref,
                    w1a1_ref, w1b1_ref, b11_ref, w21_ref, b21_ref,
                    w1a2_ref, w1b2_ref, b12_ref, w22_ref, b22_ref,
                    w1a3_ref, w1b3_ref, b13_ref, w23_ref, b23_ref,
                    w1b4_ref, b14_ref, w24_ref, b24_ref,
                    hw1_ref, hb1_ref, hw2_ref, hb2_ref,
                    out_ref, ff1_scr):
    """grid = (batch, N0 tiles).  The three coarse FP stages run once per
    batch element (tile j == 0) and leave ff1 resident in a bf16 VMEM scratch;
    the finest FP stage + head run per N0 tile."""
    j = pl.program_id(1)

    @pl.when(j == 0)
    def _():
        ff3 = _fp_stage(xyz3_ref[0], x4t_ref[0], f3_ref[0], f4_ref[0],
                        w1a1_ref[...], w1b1_ref[...], b11_ref[...],
                        w21_ref[...], b21_ref[...])
        ff2 = _fp_stage(xyz2_ref[0], x3t_ref[0], f2_ref[0], ff3,
                        w1a2_ref[...], w1b2_ref[...], b12_ref[...],
                        w22_ref[...], b22_ref[...])
        ff1 = _fp_stage(xyz1_ref[0], x2t_ref[0], f1_ref[0], ff2,
                        w1a3_ref[...], w1b3_ref[...], b13_ref[...],
                        w23_ref[...], b23_ref[...])
        ff1_scr[...] = ff1.astype(ff1_scr.dtype)

    # finest FP stage on this N0 tile (points1 is None in the reference).
    ff0 = _fp_stage(xyz0_ref[0], x1t_ref[0], None, ff1_scr[...],
                    None, w1b4_ref[...], b14_ref[...],
                    w24_ref[...], b24_ref[...])

    # head: conv1(64->32)+BN+ReLU, Dropout(0.5) as eval identity, conv2,
    # log_softmax over the (lane-padded) class dim.
    # TODO(synk): Dropout(0.5) implemented as eval-mode identity (no RNG mask).
    h = jnp.dot(ff0.astype(jnp.bfloat16), hw1_ref[...],
                preferred_element_type=jnp.float32) + hb1_ref[...]
    h = jnp.maximum(h, 0.0)
    logits = jnp.dot(h.astype(jnp.bfloat16), hw2_ref[...],
                     preferred_element_type=jnp.float32) + hb2_ref[...]
    # padded classes have logit == -1e30 (zero weight cols + -1e30 f32 bias),
    # so their exp() is exactly 0 and they never perturb the real softmax.
    m = jnp.max(logits, axis=-1, keepdims=True)
    lse = m + jnp.log(jnp.sum(jnp.exp(logits - m), axis=-1, keepdims=True))
    out_ref[0] = (logits - lse).astype(out_ref.dtype)


# ---------------------------------------------------------------------------
# Wrapper (single fused pallas_call)
# ---------------------------------------------------------------------------
def _pick_tile(n, cap):
    """Largest multiple-of-8 divisor of n that is <= cap (or n itself)."""
    if n <= cap:
        return n
    t = cap - (cap % 8)
    while t >= 8:
        if n % t == 0:
            return t
        t -= 8
    return n


def decoder_forward(params, xyz, xyz1, f1, xyz2, f2, xyz3, f3, xyz4, f4,
                    *, tile_n0=1024):
    B, n0, _ = xyz.shape
    n1, n2, n3, n4 = xyz1.shape[1], xyz2.shape[1], xyz3.shape[1], xyz4.shape[1]
    d1c, d2c, d3c, d4c = f1.shape[2], f2.shape[2], f3.shape[2], f4.shape[2]

    tn0 = _pick_tile(n0, tile_n0)   # query-point tile for stage 4 + head
    nj = n0 // tn0

    # source-role positions pre-transposed to [B, 3, S] (layout plumbing only;
    # keeps the in-kernel distance matmul transpose-free).
    x1t = jnp.swapaxes(xyz1, 1, 2)
    x2t = jnp.swapaxes(xyz2, 1, 2)
    x3t = jnp.swapaxes(xyz3, 1, 2)
    x4t = jnp.swapaxes(xyz4, 1, 2)

    # features are only consumed as MXU operands -> ship them as bf16 (halves
    # HBM->VMEM DMA bytes and double-buffered VMEM footprint).
    f1b = f1.astype(jnp.bfloat16)
    f2b = f2.astype(jnp.bfloat16)
    f3b = f3.astype(jnp.bfloat16)
    f4b = f4.astype(jnp.bfloat16)

    def split_fp(fp_params, d1):
        w1, b1, w2, b2 = fp_params
        c1, c2 = w1.shape[1], w2.shape[1]
        w1a = w1[:d1].astype(jnp.bfloat16) if d1 else None
        w1b = w1[d1:].astype(jnp.bfloat16)
        return (w1a, w1b, b1.reshape(1, c1).astype(jnp.float32),
                w2.astype(jnp.bfloat16), b2.reshape(1, c2).astype(jnp.float32))

    fp1 = split_fp(params["fp1"], d3c)
    fp2 = split_fp(params["fp2"], d2c)
    fp3 = split_fp(params["fp3"], d1c)
    fp4 = split_fp(params["fp4"], 0)
    c_ff1 = params["fp3"][2].shape[1]   # channels of ff1 (fp3 conv2 out)

    hw1, hb1, hw2, hb2 = params["head"]
    nc = hw2.shape[1]
    ch = hw1.shape[1]
    # pad the class dim to a full 128-lane slab so the only HBM store of the
    # kernel is lane-dense; padded classes get a -1e30 bias and are sliced off.
    hw1b = hw1.astype(jnp.bfloat16)
    hb1r = hb1.reshape(1, ch).astype(jnp.float32)
    hw2p = jnp.zeros((ch, LANE), jnp.bfloat16).at[:, :nc].set(hw2.astype(jnp.bfloat16))
    hb2p = jnp.full((1, LANE), NEG_BIG, jnp.float32).at[0, :nc].set(hb2.astype(jnp.float32))

    def bspec(*tail):     # per-batch block, constant across the N0-tile axis
        nz = len(tail)
        return pl.BlockSpec((1,) + tuple(tail),
                            lambda b, j, _n=nz: (b,) + (0,) * _n)

    def wspec(*shape):    # broadcast (weight) block
        nz = len(shape)
        return pl.BlockSpec(tuple(shape), lambda b, j, _n=nz: (0,) * _n)

    args = [xyz, xyz1, xyz2, xyz3, x1t, x2t, x3t, x4t, f1b, f2b, f3b, f4b]
    in_specs = [
        pl.BlockSpec((1, tn0, 3), lambda b, j: (b, j, 0)),   # tiled query xyz
        bspec(n1, 3), bspec(n2, 3), bspec(n3, 3),
        bspec(3, n1), bspec(3, n2), bspec(3, n3), bspec(3, n4),
        bspec(n1, d1c), bspec(n2, d2c), bspec(n3, d3c), bspec(n4, d4c),
    ]
    for stage, has_p1 in ((fp1, True), (fp2, True), (fp3, True), (fp4, False)):
        w1a, w1b, b1, w2, b2 = stage
        if has_p1:
            args.append(w1a)
            in_specs.append(wspec(*w1a.shape))
        args += [w1b, b1, w2, b2]
        in_specs += [wspec(*w1b.shape), wspec(*b1.shape),
                     wspec(*w2.shape), wspec(*b2.shape)]
    args += [hw1b, hb1r, hw2p, hb2p]
    in_specs += [wspec(*hw1b.shape), wspec(*hb1r.shape),
                 wspec(*hw2p.shape), wspec(*hb2p.shape)]

    out_padded = pl.pallas_call(
        _decoder_kernel,
        out_shape=jax.ShapeDtypeStruct((B, n0, LANE), jnp.bfloat16),
        grid=(B, nj),
        in_specs=in_specs,
        out_specs=pl.BlockSpec((1, tn0, LANE), lambda b, j: (b, j, 0)),
        scratch_shapes=[pltpu.VMEM((n1, c_ff1), jnp.bfloat16)],
        compiler_params=pltpu.CompilerParams(
            # batch is parallel (v7x megacore); the N0-tile axis must stay
            # sequential because ff1 is carried in scratch from tile j == 0.
            dimension_semantics=("parallel", "arbitrary"),
            vmem_limit_bytes=64 * 1024 * 1024),
    )(*args)

    return out_padded[:, :, :nc].astype(jnp.float32), f4


# ---------------------------------------------------------------------------
# Deterministic parameter construction (BN folded into conv, eval mode)
# ---------------------------------------------------------------------------
def _conv_bn_folded(key, cin, cout):
    k = jax.random.split(key, 6)
    w = 0.05 * jax.random.normal(k[0], (cout, cin), jnp.float32)   # conv1d [Cout,Cin,1]
    b = 0.05 * jax.random.normal(k[1], (cout,), jnp.float32)
    gamma = 1.0 + 0.1 * jax.random.normal(k[2], (cout,), jnp.float32)
    beta = 0.1 * jax.random.normal(k[3], (cout,), jnp.float32)
    mean = 0.1 * jax.random.normal(k[4], (cout,), jnp.float32)
    var = 1.0 + 0.1 * jnp.abs(jax.random.normal(k[5], (cout,), jnp.float32))
    scale = gamma / jnp.sqrt(var + BN_EPS)
    w_eff = (w * scale[:, None]).T            # [Cin, Cout]
    b_eff = scale * (b - mean) + beta         # [Cout]
    return w_eff, b_eff


def _conv_only(key, cin, cout):
    k1, k2 = jax.random.split(key)
    w = 0.05 * jax.random.normal(k1, (cout, cin), jnp.float32)
    b = 0.05 * jax.random.normal(k2, (cout,), jnp.float32)
    return w.T, b


def make_params(key, num_class):
    ks = jax.random.split(key, 10)
    # TODO(synk): BatchNorm uses folded running stats (eval mode); train-mode
    # batch statistics are not computed in-kernel.
    params = {
        "fp1": _conv_bn_folded(ks[0], 384, 256) + _conv_bn_folded(ks[1], 256, 256),
        "fp2": _conv_bn_folded(ks[2], 320, 256) + _conv_bn_folded(ks[3], 256, 128),
        "fp3": _conv_bn_folded(ks[4], 192, 128) + _conv_bn_folded(ks[5], 128, 128),
        "fp4": _conv_bn_folded(ks[6], 128, 128) + _conv_bn_folded(ks[7], 128, 64),
        "head": _conv_bn_folded(ks[8], 64, 32) + _conv_only(ks[9], 32, num_class),
    }
    return params


# ---------------------------------------------------------------------------
# Pure-JAX f32 reference (for correctness check)
# ---------------------------------------------------------------------------
def _fp_ref(xyz1, xyz2, points1, points2, w1, b1, w2, b2):
    d = jnp.sum((xyz1[:, :, None, :] - xyz2[:, None, :, :]) ** 2, axis=-1)  # [B,N,S]
    idx = jnp.argsort(d, axis=-1)[:, :, :3]                                  # [B,N,3]
    dsel = jnp.take_along_axis(d, idx, axis=-1)
    recip = 1.0 / (dsel + 1e-8)
    weight = recip / jnp.sum(recip, axis=-1, keepdims=True)                  # [B,N,3]
    gathered = jax.vmap(lambda p, i: p[i])(points2, idx)                     # [B,N,3,D2]
    interp = jnp.sum(gathered * weight[..., None], axis=2)                   # [B,N,D2]
    new = interp if points1 is None else jnp.concatenate([points1, interp], axis=-1)
    h = jnp.maximum(new @ w1 + b1, 0.0)
    return jnp.maximum(h @ w2 + b2, 0.0)


def _decoder_ref(params, xyz, xyz1, f1, xyz2, f2, xyz3, f3, xyz4, f4):
    ff3 = _fp_ref(xyz3, xyz4, f3, f4, *params["fp1"])
    ff2 = _fp_ref(xyz2, xyz3, f2, ff3, *params["fp2"])
    ff1 = _fp_ref(xyz1, xyz2, f1, ff2, *params["fp3"])
    ff0 = _fp_ref(xyz, xyz1, None, ff1, *params["fp4"])
    w1, b1, w2, b2 = params["head"]
    h = jnp.maximum(ff0 @ w1 + b1, 0.0)
    logits = h @ w2 + b2
    return jax.nn.log_softmax(logits, axis=-1), f4


# ---------------------------------------------------------------------------
if __name__ == "__main__":
    key = jax.random.PRNGKey(0)
    B, num_class = 2, 16
    N0, N1, N2, N3, N4 = 64, 32, 16, 8, 4          # point hierarchy (dense -> coarse)

    kk = jax.random.split(key, 12)
    xyz = jax.random.normal(kk[0], (B, N0, 3), jnp.float32)
    xyz1 = jax.random.normal(kk[1], (B, N1, 3), jnp.float32)
    xyz2 = jax.random.normal(kk[2], (B, N2, 3), jnp.float32)
    xyz3 = jax.random.normal(kk[3], (B, N3, 3), jnp.float32)
    xyz4 = jax.random.normal(kk[4], (B, N4, 3), jnp.float32)
    f1 = jax.random.normal(kk[5], (B, N1, 64), jnp.float32)
    f2 = jax.random.normal(kk[6], (B, N2, 64), jnp.float32)
    f3 = jax.random.normal(kk[7], (B, N3, 128), jnp.float32)
    f4 = jax.random.normal(kk[8], (B, N4, 256), jnp.float32)

    params = make_params(kk[9], num_class)

    fwd = jax.jit(decoder_forward)
    out, f4_out = fwd(params, xyz, xyz1, f1, xyz2, f2, xyz3, f3, xyz4, f4)
    out = jax.block_until_ready(out)
    f4_out = jax.block_until_ready(f4_out)

    ref_out, _ = _decoder_ref(params, xyz, xyz1, f1, xyz2, f2, xyz3, f3, xyz4, f4)
    # bf16 MXU operands + bf16 output slab vs f32 reference -> 2e-2 tolerance.
    np.testing.assert_allclose(np.asarray(out), np.asarray(ref_out), rtol=2e-2, atol=2e-2)
    assert out.shape == (B, N0, num_class)
    assert np.array_equal(np.asarray(f4_out), np.asarray(f4))

    print("KERNEL_OK")
</pallas_src>

<mosaic_0001>
module attributes {stable_mosaic.version = 11 : i64} {
  func.func @_decoder_kernel(%arg0: i32, %arg1: i32, %arg2: memref<1x64x3xf32, #tpu.memory_space<vmem>>, %arg3: memref<1x32x3xf32, #tpu.memory_space<vmem>>, %arg4: memref<1x16x3xf32, #tpu.memory_space<vmem>>, %arg5: memref<1x8x3xf32, #tpu.memory_space<vmem>>, %arg6: memref<1x3x32xf32, #tpu.memory_space<vmem>>, %arg7: memref<1x3x16xf32, #tpu.memory_space<vmem>>, %arg8: memref<1x3x8xf32, #tpu.memory_space<vmem>>, %arg9: memref<1x3x4xf32, #tpu.memory_space<vmem>>, %arg10: memref<1x32x64xbf16, #tpu.memory_space<vmem>>, %arg11: memref<1x16x64xbf16, #tpu.memory_space<vmem>>, %arg12: memref<1x8x128xbf16, #tpu.memory_space<vmem>>, %arg13: memref<1x4x256xbf16, #tpu.memory_space<vmem>>, %arg14: memref<128x256xbf16, #tpu.memory_space<vmem>>, %arg15: memref<256x256xbf16, #tpu.memory_space<vmem>>, %arg16: memref<1x256xf32, #tpu.memory_space<vmem>>, %arg17: memref<256x256xbf16, #tpu.memory_space<vmem>>, %arg18: memref<1x256xf32, #tpu.memory_space<vmem>>, %arg19: memref<64x256xbf16, #tpu.memory_space<vmem>>, %arg20: memref<256x256xbf16, #tpu.memory_space<vmem>>, %arg21: memref<1x256xf32, #tpu.memory_space<vmem>>, %arg22: memref<256x128xbf16, #tpu.memory_space<vmem>>, %arg23: memref<1x128xf32, #tpu.memory_space<vmem>>, %arg24: memref<64x128xbf16, #tpu.memory_space<vmem>>, %arg25: memref<128x128xbf16, #tpu.memory_space<vmem>>, %arg26: memref<1x128xf32, #tpu.memory_space<vmem>>, %arg27: memref<128x128xbf16, #tpu.memory_space<vmem>>, %arg28: memref<1x128xf32, #tpu.memory_space<vmem>>, %arg29: memref<128x128xbf16, #tpu.memory_space<vmem>>, %arg30: memref<1x128xf32, #tpu.memory_space<vmem>>, %arg31: memref<128x64xbf16, #tpu.memory_space<vmem>>, %arg32: memref<1x64xf32, #tpu.memory_space<vmem>>, %arg33: memref<64x32xbf16, #tpu.memory_space<vmem>>, %arg34: memref<1x32xf32, #tpu.memory_space<vmem>>, %arg35: memref<32x128xbf16, #tpu.memory_space<vmem>>, %arg36: memref<1x128xf32, #tpu.memory_space<vmem>>, %arg37: memref<1x64x128xbf16, #tpu.memory_space<vmem>>, %arg38: memref<32x128xbf16, #tpu.memory_space<vmem>>) attributes {dimension_semantics = [#tpu.dimension_semantics<parallel>, #tpu.dimension_semantics<arbitrary>], iteration_bounds = array<i64: 2, 1>, scalar_prefetch = 0 : i64, scratch_operands = 1 : i64, tpu.core_type = #tpu.core_type<tc>, window_params = [{transform_indices = @transform_0, window_bounds = array<i64: 1, 64, 3>}, {transform_indices = @transform_1, window_bounds = array<i64: 1, 32, 3>}, {transform_indices = @transform_2, window_bounds = array<i64: 1, 16, 3>}, {transform_indices = @transform_3, window_bounds = array<i64: 1, 8, 3>}, {transform_indices = @transform_4, window_bounds = array<i64: 1, 3, 32>}, {transform_indices = @transform_5, window_bounds = array<i64: 1, 3, 16>}, {transform_indices = @transform_6, window_bounds = array<i64: 1, 3, 8>}, {transform_indices = @transform_7, window_bounds = array<i64: 1, 3, 4>}, {transform_indices = @transform_8, window_bounds = array<i64: 1, 32, 64>}, {transform_indices = @transform_9, window_bounds = array<i64: 1, 16, 64>}, {transform_indices = @transform_10, window_bounds = array<i64: 1, 8, 128>}, {transform_indices = @transform_11, window_bounds = array<i64: 1, 4, 256>}, {pipeline_mode = #tpu.pipeline_mode<synchronous>, transform_indices = @transform_12, window_bounds = array<i64: 128, 256>}, {pipeline_mode = #tpu.pipeline_mode<synchronous>, transform_indices = @transform_13, window_bounds = array<i64: 256, 256>}, {pipeline_mode = #tpu.pipeline_mode<synchronous>, transform_indices = @transform_14, window_bounds = array<i64: 1, 256>}, {pipeline_mode = #tpu.pipeline_mode<synchronous>, transform_indices = @transform_15, window_bounds = array<i64: 256, 256>}, {pipeline_mode = #tpu.pipeline_mode<synchronous>, transform_indices = @transform_16, window_bounds = array<i64: 1, 256>}, {pipeline_mode = #tpu.pipeline_mode<synchronous>, transform_indices = @transform_17, window_bounds = array<i64: 64, 256>}, {pipeline_mode = #tpu.pipeline_mode<synchronous>, transform_indices = @transform_18, window_bounds = array<i64: 256, 256>}, {pipeline_mode = #tpu.pipeline_mode<synchronous>, transform_indices = @transform_19, window_bounds = array<i64: 1, 256>}, {pipeline_mode = #tpu.pipeline_mode<synchronous>, transform_indices = @transform_20, window_bounds = array<i64: 256, 128>}, {pipeline_mode = #tpu.pipeline_mode<synchronous>, transform_indices = @transform_21, window_bounds = array<i64: 1, 128>}, {pipeline_mode = #tpu.pipeline_mode<synchronous>, transform_indices = @transform_22, window_bounds = array<i64: 64, 128>}, {pipeline_mode = #tpu.pipeline_mode<synchronous>, transform_indices = @transform_23, window_bounds = array<i64: 128, 128>}, {pipeline_mode = #tpu.pipeline_mode<synchronous>, transform_indices = @transform_24, window_bounds = array<i64: 1, 128>}, {pipeline_mode = #tpu.pipeline_mode<synchronous>, transform_indices = @transform_25, window_bounds = array<i64: 128, 128>}, {pipeline_mode = #tpu.pipeline_mode<synchronous>, transform_indices = @transform_26, window_bounds = array<i64: 1, 128>}, {pipeline_mode = #tpu.pipeline_mode<synchronous>, transform_indices = @transform_27, window_bounds = array<i64: 128, 128>}, {pipeline_mode = #tpu.pipeline_mode<synchronous>, transform_indices = @transform_28, window_bounds = array<i64: 1, 128>}, {pipeline_mode = #tpu.pipeline_mode<synchronous>, transform_indices = @transform_29, window_bounds = array<i64: 128, 64>}, {pipeline_mode = #tpu.pipeline_mode<synchronous>, transform_indices = @transform_30, window_bounds = array<i64: 1, 64>}, {pipeline_mode = #tpu.pipeline_mode<synchronous>, transform_indices = @transform_31, window_bounds = array<i64: 64, 32>}, {pipeline_mode = #tpu.pipeline_mode<synchronous>, transform_indices = @transform_32, window_bounds = array<i64: 1, 32>}, {pipeline_mode = #tpu.pipeline_mode<synchronous>, transform_indices = @transform_33, window_bounds = array<i64: 32, 128>}, {pipeline_mode = #tpu.pipeline_mode<synchronous>, transform_indices = @transform_34, window_bounds = array<i64: 1, 128>}, {transform_indices = @transform_35, window_bounds = array<i64: 1, 64, 128>}]} {
    %c0_i32 = arith.constant 0 : i32
    %0 = arith.cmpi eq, %arg1, %c0_i32 : i32
    %1 = arith.extui %0 : i1 to i32
    %c0_i32_0 = arith.constant 0 : i32
    %2 = arith.cmpi ne, %1, %c0_i32_0 : i32
    scf.if %2 {
      %c0_56 = arith.constant 0 : index
      %c0_57 = arith.constant 0 : index
      %c0_58 = arith.constant 0 : index
      %140 = vector.load %arg5[%c0_56, %c0_57, %c0_58] : memref<1x8x3xf32, #tpu.memory_space<vmem>>, vector<1x8x3xf32>
      %141 = vector.shape_cast %140 : vector<1x8x3xf32> to vector<8x3xf32>
      %c0_59 = arith.constant 0 : index
      %c0_60 = arith.constant 0 : index
      %c0_61 = arith.constant 0 : index
      %142 = vector.load %arg9[%c0_59, %c0_60, %c0_61] : memref<1x3x4xf32, #tpu.memory_space<vmem>>, vector<1x3x4xf32>
      %143 = vector.shape_cast %142 : vector<1x3x4xf32> to vector<3x4xf32>
      %c0_62 = arith.constant 0 : index
      %c0_63 = arith.constant 0 : index
      %c0_64 = arith.constant 0 : index
      %144 = vector.load %arg12[%c0_62, %c0_63, %c0_64] : memref<1x8x128xbf16, #tpu.memory_space<vmem>>, vector<1x8x128xbf16>
      %145 = vector.shape_cast %144 : vector<1x8x128xbf16> to vector<8x128xbf16>
      %c0_65 = arith.constant 0 : index
      %c0_66 = arith.constant 0 : index
      %c0_67 = arith.constant 0 : index
      %146 = vector.load %arg13[%c0_65, %c0_66, %c0_67] : memref<1x4x256xbf16, #tpu.memory_space<vmem>>, vector<1x4x256xbf16>
      %147 = vector.shape_cast %146 : vector<1x4x256xbf16> to vector<4x256xbf16>
      %c0_68 = arith.constant 0 : index
      %c0_69 = arith.constant 0 : index
      %148 = vector.load %arg14[%c0_68, %c0_69] : memref<128x256xbf16, #tpu.memory_space<vmem>>, vector<128x256xbf16>
      %c0_70 = arith.constant 0 : index
      %c0_71 = arith.constant 0 : index
      %149 = vector.load %arg15[%c0_70, %c0_71] : memref<256x256xbf16, #tpu.memory_space<vmem>>, vector<256x256xbf16>
      %c0_72 = arith.constant 0 : index
      %c0_73 = arith.constant 0 : index
      %150 = vector.load %arg16[%c0_72, %c0_73] : memref<1x256xf32, #tpu.memory_space<vmem>>, vector<1x256xf32>
      %c0_74 = arith.constant 0 : index
      %c0_75 = arith.constant 0 : index
      %151 = vector.load %arg17[%c0_74, %c0_75] : memref<256x256xbf16, #tpu.memory_space<vmem>>, vector<256x256xbf16>
      %c0_76 = arith.constant 0 : index
      %c0_77 = arith.constant 0 : index
      %152 = vector.load %arg18[%c0_76, %c0_77] : memref<1x256xf32, #tpu.memory_space<vmem>>, vector<1x256xf32>
      %cst_78 = arith.constant dense<0.000000e+00> : vector<8x4xf32>
      %153 = tpu.matmul %141, %143, %cst_78 {dimension_numbers = #tpu.dot_dimension_numbers<[1], [0], [0], [1], [0, 0, 1, 1], [], []>} : vector<8x3xf32>, vector<3x4xf32>, vector<8x4xf32> -> vector<8x4xf32>
      %154 = arith.mulf %141, %141 : vector<8x3xf32>
      %cst_79 = arith.constant dense<0.000000e+00> : vector<8xf32>
      %155 = vector.multi_reduction <add>, %154, %cst_79 [1] : vector<8x3xf32> to vector<8xf32>
      %156 = vector.shape_cast %155 : vector<8xf32> to vector<8x1xf32>
      %157 = arith.mulf %143, %143 : vector<3x4xf32>
      %cst_80 = arith.constant dense<0.000000e+00> : vector<4xf32>
      %158 = vector.multi_reduction <add>, %157, %cst_80 [0] : vector<3x4xf32> to vector<4xf32>
      %159 = vector.shape_cast %158 : vector<4xf32> to vector<1x4xf32>
      %cst_81 = arith.constant 2.000000e+00 : f32
      %160 = vector.broadcast %cst_81 : f32 to vector<8x4xf32>
      %161 = arith.mulf %160, %153 : vector<8x4xf32>
      %162 = vector.broadcast %156 : vector<8x1xf32> to vector<8x4xf32>
      %163 = arith.subf %162, %161 : vector<8x4xf32>
      %164 = vector.broadcast %159 : vector<1x4xf32> to vector<8x4xf32>
      %165 = arith.addf %163, %164 : vector<8x4xf32>
      %cst_82 = arith.constant 0.000000e+00 : f32
      %166 = vector.broadcast %cst_82 : f32 to vector<8x4xf32>
      %167 = arith.maximumf %165, %166 : vector<8x4xf32>
      %168 = tpu.iota {dimensions = array<i32: 1>} : vector<1x4xi32>
      %cst_83 = arith.constant 0.000000e+00 : f32
      %169 = vector.broadcast %cst_83 : f32 to vector<8x4xf32>
      %cst_84 = arith.constant 0.000000e+00 : f32
      %170 = vector.broadcast %cst_84 : f32 to vector<8x1xf32>
      %cst_85 = arith.constant dense<0x7F800000> : vector<8xf32>
      %171 = vector.multi_reduction <minimumf>, %167, %cst_85 [1] : vector<8x4xf32> to vector<8xf32>
      %172 = vector.shape_cast %171 : vector<8xf32> to vector<8x1xf32>
      %173 = vector.broadcast %172 : vector<8x1xf32> to vector<8x4xf32>
      %174 = arith.cmpf ole, %167, %173 : vector<8x4xf32>
      %c4_i32 = arith.constant 4 : i32
      %175 = vector.shape_cast %168 : vector<1x4xi32> to vector<1x4xi32>
      %176 = vector.broadcast %175 : vector<1x4xi32> to vector<8x4xi32>
      %177 = vector.broadcast %c4_i32 : i32 to vector<8x4xi32>
      %178 = arith.select %174, %176, %177 : vector<8x4xi1>, vector<8x4xi32>
      %cst_86 = arith.constant dense<2147483647> : vector<8xi32>
      %179 = vector.multi_reduction <minsi>, %178, %cst_86 [1] : vector<8x4xi32> to vector<8xi32>
      %180 = vector.shape_cast %179 : vector<8xi32> to vector<8x1xi32>
      %181 = vector.broadcast %168 : vector<1x4xi32> to vector<8x4xi32>
      %182 = vector.broadcast %180 : vector<8x1xi32> to vector<8x4xi32>
      %183 = arith.cmpi eq, %181, %182 : vector<8x4xi32>
      %cst_87 = arith.constant 9.99999993E-9 : f32
      %184 = vector.broadcast %cst_87 : f32 to vector<8x1xf32>
      %185 = arith.addf %172, %184 : vector<8x1xf32>
      %186 = tpu.reciprocal %185 {approx = true} : vector<8x1xf32> -> vector<8x1xf32>
      %187 = vector.shape_cast %186 : vector<8x1xf32> to vector<8x1xf32>
      %188 = vector.broadcast %187 : vector<8x1xf32> to vector<8x4xf32>
      %189 = arith.select %183, %188, %169 : vector<8x4xi1>, vector<8x4xf32>
      %190 = arith.addf %170, %186 : vector<8x1xf32>
      %cst_88 = arith.constant 0x7F800000 : f32
      %191 = vector.broadcast %cst_88 : f32 to vector<8x4xf32>
      %192 = arith.select %183, %191, %167 : vector<8x4xi1>, vector<8x4xf32>
      %cst_89 = arith.constant dense<0x7F800000> : vector<8xf32>
      %193 = vector.multi_reduction <minimumf>, %192, %cst_89 [1] : vector<8x4xf32> to vector<8xf32>
      %194 = vector.shape_cast %193 : vector<8xf32> to vector<8x1xf32>
      %195 = vector.broadcast %194 : vector<8x1xf32> to vector<8x4xf32>
      %196 = arith.cmpf ole, %192, %195 : vector<8x4xf32>
      %c4_i32_90 = arith.constant 4 : i32
      %197 = vector.shape_cast %168 : vector<1x4xi32> to vector<1x4xi32>
      %198 = vector.broadcast %197 : vector<1x4xi32> to vector<8x4xi32>
      %199 = vector.broadcast %c4_i32_90 : i32 to vector<8x4xi32>
      %200 = arith.select %196, %198, %199 : vector<8x4xi1>, vector<8x4xi32>
      %cst_91 = arith.constant dense<2147483647> : vector<8xi32>
      %201 = vector.multi_reduction <minsi>, %200, %cst_91 [1] : vector<8x4xi32> to vector<8xi32>
      %202 = vector.shape_cast %201 : vector<8xi32> to vector<8x1xi32>
      %203 = vector.broadcast %168 : vector<1x4xi32> to vector<8x4xi32>
      %204 = vector.broadcast %202 : vector<8x1xi32> to vector<8x4xi32>
      %205 = arith.cmpi eq, %203, %204 : vector<8x4xi32>
      %cst_92 = arith.constant 9.99999993E-9 : f32
      %206 = vector.broadcast %cst_92 : f32 to vector<8x1xf32>
      %207 = arith.addf %194, %206 : vector<8x1xf32>
      %208 = tpu.reciprocal %207 {approx = true} : vector<8x1xf32> -> vector<8x1xf32>
      %209 = vector.shape_cast %208 : vector<8x1xf32> to vector<8x1xf32>
      %210 = vector.broadcast %209 : vector<8x1xf32> to vector<8x4xf32>
      %211 = arith.select %205, %210, %189 : vector<8x4xi1>, vector<8x4xf32>
      %212 = arith.addf %190, %208 : vector<8x1xf32>
      %cst_93 = arith.constant 0x7F800000 : f32
      %213 = vector.broadcast %cst_93 : f32 to vector<8x4xf32>
      %214 = arith.select %205, %213, %192 : vector<8x4xi1>, vector<8x4xf32>
      %cst_94 = arith.constant dense<0x7F800000> : vector<8xf32>
      %215 = vector.multi_reduction <minimumf>, %214, %cst_94 [1] : vector<8x4xf32> to vector<8xf32>
      %216 = vector.shape_cast %215 : vector<8xf32> to vector<8x1xf32>
      %217 = vector.broadcast %216 : vector<8x1xf32> to vector<8x4xf32>
      %218 = arith.cmpf ole, %214, %217 : vector<8x4xf32>
      %c4_i32_95 = arith.constant 4 : i32
      %219 = vector.shape_cast %168 : vector<1x4xi32> to vector<1x4xi32>
      %220 = vector.broadcast %219 : vector<1x4xi32> to vector<8x4xi32>
      %221 = vector.broadcast %c4_i32_95 : i32 to vector<8x4xi32>
      %222 = arith.select %218, %220, %221 : vector<8x4xi1>, vector<8x4xi32>
      %cst_96 = arith.constant dense<2147483647> : vector<8xi32>
      %223 = vector.multi_reduction <minsi>, %222, %cst_96 [1] : vector<8x4xi32> to vector<8xi32>
      %224 = vector.shape_cast %223 : vector<8xi32> to vector<8x1xi32>
      %225 = vector.broadcast %168 : vector<1x4xi32> to vector<8x4xi32>
      %226 = vector.broadcast %224 : vector<8x1xi32> to vector<8x4xi32>
      %227 = arith.cmpi eq, %225, %226 : vector<8x4xi32>
      %cst_97 = arith.constant 9.99999993E-9 : f32
      %228 = vector.broadcast %cst_97 : f32 to vector<8x1xf32>
      %229 = arith.addf %216, %228 : vector<8x1xf32>
      %230 = tpu.reciprocal %229 {approx = true} : vector<8x1xf32> -> vector<8x1xf32>
      %231 = vector.shape_cast %230 : vector<8x1xf32> to vector<8x1xf32>
      %232 = vector.broadcast %231 : vector<8x1xf32> to vector<8x4xf32>
      %233 = arith.select %227, %232, %211 : vector<8x4xi1>, vector<8x4xf32>
      %234 = arith.addf %212, %230 : vector<8x1xf32>
      %235 = arith.truncf %233 : vector<8x4xf32> to vector<8x4xbf16>
      %cst_98 = arith.constant dense<0.000000e+00> : vector<8x256xf32>
      %236 = tpu.matmul %235, %147, %cst_98 {dimension_numbers = #tpu.dot_dimension_numbers<[1], [0], [0], [1], [0, 0, 1, 1], [], []>} : vector<8x4xbf16>, vector<4x256xbf16>, vector<8x256xf32> -> vector<8x256xf32>
      %237 = tpu.reciprocal %234 {approx = true} : vector<8x1xf32> -> vector<8x1xf32>
      %238 = vector.broadcast %237 : vector<8x1xf32> to vector<8x256xf32>
      %239 = arith.mulf %236, %238 : vector<8x256xf32>
      %240 = arith.truncf %239 : vector<8x256xf32> to vector<8x256xbf16>
      %cst_99 = arith.constant dense<0.000000e+00> : vector<8x256xf32>
      %241 = tpu.matmul %240, %149, %cst_99 {dimension_numbers = #tpu.dot_dimension_numbers<[1], [0], [0], [1], [0, 0, 1, 1], [], []>} : vector<8x256xbf16>, vector<256x256xbf16>, vector<8x256xf32> -> vector<8x256xf32>
      %cst_100 = arith.constant dense<0.000000e+00> : vector<8x256xf32>
      %242 = tpu.matmul %145, %148, %cst_100 {dimension_numbers = #tpu.dot_dimension_numbers<[1], [0], [0], [1], [0, 0, 1, 1], [], []>} : vector<8x128xbf16>, vector<128x256xbf16>, vector<8x256xf32> -> vector<8x256xf32>
      %243 = arith.addf %241, %242 : vector<8x256xf32>
      %244 = vector.broadcast %150 : vector<1x256xf32> to vector<8x256xf32>
      %245 = arith.addf %243, %244 : vector<8x256xf32>
      %cst_101 = arith.constant 0.000000e+00 : f32
      %246 = vector.broadcast %cst_101 : f32 to vector<8x256xf32>
      %247 = arith.maximumf %245, %246 : vector<8x256xf32>
      %248 = arith.truncf %247 : vector<8x256xf32> to vector<8x256xbf16>
      %cst_102 = arith.constant dense<0.000000e+00> : vector<8x256xf32>
      %249 = tpu.matmul %248, %151, %cst_102 {dimension_numbers = #tpu.dot_dimension_numbers<[1], [0], [0], [1], [0, 0, 1, 1], [], []>} : vector<8x256xbf16>, vector<256x256xbf16>, vector<8x256xf32> -> vector<8x256xf32>
      %250 = vector.broadcast %152 : vector<1x256xf32> to vector<8x256xf32>
      %251 = arith.addf %249, %250 : vector<8x256xf32>
      %cst_103 = arith.constant 0.000000e+00 : f32
      %252 = vector.broadcast %cst_103 : f32 to vector<8x256xf32>
      %253 = arith.maximumf %251, %252 : vector<8x256xf32>
      %c0_104 = arith.constant 0 : index
      %c0_105 = arith.constant 0 : index
      %c0_106 = arith.constant 0 : index
      %254 = vector.load %arg4[%c0_104, %c0_105, %c0_106] : memref<1x16x3xf32, #tpu.memory_space<vmem>>, vector<1x16x3xf32>
      %255 = vector.shape_cast %254 : vector<1x16x3xf32> to vector<16x3xf32>
      %c0_107 = arith.constant 0 : index
      %c0_108 = arith.constant 0 : index
      %c0_109 = arith.constant 0 : index
      %256 = vector.load %arg8[%c0_107, %c0_108, %c0_109] : memref<1x3x8xf32, #tpu.memory_space<vmem>>, vector<1x3x8xf32>
      %257 = vector.shape_cast %256 : vector<1x3x8xf32> to vector<3x8xf32>
      %c0_110 = arith.constant 0 : index
      %c0_111 = arith.constant 0 : index
      %c0_112 = arith.constant 0 : index
      %258 = vector.load %arg11[%c0_110, %c0_111, %c0_112] : memref<1x16x64xbf16, #tpu.memory_space<vmem>>, vector<1x16x64xbf16>
      %259 = vector.shape_cast %258 : vector<1x16x64xbf16> to vector<16x64xbf16>
      %c0_113 = arith.constant 0 : index
      %c0_114 = arith.constant 0 : index
      %260 = vector.load %arg19[%c0_113, %c0_114] : memref<64x256xbf16, #tpu.memory_space<vmem>>, vector<64x256xbf16>
      %c0_115 = arith.constant 0 : index
      %c0_116 = arith.constant 0 : index
      %261 = vector.load %arg20[%c0_115, %c0_116] : memref<256x256xbf16, #tpu.memory_space<vmem>>, vector<256x256xbf16>
      %c0_117 = arith.constant 0 : index
      %c0_118 = arith.constant 0 : index
      %262 = vector.load %arg21[%c0_117, %c0_118] : memref<1x256xf32, #tpu.memory_space<vmem>>, vector<1x256xf32>
      %c0_119 = arith.constant 0 : index
      %c0_120 = arith.constant 0 : index
      %263 = vector.load %arg22[%c0_119, %c0_120] : memref<256x128xbf16, #tpu.memory_space<vmem>>, vector<256x128xbf16>
      %c0_121 = arith.constant 0 : index
      %c0_122 = arith.constant 0 : index
      %264 = vector.load %arg23[%c0_121, %c0_122] : memref<1x128xf32, #tpu.memory_space<vmem>>, vector<1x128xf32>
      %cst_123 = arith.constant dense<0.000000e+00> : vector<16x8xf32>
      %265 = tpu.matmul %255, %257, %cst_123 {dimension_numbers = #tpu.dot_dimension_numbers<[1], [0], [0], [1], [0, 0, 1, 1], [], []>} : vector<16x3xf32>, vector<3x8xf32>, vector<16x8xf32> -> vector<16x8xf32>
      %266 = arith.mulf %255, %255 : vector<16x3xf32>
      %cst_124 = arith.constant dense<0.000000e+00> : vector<16xf32>
      %267 = vector.multi_reduction <add>, %266, %cst_124 [1] : vector<16x3xf32> to vector<16xf32>
      %268 = vector.shape_cast %267 : vector<16xf32> to vector<16x1xf32>
      %269 = arith.mulf %257, %257 : vector<3x8xf32>
      %cst_125 = arith.constant dense<0.000000e+00> : vector<8xf32>
      %270 = vector.multi_reduction <add>, %269, %cst_125 [0] : vector<3x8xf32> to vector<8xf32>
      %271 = vector.shape_cast %270 : vector<8xf32> to vector<1x8xf32>
      %cst_126 = arith.constant 2.000000e+00 : f32
      %272 = vector.broadcast %cst_126 : f32 to vector<16x8xf32>
      %273 = arith.mulf %272, %265 : vector<16x8xf32>
      %274 = vector.broadcast %268 : vector<16x1xf32> to vector<16x8xf32>
      %275 = arith.subf %274, %273 : vector<16x8xf32>
      %276 = vector.broadcast %271 : vector<1x8xf32> to vector<16x8xf32>
      %277 = arith.addf %275, %276 : vector<16x8xf32>
      %cst_127 = arith.constant 0.000000e+00 : f32
      %278 = vector.broadcast %cst_127 : f32 to vector<16x8xf32>
      %279 = arith.maximumf %277, %278 : vector<16x8xf32>
      %280 = tpu.iota {dimensions = array<i32: 1>} : vector<1x8xi32>
      %cst_128 = arith.constant 0.000000e+00 : f32
      %281 = vector.broadcast %cst_128 : f32 to vector<16x8xf32>
      %cst_129 = arith.constant 0.000000e+00 : f32
      %282 = vector.broadcast %cst_129 : f32 to vector<16x1xf32>
      %cst_130 = arith.constant dense<0x7F800000> : vector<16xf32>
      %283 = vector.multi_reduction <minimumf>, %279, %cst_130 [1] : vector<16x8xf32> to vector<16xf32>
      %284 = vector.shape_cast %283 : vector<16xf32> to vector<16x1xf32>
      %285 = vector.broadcast %284 : vector<16x1xf32> to vector<16x8xf32>
      %286 = arith.cmpf ole, %279, %285 : vector<16x8xf32>
      %c8_i32 = arith.constant 8 : i32
      %287 = vector.shape_cast %280 : vector<1x8xi32> to vector<1x8xi32>
      %288 = vector.broadcast %287 : vector<1x8xi32> to vector<16x8xi32>
      %289 = vector.broadcast %c8_i32 : i32 to vector<16x8xi32>
      %290 = arith.select %286, %288, %289 : vector<16x8xi1>, vector<16x8xi32>
      %cst_131 = arith.constant dense<2147483647> : vector<16xi32>
      %291 = vector.multi_reduction <minsi>, %290, %cst_131 [1] : vector<16x8xi32> to vector<16xi32>
      %292 = vector.shape_cast %291 : vector<16xi32> to vector<16x1xi32>
      %293 = vector.broadcast %280 : vector<1x8xi32> to vector<16x8xi32>
      %294 = vector.broadcast %292 : vector<16x1xi32> to vector<16x8xi32>
      %295 = arith.cmpi eq, %293, %294 : vector<16x8xi32>
      %cst_132 = arith.constant 9.99999993E-9 : f32
      %296 = vector.broadcast %cst_132 : f32 to vector<16x1xf32>
      %297 = arith.addf %284, %296 : vector<16x1xf32>
      %298 = tpu.reciprocal %297 {approx = true} : vector<16x1xf32> -> vector<16x1xf32>
      %299 = vector.shape_cast %298 : vector<16x1xf32> to vector<16x1xf32>
      %300 = vector.broadcast %299 : vector<16x1xf32> to vector<16x8xf32>
      %301 = arith.select %295, %300, %281 : vector<16x8xi1>, vector<16x8xf32>
      %302 = arith.addf %282, %298 : vector<16x1xf32>
      %cst_133 = arith.constant 0x7F800000 : f32
      %303 = vector.broadcast %cst_133 : f32 to vector<16x8xf32>
      %304 = arith.select %295, %303, %279 : vector<16x8xi1>, vector<16x8xf32>
      %cst_134 = arith.constant dense<0x7F800000> : vector<16xf32>
      %305 = vector.multi_reduction <minimumf>, %304, %cst_134 [1] : vector<16x8xf32> to vector<16xf32>
      %306 = vector.shape_cast %305 : vector<16xf32> to vector<16x1xf32>
      %307 = vector.broadcast %306 : vector<16x1xf32> to vector<16x8xf32>
      %308 = arith.cmpf ole, %304, %307 : vector<16x8xf32>
      %c8_i32_135 = arith.constant 8 : i32
      %309 = vector.shape_cast %280 : vector<1x8xi32> to vector<1x8xi32>
      %310 = vector.broadcast %309 : vector<1x8xi32> to vector<16x8xi32>
      %311 = vector.broadcast %c8_i32_135 : i32 to vector<16x8xi32>
      %312 = arith.select %308, %310, %311 : vector<16x8xi1>, vector<16x8xi32>
      %cst_136 = arith.constant dense<2147483647> : vector<16xi32>
      %313 = vector.multi_reduction <minsi>, %312, %cst_136 [1] : vector<16x8xi32> to vector<16xi32>
      %314 = vector.shape_cast %313 : vector<16xi32> to vector<16x1xi32>
      %315 = vector.broadcast %280 : vector<1x8xi32> to vector<16x8xi32>
      %316 = vector.broadcast %314 : vector<16x1xi32> to vector<16x8xi32>
      %317 = arith.cmpi eq, %315, %316 : vector<16x8xi32>
      %cst_137 = arith.constant 9.99999993E-9 : f32
      %318 = vector.broadcast %cst_137 : f32 to vector<16x1xf32>
      %319 = arith.addf %306, %318 : vector<16x1xf32>
      %320 = tpu.reciprocal %319 {approx = true} : vector<16x1xf32> -> vector<16x1xf32>
      %321 = vector.shape_cast %320 : vector<16x1xf32> to vector<16x1xf32>
      %322 = vector.broadcast %321 : vector<16x1xf32> to vector<16x8xf32>
      %323 = arith.select %317, %322, %301 : vector<16x8xi1>, vector<16x8xf32>
      %324 = arith.addf %302, %320 : vector<16x1xf32>
      %cst_138 = arith.constant 0x7F800000 : f32
      %325 = vector.broadcast %cst_138 : f32 to vector<16x8xf32>
      %326 = arith.select %317, %325, %304 : vector<16x8xi1>, vector<16x8xf32>
      %cst_139 = arith.constant dense<0x7F800000> : vector<16xf32>
      %327 = vector.multi_reduction <minimumf>, %326, %cst_139 [1] : vector<16x8xf32> to vector<16xf32>
      %328 = vector.shape_cast %327 : vector<16xf32> to vector<16x1xf32>
      %329 = vector.broadcast %328 : vector<16x1xf32> to vector<16x8xf32>
      %330 = arith.cmpf ole, %326, %329 : vector<16x8xf32>
      %c8_i32_140 = arith.constant 8 : i32
      %331 = vector.shape_cast %280 : vector<1x8xi32> to vector<1x8xi32>
      %332 = vector.broadcast %331 : vector<1x8xi32> to vector<16x8xi32>
      %333 = vector.broadcast %c8_i32_140 : i32 to vector<16x8xi32>
      %334 = arith.select %330, %332, %333 : vector<16x8xi1>, vector<16x8xi32>
      %cst_141 = arith.constant dense<2147483647> : vector<16xi32>
      %335 = vector.multi_reduction <minsi>, %334, %cst_141 [1] : vector<16x8xi32> to vector<16xi32>
      %336 = vector.shape_cast %335 : vector<16xi32> to vector<16x1xi32>
      %337 = vector.broadcast %280 : vector<1x8xi32> to vector<16x8xi32>
      %338 = vector.broadcast %336 : vector<16x1xi32> to vector<16x8xi32>
      %339 = arith.cmpi eq, %337, %338 : vector<16x8xi32>
      %cst_142 = arith.constant 9.99999993E-9 : f32
      %340 = vector.broadcast %cst_142 : f32 to vector<16x1xf32>
      %341 = arith.addf %328, %340 : vector<16x1xf32>
      %342 = tpu.reciprocal %341 {approx = true} : vector<16x1xf32> -> vector<16x1xf32>
      %343 = vector.shape_cast %342 : vector<16x1xf32> to vector<16x1xf32>
      %344 = vector.broadcast %343 : vector<16x1xf32> to vector<16x8xf32>
      %345 = arith.select %339, %344, %323 : vector<16x8xi1>, vector<16x8xf32>
      %346 = arith.addf %324, %342 : vector<16x1xf32>
      %347 = arith.truncf %345 : vector<16x8xf32> to vector<16x8xbf16>
      %348 = arith.truncf %253 : vector<8x256xf32> to vector<8x256xbf16>
      %cst_143 = arith.constant dense<0.000000e+00> : vector<16x256xf32>
      %349 = tpu.matmul %347, %348, %cst_143 {dimension_numbers = #tpu.dot_dimension_numbers<[1], [0], [0], [1], [0, 0, 1, 1], [], []>} : vector<16x8xbf16>, vector<8x256xbf16>, vector<16x256xf32> -> vector<16x256xf32>
      %350 = tpu.reciprocal %346 {approx = true} : vector<16x1xf32> -> vector<16x1xf32>
      %351 = vector.broadcast %350 : vector<16x1xf32> to vector<16x256xf32>
      %352 = arith.mulf %349, %351 : vector<16x256xf32>
      %353 = arith.truncf %352 : vector<16x256xf32> to vector<16x256xbf16>
      %cst_144 = arith.constant dense<0.000000e+00> : vector<16x256xf32>
      %354 = tpu.matmul %353, %261, %cst_144 {dimension_numbers = #tpu.dot_dimension_numbers<[1], [0], [0], [1], [0, 0, 1, 1], [], []>} : vector<16x256xbf16>, vector<256x256xbf16>, vector<16x256xf32> -> vector<16x256xf32>
      %cst_145 = arith.constant dense<0.000000e+00> : vector<16x256xf32>
      %355 = tpu.matmul %259, %260, %cst_145 {dimension_numbers = #tpu.dot_dimension_numbers<[1], [0], [0], [1], [0, 0, 1, 1], [], []>} : vector<16x64xbf16>, vector<64x256xbf16>, vector<16x256xf32> -> vector<16x256xf32>
      %356 = arith.addf %354, %355 : vector<16x256xf32>
      %357 = vector.broadcast %262 : vector<1x256xf32> to vector<16x256xf32>
      %358 = arith.addf %356, %357 : vector<16x256xf32>
      %cst_146 = arith.constant 0.000000e+00 : f32
      %359 = vector.broadcast %cst_146 : f32 to vector<16x256xf32>
      %360 = arith.maximumf %358, %359 : vector<16x256xf32>
      %361 = arith.truncf %360 : vector<16x256xf32> to vector<16x256xbf16>
      %cst_147 = arith.constant dense<0.000000e+00> : vector<16x128xf32>
      %362 = tpu.matmul %361, %263, %cst_147 {dimension_numbers = #tpu.dot_dimension_numbers<[1], [0], [0], [1], [0, 0, 1, 1], [], []>} : vector<16x256xbf16>, vector<256x128xbf16>, vector<16x128xf32> -> vector<16x128xf32>
      %363 = vector.broadcast %264 : vector<1x128xf32> to vector<16x128xf32>
      %364 = arith.addf %362, %363 : vector<16x128xf32>
      %cst_148 = arith.constant 0.000000e+00 : f32
      %365 = vector.broadcast %cst_148 : f32 to vector<16x128xf32>
      %366 = arith.maximumf %364, %365 : vector<16x128xf32>
      %c0_149 = arith.constant 0 : index
      %c0_150 = arith.constant 0 : index
      %c0_151 = arith.constant 0 : index
      %367 = vector.load %arg3[%c0_149, %c0_150, %c0_151] : memref<1x32x3xf32, #tpu.memory_space<vmem>>, vector<1x32x3xf32>
      %368 = vector.shape_cast %367 : vector<1x32x3xf32> to vector<32x3xf32>
      %c0_152 = arith.constant 0 : index
      %c0_153 = arith.constant 0 : index
      %c0_154 = arith.constant 0 : index
      %369 = vector.load %arg7[%c0_152, %c0_153, %c0_154] : memref<1x3x16xf32, #tpu.memory_space<vmem>>, vector<1x3x16xf32>
      %370 = vector.shape_cast %369 : vector<1x3x16xf32> to vector<3x16xf32>
      %c0_155 = arith.constant 0 : index
      %c0_156 = arith.constant 0 : index
      %c0_157 = arith.constant 0 : index
      %371 = vector.load %arg10[%c0_155, %c0_156, %c0_157] : memref<1x32x64xbf16, #tpu.memory_space<vmem>>, vector<1x32x64xbf16>
      %372 = vector.shape_cast %371 : vector<1x32x64xbf16> to vector<32x64xbf16>
      %c0_158 = arith.constant 0 : index
      %c0_159 = arith.constant 0 : index
      %373 = vector.load %arg24[%c0_158, %c0_159] : memref<64x128xbf16, #tpu.memory_space<vmem>>, vector<64x128xbf16>
      %c0_160 = arith.constant 0 : index
      %c0_161 = arith.constant 0 : index
      %374 = vector.load %arg25[%c0_160, %c0_161] : memref<128x128xbf16, #tpu.memory_space<vmem>>, vector<128x128xbf16>
      %c0_162 = arith.constant 0 : index
      %c0_163 = arith.constant 0 : index
      %375 = vector.load %arg26[%c0_162, %c0_163] : memref<1x128xf32, #tpu.memory_space<vmem>>, vector<1x128xf32>
      %c0_164 = arith.constant 0 : index
      %c0_165 = arith.constant 0 : index
      %376 = vector.load %arg27[%c0_164, %c0_165] : memref<128x128xbf16, #tpu.memory_space<vmem>>, vector<128x128xbf16>
      %c0_166 = arith.constant 0 : index
      %c0_167 = arith.constant 0 : index
      %377 = vector.load %arg28[%c0_166, %c0_167] : memref<1x128xf32, #tpu.memory_space<vmem>>, vector<1x128xf32>
      %cst_168 = arith.constant dense<0.000000e+00> : vector<32x16xf32>
      %378 = tpu.matmul %368, %370, %cst_168 {dimension_numbers = #tpu.dot_dimension_numbers<[1], [0], [0], [1], [0, 0, 1, 1], [], []>} : vector<32x3xf32>, vector<3x16xf32>, vector<32x16xf32> -> vector<32x16xf32>
      %379 = arith.mulf %368, %368 : vector<32x3xf32>
      %cst_169 = arith.constant dense<0.000000e+00> : vector<32xf32>
      %380 = vector.multi_reduction <add>, %379, %cst_169 [1] : vector<32x3xf32> to vector<32xf32>
      %381 = vector.shape_cast %380 : vector<32xf32> to vector<32x1xf32>
      %382 = arith.mulf %370, %370 : vector<3x16xf32>
      %cst_170 = arith.constant dense<0.000000e+00> : vector<16xf32>
      %383 = vector.multi_reduction <add>, %382, %cst_170 [0] : vector<3x16xf32> to vector<16xf32>
      %384 = vector.shape_cast %383 : vector<16xf32> to vector<1x16xf32>
      %cst_171 = arith.constant 2.000000e+00 : f32
      %385 = vector.broadcast %cst_171 : f32 to vector<32x16xf32>
      %386 = arith.mulf %385, %378 : vector<32x16xf32>
      %387 = vector.broadcast %381 : vector<32x1xf32> to vector<32x16xf32>
      %388 = arith.subf %387, %386 : vector<32x16xf32>
      %389 = vector.broadcast %384 : vector<1x16xf32> to vector<32x16xf32>
      %390 = arith.addf %388, %389 : vector<32x16xf32>
      %cst_172 = arith.constant 0.000000e+00 : f32
      %391 = vector.broadcast %cst_172 : f32 to vector<32x16xf32>
      %392 = arith.maximumf %390, %391 : vector<32x16xf32>
      %393 = tpu.iota {dimensions = array<i32: 1>} : vector<1x16xi32>
      %cst_173 = arith.constant 0.000000e+00 : f32
      %394 = vector.broadcast %cst_173 : f32 to vector<32x16xf32>
      %cst_174 = arith.constant 0.000000e+00 : f32
      %395 = vector.broadcast %cst_174 : f32 to vector<32x1xf32>
      %cst_175 = arith.constant dense<0x7F800000> : vector<32xf32>
      %396 = vector.multi_reduction <minimumf>, %392, %cst_175 [1] : vector<32x16xf32> to vector<32xf32>
      %397 = vector.shape_cast %396 : vector<32xf32> to vector<32x1xf32>
      %398 = vector.broadcast %397 : vector<32x1xf32> to vector<32x16xf32>
      %399 = arith.cmpf ole, %392, %398 : vector<32x16xf32>
      %c16_i32 = arith.constant 16 : i32
      %400 = vector.shape_cast %393 : vector<1x16xi32> to vector<1x16xi32>
      %401 = vector.broadcast %400 : vector<1x16xi32> to vector<32x16xi32>
      %402 = vector.broadcast %c16_i32 : i32 to vector<32x16xi32>
      %403 = arith.select %399, %401, %402 : vector<32x16xi1>, vector<32x16xi32>
      %cst_176 = arith.constant dense<2147483647> : vector<32xi32>
      %404 = vector.multi_reduction <minsi>, %403, %cst_176 [1] : vector<32x16xi32> to vector<32xi32>
      %405 = vector.shape_cast %404 : vector<32xi32> to vector<32x1xi32>
      %406 = vector.broadcast %393 : vector<1x16xi32> to vector<32x16xi32>
      %407 = vector.broadcast %405 : vector<32x1xi32> to vector<32x16xi32>
      %408 = arith.cmpi eq, %406, %407 : vector<32x16xi32>
      %cst_177 = arith.constant 9.99999993E-9 : f32
      %409 = vector.broadcast %cst_177 : f32 to vector<32x1xf32>
      %410 = arith.addf %397, %409 : vector<32x1xf32>
      %411 = tpu.reciprocal %410 {approx = true} : vector<32x1xf32> -> vector<32x1xf32>
      %412 = vector.shape_cast %411 : vector<32x1xf32> to vector<32x1xf32>
      %413 = vector.broadcast %412 : vector<32x1xf32> to vector<32x16xf32>
      %414 = arith.select %408, %413, %394 : vector<32x16xi1>, vector<32x16xf32>
      %415 = arith.addf %395, %411 : vector<32x1xf32>
      %cst_178 = arith.constant 0x7F800000 : f32
      %416 = vector.broadcast %cst_178 : f32 to vector<32x16xf32>
      %417 = arith.select %408, %416, %392 : vector<32x16xi1>, vector<32x16xf32>
      %cst_179 = arith.constant dense<0x7F800000> : vector<32xf32>
      %418 = vector.multi_reduction <minimumf>, %417, %cst_179 [1] : vector<32x16xf32> to vector<32xf32>
      %419 = vector.shape_cast %418 : vector<32xf32> to vector<32x1xf32>
      %420 = vector.broadcast %419 : vector<32x1xf32> to vector<32x16xf32>
      %421 = arith.cmpf ole, %417, %420 : vector<32x16xf32>
      %c16_i32_180 = arith.constant 16 : i32
      %422 = vector.shape_cast %393 : vector<1x16xi32> to vector<1x16xi32>
      %423 = vector.broadcast %422 : vector<1x16xi32> to vector<32x16xi32>
      %424 = vector.broadcast %c16_i32_180 : i32 to vector<32x16xi32>
      %425 = arith.select %421, %423, %424 : vector<32x16xi1>, vector<32x16xi32>
      %cst_181 = arith.constant dense<2147483647> : vector<32xi32>
      %426 = vector.multi_reduction <minsi>, %425, %cst_181 [1] : vector<32x16xi32> to vector<32xi32>
      %427 = vector.shape_cast %426 : vector<32xi32> to vector<32x1xi32>
      %428 = vector.broadcast %393 : vector<1x16xi32> to vector<32x16xi32>
      %429 = vector.broadcast %427 : vector<32x1xi32> to vector<32x16xi32>
      %430 = arith.cmpi eq, %428, %429 : vector<32x16xi32>
      %cst_182 = arith.constant 9.99999993E-9 : f32
      %431 = vector.broadcast %cst_182 : f32 to vector<32x1xf32>
      %432 = arith.addf %419, %431 : vector<32x1xf32>
      %433 = tpu.reciprocal %432 {approx = true} : vector<32x1xf32> -> vector<32x1xf32>
      %434 = vector.shape_cast %433 : vector<32x1xf32> to vector<32x1xf32>
      %435 = vector.broadcast %434 : vector<32x1xf32> to vector<32x16xf32>
      %436 = arith.select %430, %435, %414 : vector<32x16xi1>, vector<32x16xf32>
      %437 = arith.addf %415, %433 : vector<32x1xf32>
      %cst_183 = arith.constant 0x7F800000 : f32
      %438 = vector.broadcast %cst_183 : f32 to vector<32x16xf32>
      %439 = arith.select %430, %438, %417 : vector<32x16xi1>, vector<32x16xf32>
      %cst_184 = arith.constant dense<0x7F800000> : vector<32xf32>
      %440 = vector.multi_reduction <minimumf>, %439, %cst_184 [1] : vector<32x16xf32> to vector<32xf32>
      %441 = vector.shape_cast %440 : vector<32xf32> to vector<32x1xf32>
      %442 = vector.broadcast %441 : vector<32x1xf32> to vector<32x16xf32>
      %443 = arith.cmpf ole, %439, %442 : vector<32x16xf32>
      %c16_i32_185 = arith.constant 16 : i32
      %444 = vector.shape_cast %393 : vector<1x16xi32> to vector<1x16xi32>
      %445 = vector.broadcast %444 : vector<1x16xi32> to vector<32x16xi32>
      %446 = vector.broadcast %c16_i32_185 : i32 to vector<32x16xi32>
      %447 = arith.select %443, %445, %446 : vector<32x16xi1>, vector<32x16xi32>
      %cst_186 = arith.constant dense<2147483647> : vector<32xi32>
      %448 = vector.multi_reduction <minsi>, %447, %cst_186 [1] : vector<32x16xi32> to vector<32xi32>
      %449 = vector.shape_cast %448 : vector<32xi32> to vector<32x1xi32>
      %450 = vector.broadcast %393 : vector<1x16xi32> to vector<32x16xi32>
      %451 = vector.broadcast %449 : vector<32x1xi32> to vector<32x16xi32>
      %452 = arith.cmpi eq, %450, %451 : vector<32x16xi32>
      %cst_187 = arith.constant 9.99999993E-9 : f32
      %453 = vector.broadcast %cst_187 : f32 to vector<32x1xf32>
      %454 = arith.addf %441, %453 : vector<32x1xf32>
      %455 = tpu.reciprocal %454 {approx = true} : vector<32x1xf32> -> vector<32x1xf32>
      %456 = vector.shape_cast %455 : vector<32x1xf32> to vector<32x1xf32>
      %457 = vector.broadcast %456 : vector<32x1xf32> to vector<32x16xf32>
      %458 = arith.select %452, %457, %436 : vector<32x16xi1>, vector<32x16xf32>
      %459 = arith.addf %437, %455 : vector<32x1xf32>
      %460 = arith.truncf %458 : vector<32x16xf32> to vector<32x16xbf16>
      %461 = arith.truncf %366 : vector<16x128xf32> to vector<16x128xbf16>
      %cst_188 = arith.constant dense<0.000000e+00> : vector<32x128xf32>
      %462 = tpu.matmul %460, %461, %cst_188 {dimension_numbers = #tpu.dot_dimension_numbers<[1], [0], [0], [1], [0, 0, 1, 1], [], []>} : vector<32x16xbf16>, vector<16x128xbf16>, vector<32x128xf32> -> vector<32x128xf32>
      %463 = tpu.reciprocal %459 {approx = true} : vector<32x1xf32> -> vector<32x1xf32>
      %464 = vector.broadcast %463 : vector<32x1xf32> to vector<32x128xf32>
      %465 = arith.mulf %462, %464 : vector<32x128xf32>
      %466 = arith.truncf %465 : vector<32x128xf32> to vector<32x128xbf16>
      %cst_189 = arith.constant dense<0.000000e+00> : vector<32x128xf32>
      %467 = tpu.matmul %466, %374, %cst_189 {dimension_numbers = #tpu.dot_dimension_numbers<[1], [0], [0], [1], [0, 0, 1, 1], [], []>} : vector<32x128xbf16>, vector<128x128xbf16>, vector<32x128xf32> -> vector<32x128xf32>
      %cst_190 = arith.constant dense<0.000000e+00> : vector<32x128xf32>
      %468 = tpu.matmul %372, %373, %cst_190 {dimension_numbers = #tpu.dot_dimension_numbers<[1], [0], [0], [1], [0, 0, 1, 1], [], []>} : vector<32x64xbf16>, vector<64x128xbf16>, vector<32x128xf32> -> vector<32x128xf32>
      %469 = arith.addf %467, %468 : vector<32x128xf32>
      %470 = vector.broadcast %375 : vector<1x128xf32> to vector<32x128xf32>
      %471 = arith.addf %469, %470 : vector<32x128xf32>
      %cst_191 = arith.constant 0.000000e+00 : f32
      %472 = vector.broadcast %cst_191 : f32 to vector<32x128xf32>
      %473 = arith.maximumf %471, %472 : vector<32x128xf32>
      %474 = arith.truncf %473 : vector<32x128xf32> to vector<32x128xbf16>
      %cst_192 = arith.constant dense<0.000000e+00> : vector<32x128xf32>
      %475 = tpu.matmul %474, %376, %cst_192 {dimension_numbers = #tpu.dot_dimension_numbers<[1], [0], [0], [1], [0, 0, 1, 1], [], []>} : vector<32x128xbf16>, vector<128x128xbf16>, vector<32x128xf32> -> vector<32x128xf32>
      %476 = vector.broadcast %377 : vector<1x128xf32> to vector<32x128xf32>
      %477 = arith.addf %475, %476 : vector<32x128xf32>
      %cst_193 = arith.constant 0.000000e+00 : f32
      %478 = vector.broadcast %cst_193 : f32 to vector<32x128xf32>
      %479 = arith.maximumf %477, %478 : vector<32x128xf32>
      %480 = arith.truncf %479 : vector<32x128xf32> to vector<32x128xbf16>
      %c0_194 = arith.constant 0 : index
      %c0_195 = arith.constant 0 : index
      %481 = vector.load %arg38[%c0_194, %c0_195] : memref<32x128xbf16, #tpu.memory_space<vmem>>, vector<32x128xbf16>
      tpu.vector_store %arg38[%c0_194, %c0_195], %480 {strides = array<i32>} : memref<32x128xbf16, #tpu.memory_space<vmem>>, vector<32x128xbf16>,
    } else {
    }
    %c0 = arith.constant 0 : index
    %c0_1 = arith.constant 0 : index
    %c0_2 = arith.constant 0 : index
    %3 = vector.load %arg2[%c0, %c0_1, %c0_2] : memref<1x64x3xf32, #tpu.memory_space<vmem>>, vector<1x64x3xf32>
    %4 = vector.shape_cast %3 : vector<1x64x3xf32> to vector<64x3xf32>
    %c0_3 = arith.constant 0 : index
    %c0_4 = arith.constant 0 : index
    %c0_5 = arith.constant 0 : index
    %5 = vector.load %arg6[%c0_3, %c0_4, %c0_5] : memref<1x3x32xf32, #tpu.memory_space<vmem>>, vector<1x3x32xf32>
    %6 = vector.shape_cast %5 : vector<1x3x32xf32> to vector<3x32xf32>
    %c0_6 = arith.constant 0 : index
    %c0_7 = arith.constant 0 : index
    %7 = vector.load %arg38[%c0_6, %c0_7] : memref<32x128xbf16, #tpu.memory_space<vmem>>, vector<32x128xbf16>
    %c0_8 = arith.constant 0 : index
    %c0_9 = arith.constant 0 : index
    %8 = vector.load %arg29[%c0_8, %c0_9] : memref<128x128xbf16, #tpu.memory_space<vmem>>, vector<128x128xbf16>
    %c0_10 = arith.constant 0 : index
    %c0_11 = arith.constant 0 : index
    %9 = vector.load %arg30[%c0_10, %c0_11] : memref<1x128xf32, #tpu.memory_space<vmem>>, vector<1x128xf32>
    %c0_12 = arith.constant 0 : index
    %c0_13 = arith.constant 0 : index
    %10 = vector.load %arg31[%c0_12, %c0_13] : memref<128x64xbf16, #tpu.memory_space<vmem>>, vector<128x64xbf16>
    %c0_14 = arith.constant 0 : index
    %c0_15 = arith.constant 0 : index
    %11 = vector.load %arg32[%c0_14, %c0_15] : memref<1x64xf32, #tpu.memory_space<vmem>>, vector<1x64xf32>
    %cst = arith.constant dense<0.000000e+00> : vector<64x32xf32>
    %12 = tpu.matmul %4, %6, %cst {dimension_numbers = #tpu.dot_dimension_numbers<[1], [0], [0], [1], [0, 0, 1, 1], [], []>} : vector<64x3xf32>, vector<3x32xf32>, vector<64x32xf32> -> vector<64x32xf32>
    %13 = arith.mulf %4, %4 : vector<64x3xf32>
    %cst_16 = arith.constant dense<0.000000e+00> : vector<64xf32>
    %14 = vector.multi_reduction <add>, %13, %cst_16 [1] : vector<64x3xf32> to vector<64xf32>
    %15 = vector.shape_cast %14 : vector<64xf32> to vector<64x1xf32>
    %16 = arith.mulf %6, %6 : vector<3x32xf32>
    %cst_17 = arith.constant dense<0.000000e+00> : vector<32xf32>
    %17 = vector.multi_reduction <add>, %16, %cst_17 [0] : vector<3x32xf32> to vector<32xf32>
    %18 = vector.shape_cast %17 : vector<32xf32> to vector<1x32xf32>
    %cst_18 = arith.constant 2.000000e+00 : f32
    %19 = vector.broadcast %cst_18 : f32 to vector<64x32xf32>
    %20 = arith.mulf %19, %12 : vector<64x32xf32>
    %21 = vector.broadcast %15 : vector<64x1xf32> to vector<64x32xf32>
    %22 = arith.subf %21, %20 : vector<64x32xf32>
    %23 = vector.broadcast %18 : vector<1x32xf32> to vector<64x32xf32>
    %24 = arith.addf %22, %23 : vector<64x32xf32>
    %cst_19 = arith.constant 0.000000e+00 : f32
    %25 = vector.broadcast %cst_19 : f32 to vector<64x32xf32>
    %26 = arith.maximumf %24, %25 : vector<64x32xf32>
    %27 = tpu.iota {dimensions = array<i32: 1>} : vector<1x32xi32>
    %cst_20 = arith.constant 0.000000e+00 : f32
    %28 = vector.broadcast %cst_20 : f32 to vector<64x32xf32>
    %cst_21 = arith.constant 0.000000e+00 : f32
    %29 = vector.broadcast %cst_21 : f32 to vector<64x1xf32>
    %cst_22 = arith.constant dense<0x7F800000> : vector<64xf32>
    %30 = vector.multi_reduction <minimumf>, %26, %cst_22 [1] : vector<64x32xf32> to vector<64xf32>
    %31 = vector.shape_cast %30 : vector<64xf32> to vector<64x1xf32>
    %32 = vector.broadcast %31 : vector<64x1xf32> to vector<64x32xf32>
    %33 = arith.cmpf ole, %26, %32 : vector<64x32xf32>
    %c32_i32 = arith.constant 32 : i32
    %34 = vector.shape_cast %27 : vector<1x32xi32> to vector<1x32xi32>
    %35 = vector.broadcast %34 : vector<1x32xi32> to vector<64x32xi32>
    %36 = vector.broadcast %c32_i32 : i32 to vector<64x32xi32>
    %37 = arith.select %33, %35, %36 : vector<64x32xi1>, vector<64x32xi32>
    %cst_23 = arith.constant dense<2147483647> : vector<64xi32>
    %38 = vector.multi_reduction <minsi>, %37, %cst_23 [1] : vector<64x32xi32> to vector<64xi32>
    %39 = vector.shape_cast %38 : vector<64xi32> to vector<64x1xi32>
    %40 = vector.broadcast %27 : vector<1x32xi32> to vector<64x32xi32>
    %41 = vector.broadcast %39 : vector<64x1xi32> to vector<64x32xi32>
    %42 = arith.cmpi eq, %40, %41 : vector<64x32xi32>
    %cst_24 = arith.constant 9.99999993E-9 : f32
    %43 = vector.broadcast %cst_24 : f32 to vector<64x1xf32>
    %44 = arith.addf %31, %43 : vector<64x1xf32>
    %45 = tpu.reciprocal %44 {approx = true} : vector<64x1xf32> -> vector<64x1xf32>
    %46 = vector.shape_cast %45 : vector<64x1xf32> to vector<64x1xf32>
    %47 = vector.broadcast %46 : vector<64x1xf32> to vector<64x32xf32>
    %48 = arith.select %42, %47, %28 : vector<64x32xi1>, vector<64x32xf32>
    %49 = arith.addf %29, %45 : vector<64x1xf32>
    %cst_25 = arith.constant 0x7F800000 : f32
    %50 = vector.broadcast %cst_25 : f32 to vector<64x32xf32>
    %51 = arith.select %42, %50, %26 : vector<64x32xi1>, vector<64x32xf32>
    %cst_26 = arith.constant dense<0x7F800000> : vector<64xf32>
    %52 = vector.multi_reduction <minimumf>, %51, %cst_26 [1] : vector<64x32xf32> to vector<64xf32>
    %53 = vector.shape_cast %52 : vector<64xf32> to vector<64x1xf32>
    %54 = vector.broadcast %53 : vector<64x1xf32> to vector<64x32xf32>
    %55 = arith.cmpf ole, %51, %54 : vector<64x32xf32>
    %c32_i32_27 = arith.constant 32 : i32
    %56 = vector.shape_cast %27 : vector<1x32xi32> to vector<1x32xi32>
    %57 = vector.broadcast %56 : vector<1x32xi32> to vector<64x32xi32>
    %58 = vector.broadcast %c32_i32_27 : i32 to vector<64x32xi32>
    %59 = arith.select %55, %57, %58 : vector<64x32xi1>, vector<64x32xi32>
    %cst_28 = arith.constant dense<2147483647> : vector<64xi32>
    %60 = vector.multi_reduction <minsi>, %59, %cst_28 [1] : vector<64x32xi32> to vector<64xi32>
    %61 = vector.shape_cast %60 : vector<64xi32> to vector<64x1xi32>
    %62 = vector.broadcast %27 : vector<1x32xi32> to vector<64x32xi32>
    %63 = vector.broadcast %61 : vector<64x1xi32> to vector<64x32xi32>
    %64 = arith.cmpi eq, %62, %63 : vector<64x32xi32>
    %cst_29 = arith.constant 9.99999993E-9 : f32
    %65 = vector.broadcast %cst_29 : f32 to vector<64x1xf32>
    %66 = arith.addf %53, %65 : vector<64x1xf32>
    %67 = tpu.reciprocal %66 {approx = true} : vector<64x1xf32> -> vector<64x1xf32>
    %68 = vector.shape_cast %67 : vector<64x1xf32> to vector<64x1xf32>
    %69 = vector.broadcast %68 : vector<64x1xf32> to vector<64x32xf32>
    %70 = arith.select %64, %69, %48 : vector<64x32xi1>, vector<64x32xf32>
    %71 = arith.addf %49, %67 : vector<64x1xf32>
    %cst_30 = arith.constant 0x7F800000 : f32
    %72 = vector.broadcast %cst_30 : f32 to vector<64x32xf32>
    %73 = arith.select %64, %72, %51 : vector<64x32xi1>, vector<64x32xf32>
    %cst_31 = arith.constant dense<0x7F800000> : vector<64xf32>
    %74 = vector.multi_reduction <minimumf>, %73, %cst_31 [1] : vector<64x32xf32> to vector<64xf32>
    %75 = vector.shape_cast %74 : vector<64xf32> to vector<64x1xf32>
    %76 = vector.broadcast %75 : vector<64x1xf32> to vector<64x32xf32>
    %77 = arith.cmpf ole, %73, %76 : vector<64x32xf32>
    %c32_i32_32 = arith.constant 32 : i32
    %78 = vector.shape_cast %27 : vector<1x32xi32> to vector<1x32xi32>
    %79 = vector.broadcast %78 : vector<1x32xi32> to vector<64x32xi32>
    %80 = vector.broadcast %c32_i32_32 : i32 to vector<64x32xi32>
    %81 = arith.select %77, %79, %80 : vector<64x32xi1>, vector<64x32xi32>
    %cst_33 = arith.constant dense<2147483647> : vector<64xi32>
    %82 = vector.multi_reduction <minsi>, %81, %cst_33 [1] : vector<64x32xi32> to vector<64xi32>
    %83 = vector.shape_cast %82 : vector<64xi32> to vector<64x1xi32>
    %84 = vector.broadcast %27 : vector<1x32xi32> to vector<64x32xi32>
    %85 = vector.broadcast %83 : vector<64x1xi32> to vector<64x32xi32>
    %86 = arith.cmpi eq, %84, %85 : vector<64x32xi32>
    %cst_34 = arith.constant 9.99999993E-9 : f32
    %87 = vector.broadcast %cst_34 : f32 to vector<64x1xf32>
    %88 = arith.addf %75, %87 : vector<64x1xf32>
    %89 = tpu.reciprocal %88 {approx = true} : vector<64x1xf32> -> vector<64x1xf32>
    %90 = vector.shape_cast %89 : vector<64x1xf32> to vector<64x1xf32>
    %91 = vector.broadcast %90 : vector<64x1xf32> to vector<64x32xf32>
    %92 = arith.select %86, %91, %70 : vector<64x32xi1>, vector<64x32xf32>
    %93 = arith.addf %71, %89 : vector<64x1xf32>
    %94 = arith.truncf %92 : vector<64x32xf32> to vector<64x32xbf16>
    %cst_35 = arith.constant dense<0.000000e+00> : vector<64x128xf32>
    %95 = tpu.matmul %94, %7, %cst_35 {dimension_numbers = #tpu.dot_dimension_numbers<[1], [0], [0], [1], [0, 0, 1, 1], [], []>} : vector<64x32xbf16>, vector<32x128xbf16>, vector<64x128xf32> -> vector<64x128xf32>
    %96 = tpu.reciprocal %93 {approx = true} : vector<64x1xf32> -> vector<64x1xf32>
    %97 = vector.broadcast %96 : vector<64x1xf32> to vector<64x128xf32>
    %98 = arith.mulf %95, %97 : vector<64x128xf32>
    %99 = arith.truncf %98 : vector<64x128xf32> to vector<64x128xbf16>
    %cst_36 = arith.constant dense<0.000000e+00> : vector<64x128xf32>
    %100 = tpu.matmul %99, %8, %cst_36 {dimension_numbers = #tpu.dot_dimension_numbers<[1], [0], [0], [1], [0, 0, 1, 1], [], []>} : vector<64x128xbf16>, vector<128x128xbf16>, vector<64x128xf32> -> vector<64x128xf32>
    %101 = vector.broadcast %9 : vector<1x128xf32> to vector<64x128xf32>
    %102 = arith.addf %100, %101 : vector<64x128xf32>
    %cst_37 = arith.constant 0.000000e+00 : f32
    %103 = vector.broadcast %cst_37 : f32 to vector<64x128xf32>
    %104 = arith.maximumf %102, %103 : vector<64x128xf32>
    %105 = arith.truncf %104 : vector<64x128xf32> to vector<64x128xbf16>
    %cst_38 = arith.constant dense<0.000000e+00> : vector<64x64xf32>
    %106 = tpu.matmul %105, %10, %cst_38 {dimension_numbers = #tpu.dot_dimension_numbers<[1], [0], [0], [1], [0, 0, 1, 1], [], []>} : vector<64x128xbf16>, vector<128x64xbf16>, vector<64x64xf32> -> vector<64x64xf32>
    %107 = vector.broadcast %11 : vector<1x64xf32> to vector<64x64xf32>
    %108 = arith.addf %106, %107 : vector<64x64xf32>
    %cst_39 = arith.constant 0.000000e+00 : f32
    %109 = vector.broadcast %cst_39 : f32 to vector<64x64xf32>
    %110 = arith.maximumf %108, %109 : vector<64x64xf32>
    %111 = arith.truncf %110 : vector<64x64xf32> to vector<64x64xbf16>
    %c0_40 = arith.constant 0 : index
    %c0_41 = arith.constant 0 : index
    %112 = vector.load %arg33[%c0_40, %c0_41] : memref<64x32xbf16, #tpu.memory_space<vmem>>, vector<64x32xbf16>
    %cst_42 = arith.constant dense<0.000000e+00> : vector<64x32xf32>
    %113 = tpu.matmul %111, %112, %cst_42 {dimension_numbers = #tpu.dot_dimension_numbers<[1], [0], [0], [1], [0, 0, 1, 1], [], []>} : vector<64x64xbf16>, vector<64x32xbf16>, vector<64x32xf32> -> vector<64x32xf32>
    %c0_43 = arith.constant 0 : index
    %c0_44 = arith.constant 0 : index
    %114 = vector.load %arg34[%c0_43, %c0_44] : memref<1x32xf32, #tpu.memory_space<vmem>>, vector<1x32xf32>
    %115 = vector.broadcast %114 : vector<1x32xf32> to vector<64x32xf32>
    %116 = arith.addf %113, %115 : vector<64x32xf32>
    %cst_45 = arith.constant 0.000000e+00 : f32
    %117 = vector.broadcast %cst_45 : f32 to vector<64x32xf32>
    %118 = arith.maximumf %116, %117 : vector<64x32xf32>
    %119 = arith.truncf %118 : vector<64x32xf32> to vector<64x32xbf16>
    %c0_46 = arith.constant 0 : index
    %c0_47 = arith.constant 0 : index
    %120 = vector.load %arg35[%c0_46, %c0_47] : memref<32x128xbf16, #tpu.memory_space<vmem>>, vector<32x128xbf16>
    %cst_48 = arith.constant dense<0.000000e+00> : vector<64x128xf32>
    %121 = tpu.matmul %119, %120, %cst_48 {dimension_numbers = #tpu.dot_dimension_numbers<[1], [0], [0], [1], [0, 0, 1, 1], [], []>} : vector<64x32xbf16>, vector<32x128xbf16>, vector<64x128xf32> -> vector<64x128xf32>
    %c0_49 = arith.constant 0 : index
    %c0_50 = arith.constant 0 : index
    %122 = vector.load %arg36[%c0_49, %c0_50] : memref<1x128xf32, #tpu.memory_space<vmem>>, vector<1x128xf32>
    %123 = vector.broadcast %122 : vector<1x128xf32> to vector<64x128xf32>
    %124 = arith.addf %121, %123 : vector<64x128xf32>
    %cst_51 = arith.constant dense<0xFF800000> : vector<64xf32>
    %125 = vector.multi_reduction <maximumf>, %124, %cst_51 [1] : vector<64x128xf32> to vector<64xf32>
    %126 = vector.shape_cast %125 : vector<64xf32> to vector<64x1xf32>
    %127 = vector.broadcast %126 : vector<64x1xf32> to vector<64x128xf32>
    %128 = arith.subf %124, %127 : vector<64x128xf32>
    %129 = math.exp %128 : vector<64x128xf32>
    %cst_52 = arith.constant dense<0.000000e+00> : vector<64xf32>
    %130 = vector.multi_reduction <add>, %129, %cst_52 [1] : vector<64x128xf32> to vector<64xf32>
    %131 = vector.shape_cast %130 : vector<64xf32> to vector<64x1xf32>
    %132 = math.log %131 : vector<64x1xf32>
    %133 = arith.addf %126, %132 : vector<64x1xf32>
    %134 = vector.broadcast %133 : vector<64x1xf32> to vector<64x128xf32>
    %135 = arith.subf %124, %134 : vector<64x128xf32>
    %136 = arith.truncf %135 : vector<64x128xf32> to vector<64x128xbf16>
    %c0_53 = arith.constant 0 : index
    %c0_54 = arith.constant 0 : index
    %c0_55 = arith.constant 0 : index
    %137 = vector.load %arg37[%c0_53, %c0_54, %c0_55] : memref<1x64x128xbf16, #tpu.memory_space<vmem>>, vector<1x64x128xbf16>
    %138 = vector.shape_cast %137 : vector<1x64x128xbf16> to vector<64x128xbf16>
    %139 = vector.shape_cast %136 : vector<64x128xbf16> to vector<1x64x128xbf16>
    tpu.vector_store %arg37[%c0_53, %c0_54, %c0_55], %139 {strides = array<i32>} : memref<1x64x128xbf16, #tpu.memory_space<vmem>>, vector<1x64x128xbf16>,
    return
  }
  func.func @transform_0(%arg0: i32, %arg1: i32) -> (i32, i32, i32) {
    %c0_i32 = arith.constant 0 : i32
    %c0_i32_0 = arith.constant 0 : i32
    return %arg0, %arg1, %c0_i32 : i32, i32, i32
  }
  func.func @transform_1(%arg0: i32, %arg1: i32) -> (i32, i32, i32) {
    %c0_i32 = arith.constant 0 : i32
    %c0_i32_0 = arith.constant 0 : i32
    %c0_i32_1 = arith.constant 0 : i32
    return %arg0, %c0_i32, %c0_i32_0 : i32, i32, i32
  }
  func.func @transform_2(%arg0: i32, %arg1: i32) -> (i32, i32, i32) {
    %c0_i32 = arith.constant 0 : i32
    %c0_i32_0 = arith.constant 0 : i32
    %c0_i32_1 = arith.constant 0 : i32
    return %arg0, %c0_i32, %c0_i32_0 : i32, i32, i32
  }
  func.func @transform_3(%arg0: i32, %arg1: i32) -> (i32, i32, i32) {
    %c0_i32 = arith.constant 0 : i32
    %c0_i32_0 = arith.constant 0 : i32
    %c0_i32_1 = arith.constant 0 : i32
    return %arg0, %c0_i32, %c0_i32_0 : i32, i32, i32
  }
  func.func @transform_4(%arg0: i32, %arg1: i32) -> (i32, i32, i32) {
    %c0_i32 = arith.constant 0 : i32
    %c0_i32_0 = arith.constant 0 : i32
    %c0_i32_1 = arith.constant 0 : i32
    return %arg0, %c0_i32, %c0_i32_0 : i32, i32, i32
  }
  func.func @transform_5(%arg0: i32, %arg1: i32) -> (i32, i32, i32) {
    %c0_i32 = arith.constant 0 : i32
    %c0_i32_0 = arith.constant 0 : i32
    %c0_i32_1 = arith.constant 0 : i32
    return %arg0, %c0_i32, %c0_i32_0 : i32, i32, i32
  }
  func.func @transform_6(%arg0: i32, %arg1: i32) -> (i32, i32, i32) {
    %c0_i32 = arith.constant 0 : i32
    %c0_i32_0 = arith.constant 0 : i32
    %c0_i32_1 = arith.constant 0 : i32
    return %arg0, %c0_i32, %c0_i32_0 : i32, i32, i32
  }
  func.func @transform_7(%arg0: i32, %arg1: i32) -> (i32, i32, i32) {
    %c0_i32 = arith.constant 0 : i32
    %c0_i32_0 = arith.constant 0 : i32
    %c0_i32_1 = arith.constant 0 : i32
    return %arg0, %c0_i32, %c0_i32_0 : i32, i32, i32
  }
  func.func @transform_8(%arg0: i32, %arg1: i32) -> (i32, i32, i32) {
    %c0_i32 = arith.constant 0 : i32
    %c0_i32_0 = arith.constant 0 : i32
    %c0_i32_1 = arith.constant 0 : i32
    return %arg0, %c0_i32, %c0_i32_0 : i32, i32, i32
  }
  func.func @transform_9(%arg0: i32, %arg1: i32) -> (i32, i32, i32) {
    %c0_i32 = arith.constant 0 : i32
    %c0_i32_0 = arith.constant 0 : i32
    %c0_i32_1 = arith.constant 0 : i32
    return %arg0, %c0_i32, %c0_i32_0 : i32, i32, i32
  }
  func.func @transform_10(%arg0: i32, %arg1: i32) -> (i32, i32, i32) {
    %c0_i32 = arith.constant 0 : i32
    %c0_i32_0 = arith.constant 0 : i32
    %c0_i32_1 = arith.constant 0 : i32
    return %arg0, %c0_i32, %c0_i32_0 : i32, i32, i32
  }
  func.func @transform_11(%arg0: i32, %arg1: i32) -> (i32, i32, i32) {
    %c0_i32 = arith.constant 0 : i32
    %c0_i32_0 = arith.constant 0 : i32
    %c0_i32_1 = arith.constant 0 : i32
    return %arg0, %c0_i32, %c0_i32_0 : i32, i32, i32
  }
  func.func @transform_12(%arg0: i32, %arg1: i32) -> (i32, i32) {
    %c0_i32 = arith.constant 0 : i32
    %c0_i32_0 = arith.constant 0 : i32
    %c0_i32_1 = arith.constant 0 : i32
    return %c0_i32, %c0_i32_0 : i32, i32
  }
  func.func @transform_13(%arg0: i32, %arg1: i32) -> (i32, i32) {
    %c0_i32 = arith.constant 0 : i32
    %c0_i32_0 = arith.constant 0 : i32
    %c0_i32_1 = arith.constant 0 : i32
    return %c0_i32, %c0_i32_0 : i32, i32
  }
  func.func @transform_14(%arg0: i32, %arg1: i32) -> (i32, i32) {
    %c0_i32 = arith.constant 0 : i32
    %c0_i32_0 = arith.constant 0 : i32
    %c0_i32_1 = arith.constant 0 : i32
    return %c0_i32, %c0_i32_0 : i32, i32
  }
  func.func @transform_15(%arg0: i32, %arg1: i32) -> (i32, i32) {
    %c0_i32 = arith.constant 0 : i32
    %c0_i32_0 = arith.constant 0 : i32
    %c0_i32_1 = arith.constant 0 : i32
    return %c0_i32, %c0_i32_0 : i32, i32
  }
  func.func @transform_16(%arg0: i32, %arg1: i32) -> (i32, i32) {
    %c0_i32 = arith.constant 0 : i32
    %c0_i32_0 = arith.constant 0 : i32
    %c0_i32_1 = arith.constant 0 : i32
    return %c0_i32, %c0_i32_0 : i32, i32
  }
  func.func @transform_17(%arg0: i32, %arg1: i32) -> (i32, i32) {
    %c0_i32 = arith.constant 0 : i32
    %c0_i32_0 = arith.constant 0 : i32
    %c0_i32_1 = arith.constant 0 : i32
    return %c0_i32, %c0_i32_0 : i32, i32
  }
  func.func @transform_18(%arg0: i32, %arg1: i32) -> (i32, i32) {
    %c0_i32 = arith.constant 0 : i32
    %c0_i32_0 = arith.constant 0 : i32
    %c0_i32_1 = arith.constant 0 : i32
    return %c0_i32, %c0_i32_0 : i32, i32
  }
  func.func @transform_19(%arg0: i32, %arg1: i32) -> (i32, i32) {
    %c0_i32 = arith.constant 0 : i32
    %c0_i32_0 = arith.constant 0 : i32
    %c0_i32_1 = arith.constant 0 : i32
    return %c0_i32, %c0_i32_0 : i32, i32
  }
  func.func @transform_20(%arg0: i32, %arg1: i32) -> (i32, i32) {
    %c0_i32 = arith.constant 0 : i32
    %c0_i32_0 = arith.constant 0 : i32
    %c0_i32_1 = arith.constant 0 : i32
    return %c0_i32, %c0_i32_0 : i32, i32
  }
  func.func @transform_21(%arg0: i32, %arg1: i32) -> (i32, i32) {
    %c0_i32 = arith.constant 0 : i32
    %c0_i32_0 = arith.constant 0 : i32
    %c0_i32_1 = arith.constant 0 : i32
    return %c0_i32, %c0_i32_0 : i32, i32
  }
  func.func @transform_22(%arg0: i32, %arg1: i32) -> (i32, i32) {
    %c0_i32 = arith.constant 0 : i32
    %c0_i32_0 = arith.constant 0 : i32
    %c0_i32_1 = arith.constant 0 : i32
    return %c0_i32, %c0_i32_0 : i32, i32
  }
  func.func @transform_23(%arg0: i32, %arg1: i32) -> (i32, i32) {
    %c0_i32 = arith.constant 0 : i32
    %c0_i32_0 = arith.constant 0 : i32
    %c0_i32_1 = arith.constant 0 : i32
    return %c0_i32, %c0_i32_0 : i32, i32
  }
  func.func @transform_24(%arg0: i32, %arg1: i32) -> (i32, i32) {
    %c0_i32 = arith.constant 0 : i32
    %c0_i32_0 = arith.constant 0 : i32
    %c0_i32_1 = arith.constant 0 : i32
    return %c0_i32, %c0_i32_0 : i32, i32
  }
  func.func @transform_25(%arg0: i32, %arg1: i32) -> (i32, i32) {
    %c0_i32 = arith.constant 0 : i32
    %c0_i32_0 = arith.constant 0 : i32
    %c0_i32_1 = arith.constant 0 : i32
    return %c0_i32, %c0_i32_0 : i32, i32
  }
  func.func @transform_26(%arg0: i32, %arg1: i32) -> (i32, i32) {
    %c0_i32 = arith.constant 0 : i32
    %c0_i32_0 = arith.constant 0 : i32
    %c0_i32_1 = arith.constant 0 : i32
    return %c0_i32, %c0_i32_0 : i32, i32
  }
  func.func @transform_27(%arg0: i32, %arg1: i32) -> (i32, i32) {
    %c0_i32 = arith.constant 0 : i32
    %c0_i32_0 = arith.constant 0 : i32
    %c0_i32_1 = arith.constant 0 : i32
    return %c0_i32, %c0_i32_0 : i32, i32
  }
  func.func @transform_28(%arg0: i32, %arg1: i32) -> (i32, i32) {
    %c0_i32 = arith.constant 0 : i32
    %c0_i32_0 = arith.constant 0 : i32
    %c0_i32_1 = arith.constant 0 : i32
    return %c0_i32, %c0_i32_0 : i32, i32
  }
  func.func @transform_29(%arg0: i32, %arg1: i32) -> (i32, i32) {
    %c0_i32 = arith.constant 0 : i32
    %c0_i32_0 = arith.constant 0 : i32
    %c0_i32_1 = arith.constant 0 : i32
    return %c0_i32, %c0_i32_0 : i32, i32
  }
  func.func @transform_30(%arg0: i32, %arg1: i32) -> (i32, i32) {
    %c0_i32 = arith.constant 0 : i32
    %c0_i32_0 = arith.constant 0 : i32
    %c0_i32_1 = arith.constant 0 : i32
    return %c0_i32, %c0_i32_0 : i32, i32
  }
  func.func @transform_31(%arg0: i32, %arg1: i32) -> (i32, i32) {
    %c0_i32 = arith.constant 0 : i32
    %c0_i32_0 = arith.constant 0 : i32
    %c0_i32_1 = arith.constant 0 : i32
    return %c0_i32, %c0_i32_0 : i32, i32
  }
  func.func @transform_32(%arg0: i32, %arg1: i32) -> (i32, i32) {
    %c0_i32 = arith.constant 0 : i32
    %c0_i32_0 = arith.constant 0 : i32
    %c0_i32_1 = arith.constant 0 : i32
    return %c0_i32, %c0_i32_0 : i32, i32
  }
  func.func @transform_33(%arg0: i32, %arg1: i32) -> (i32, i32) {
    %c0_i32 = arith.constant 0 : i32
    %c0_i32_0 = arith.constant 0 : i32
    %c0_i32_1 = arith.constant 0 : i32
    return %c0_i32, %c0_i32_0 : i32, i32
  }
  func.func @transform_34(%arg0: i32, %arg1: i32) -> (i32, i32) {
    %c0_i32 = arith.constant 0 : i32
    %c0_i32_0 = arith.constant 0 : i32
    %c0_i32_1 = arith.constant 0 : i32
    return %c0_i32, %c0_i32_0 : i32, i32
  }
  func.func @transform_35(%arg0: i32, %arg1: i32) -> (i32, i32, i32) {
    %c0_i32 = arith.constant 0 : i32
    %c0_i32_0 = arith.constant 0 : i32
    return %arg0, %arg1, %c0_i32 : i32, i32, i32
  }
}

</mosaic_0001>

<bundles_post_ra>
// kernel: decoder_forward.1
= control target key start
LH: loop header
LB: loop body
LE: loop exit
PB: predicated region body
PF: predicated region fallthrough
CT: control target
= control target key end

     0   :  { %s6446_s6 = smov 1   ;;  %s6447_s10 = smov 2   ;;  %s8194_s0 = inlined_call_operand.smem [shape: u32[36], index: -1, kind: input, shape index: {}] }
   0x1   :  { %s6489_s5 = sld [smem:[%s8194_s0]]   ;;  %s6448_s14 = smov 3  }
   0x2   :  { %s6494_s9 = sld [smem:[%s8194_s0 + %s6446_s6]]   ;;  %s6449_s18 = smov 4  }
   0x3   :  { %s6499_s13 = sld [smem:[%s8194_s0 + %s6447_s10]]   ;;  %s6450_s22 = smov 5  }
   0x4   :  { %s6504_s17 = sld [smem:[%s8194_s0 + %s6448_s14]]   ;;  %s6451_s26 = smov 6  }
   0x5   :  { %s6509_s21 = sld [smem:[%s8194_s0 + %s6449_s18]]   ;;  %s6452_s30 = smov 7  }
   0x6   :  { %s6514_s25 = sld [smem:[%s8194_s0 + %s6450_s22]]   ;;  %s6453_s4 = smov 8  }
   0x7   :  { %8202 = sst [smem:[#allocation3_spill]] %s6489_s5  ;;  %s6454_s10 = smov 9  }
   0x8   :  { %8203 = sst [smem:[#allocation4_spill]] %s6494_s9  ;;  %s6455_s15 = smov 10  }
   0x9   :  { %s6519_s29 = sld [smem:[%s8194_s0 + %s6451_s26]]   ;;  %s6456_s20 = smov 11  }
   0xa   :  { %s6524_s3 = sld [smem:[%s8194_s0 + %s6452_s30]]   ;;  %s6457_s26 = smov 12  }
   0xb   :  { %8204 = sst [smem:[#allocation5_spill]] %s6509_s21  ;;  %s6458_s1 = smov 13  }
   0xc   :  { %8205 = sst [smem:[#allocation6_spill]] %s6514_s25  ;;  %s6459_s7 = smov 14  }
   0xd   :  { %s6529_s8 = sld [smem:[%s8194_s0 + %s6453_s4]]   ;;  %s6461_s22 = smov 16  }
   0xe   :  { %s6534_s14 = sld [smem:[%s8194_s0 + %s6454_s10]]   ;;  %s6462_s28 = smov 17  }
   0xf   :  { %s6539_s19 = sld [smem:[%s8194_s0 + %s6455_s15]]   ;;  %s6460_s15 = smov 15  }
  0x10   :  { %s6544_s24 = sld [smem:[%s8194_s0 + %s6456_s20]]   ;;  %s6668_s23 = smov 0  }
  0x11   :  { %s6549_s30 = sld [smem:[%s8194_s0 + %s6457_s26]]   ;;  %s6670_s26 = smov 0  }
  0x12   :  { %s6554_s6 = sld [smem:[%s8194_s0 + %s6458_s1]]  }
  0x13   :  { %8206 = sst [smem:[#allocation7_spill]] %s6529_s8 }
  0x14   :  { %s6559_s12 = sld [smem:[%s8194_s0 + %s6459_s7]]   ;;  %s6463_s7 = smov 18  }
  0x15   :  { %s6564_s20 = sld [smem:[%s8194_s0 + %s6460_s15]]   ;;  %s6464_s15 = smov 19  }
  0x16   :  { %s6569_s27 = sld [smem:[%s8194_s0 + %s6461_s22]]   ;;  %s6465_s22 = smov 20  }
  0x17   :  { %s6574_s4 = sld [smem:[%s8194_s0 + %s6462_s28]]   ;;  %s6466_s28 = smov 21  }
  0x18   :  { %s6579_s8 = sld [smem:[%s8194_s0 + %s6463_s7]]   ;;  %s6467_s7 = smov 22  }
  0x19   :  { %s6584_s5 = sld [smem:[%s8194_s0 + %s6464_s15]]   ;;  %s6468_s15 = smov 23  }
  0x1a   :  { %s6589_s21 = sld [smem:[%s8194_s0 + %s6465_s22]]   ;;  %s6469_s22 = smov 24  }
  0x1b   :  { %s6594_s9 = sld [smem:[%s8194_s0 + %s6466_s28]]   ;;  %s6470_s28 = smov 25  }
  0x1c   :  { %s6599_s25 = sld [smem:[%s8194_s0 + %s6467_s7]]   ;;  %s6471_s7 = smov 26  }
  0x1f   :  { %8207 = sst [smem:[#allocation8_spill]] %s6584_s5 }
  0x20   :  { %8208 = sst [smem:[#allocation9_spill]] %s6589_s21 }
  0x21   :  { %8209 = sst [smem:[#allocation10_spill]] %s6594_s9 }
  0x22   :  { %8210 = sst [smem:[#allocation11_spill]] %s6599_s25 }
  0x23   :  { %s6604_s5 = sld [smem:[%s8194_s0 + %s6468_s15]]   ;;  %s6472_s15 = smov 27  }
  0x24   :  { %s6609_s21 = sld [smem:[%s8194_s0 + %s6469_s22]]   ;;  %s6473_s22 = smov 28  }
  0x25   :  { %s6614_s9 = sld [smem:[%s8194_s0 + %s6470_s28]]   ;;  %s6474_s28 = smov 29  }
  0x26   :  { %s6619_s25 = sld [smem:[%s8194_s0 + %s6471_s7]]   ;;  %s6475_s7 = smov 30  }
  0x29   :  { %8211 = sst [smem:[#allocation12_spill]] %s6604_s5 }
  0x2a   :  { %8212 = sst [smem:[#allocation13_spill]] %s6609_s21 }
  0x2b   :  { %8213 = sst [smem:[#allocation14_spill]] %s6614_s9 }
  0x2c   :  { %8214 = sst [smem:[#allocation15_spill]] %s6619_s25 }
  0x2d   :  { %s6624_s5 = sld [smem:[%s8194_s0 + %s6472_s15]]   ;;  %s6476_s15 = smov 31  }
  0x2e   :  { %s6629_s21 = sld [smem:[%s8194_s0 + %s6473_s22]]   ;;  %s6477_s22 = smov 32  }
  0x2f   :  { %s6634_s9 = sld [smem:[%s8194_s0 + %s6474_s28]]   ;;  %s6478_s28 = smov 33  }
  0x30   :  { %s6639_s25 = sld [smem:[%s8194_s0 + %s6475_s7]]   ;;  %s6479_s7 = smov 34  }
  0x33   :  { %8215 = sst [smem:[#allocation16_spill]] %s6624_s5 }
  0x34   :  { %8216 = sst [smem:[#allocation17_spill]] %s6629_s21 }
  0x35   :  { %8217 = sst [smem:[#allocation18_spill]] %s6634_s9 }
  0x36   :  { %8218 = sst [smem:[#allocation19_spill]] %s6639_s25 }
  0x37   :  { %s6644_s5 = sld [smem:[%s8194_s0 + %s6476_s15]]   ;;  %s6480_s15 = smov 35  }
  0x38   :  { %s6649_s21 = sld [smem:[%s8194_s0 + %s6477_s22]]   ;;  %s6666_s22 = smov 0  }
  0x39   :  { %s6654_s9 = sld [smem:[%s8194_s0 + %s6478_s28]]  }
  0x3a   :  { %s6659_s25 = sld [smem:[%s8194_s0 + %s6479_s7]]  }
  0x3d   :  { %8219 = sst [smem:[#allocation20_spill]] %s6644_s5 }
  0x3e   :  { %s6664_s5 = sld [smem:[%s8194_s0 + %s6480_s15]]  }
  0x3f LB: > { %s93_s0 = sadd.s32 1, %s6440_s23  ;;  %p5184_p0 = scmp.ge.s32.totalorder %s6444_s26, 1  ;;  %s6444_s26 = sphi %s6670_s26, %s81_s26   ;;  %s6440_s23 = sphi %s6668_s23, %s8239_s23   ;;  %s6436_s22 = sphi %s6666_s22, %s8238_s22  }
  0x40   : > { %p95_p1 = scmp.ge.s32.totalorder %s93_s0, 2  ;;  %p1098_p2 = scmp.lt.s32.totalorder %s6444_s26, 3 }
  0x42   : > { %s8241_s0 = smov (%p95_p1, %s93_s0), 0  ;;  %p1099_p3 = pnand %p5184_p0, %p1098_p2 }
  0x43   : > { %p1244_p4 = scmp.lt.s32.totalorder (!%p1099_p3), %s6436_s22, 1 }
  0x44   : > { %1102 = sbr.rel (%p1099_p3) target bundleno = 6433 (0x1921), region = 160 }
  0x49   : > { %s8243_s22 = smov (!%p1244_p4, %s6436_s22), 1  ;;  %vm1407_vm0 = vcmask 1042432   ;;  %vm1403_vm1 = vcmask 23552   ;;  %vm1436_vm2 = vcmask 26624   ;;  %vm1450_vm3 = vcmask 31744  }
  0x4a   : > { %s6687_s28 = sshll.u32 %s8243_s22, 2  ;;  %s5191_s1 = sshll.u32 %s8243_s22, 3  ;;  %v1448_v20 = vlaneseq  ;;  %vm1536_vm12 = vcmask 1041408   ;;  %vm2240_vm14 = vcmask 59392   ;;  %vm2417_vm15 = vcmask 1043456  }
  0x4b   : > { %s1282_s2 = scalar_lea.vmem %s6524_s3, %s6687_s28  ;;  %s1301_s7 = scalar_lea.vmem %s6544_s24, %s6687_s28 }
  0x4c   : > { %v1318_v0 = vld [vmem:[%s1282_s2] sm:$0x7]  ;;  %s1266_s10 = scalar_lea.vmem %s6504_s17, %s5191_s1  ;;  %v6701_v21 = vand.u32 127, %v1448_v20  ;;  %s1296_s11 = scalar_lea.vmem %s6539_s19, %s6687_s28 }
  0x4d   : > { %v1320_v1 = vld [vmem:[%s1301_s7] sm:$0xf]  ;;  %5205 = vmatpush.msk.msra.mxu0 %vm1407_vm0, %v1318_v0  ;;  %v1435_v5 = vmul.f32 %v1318_v0, %v1318_v0  ;;  %s1278_s15 = scalar_lea.vmem %s6519_s29, %s6687_s28  ;;  %s5982_s16 = sshll.u32 %s8243_s22, 4 }
  0x4e   : > { %1530 = vst [vmem:[#allocation1] ss:$4 sm:$0xff] %v1320_v1  ;;  %v1317_v2 = vld [vmem:[%s1266_s10] sm:$0xff]  ;;  %s1262_s18 = scalar_lea.vmem %s6499_s13, %s5982_s16  ;;  %s1292_s2 = scalar_lea.vmem %s6534_s14, %s5191_s1 }
  0x4f   : > { %5206 = vmatmul.msk.f32.vlgmr.msra.gmra.mxu0 %vm1403_vm1, %v1317_v2  ;;  %v1431_v3 = vmul.f32 %v1317_v2, %v1317_v2  ;;  %v1437_v6 = vsel %vm1436_vm2, %v1435_v5, 0.0  ;;  %vm2256_vm2 = vcmask 64512   ;;  %s8220_s1 = sld [smem:[#allocation6_spill]] }
  0x50   : > { %v1438_v7 = vrot.slane %v1437_v6, 4  ;;  %s8221_s10 = sld [smem:[#allocation4_spill]] }
  0x51   : > { %v1432_v4 = vsel %vm1403_vm1, %v1431_v3, 0.0 }
  0x52   : > { %1433 = vadd.xlane.f32.xlu0 %v1432_v4  ;;  %v1439_v8 = vadd.f32 %v1438_v7, %v1437_v6 }
  0x54   : > { %v1440_v9 = vrot.slane %v1439_v8, 2 }
  0x55   : > { %v1531_v5 = vld.sshfl [vmem:[#allocation1] sm:$0xff pattern:$0x73625140]  ;;  %v1532_v7 = vld.sshfl [vmem:[#allocation1 + $0x8] sm:$0xff pattern:$0x73625140]  ;;  %s1274_s7 = scalar_lea.vmem %s8220_s1, %s6687_s28 }
  0x56   : > { %v1441_v10 = vadd.f32 %v1440_v9, %v1439_v8  ;;  %v1537_v6 = vsel %vm1536_vm12, %v1531_v5, 0  ;;  %v1539_v8 = vsel %vm1536_vm12, %v1532_v7, 0  ;;  %v5267_v9 = vld [vmem:[%s6549_s30 + $0x70] sm:$0xf]  ;;  %v6012_v5 = vld [vmem:[%s6554_s6 + $0x44] sm:$0xf0] }
  0x57   : > { %1548 = vmatpush.bf16.msra.mxu3 %v1537_v6  ;;  %1561 = vmatpush.bf16.msra.mxu2 %v1539_v8  ;;  %v5219_v8 = vld [vmem:[%s6549_s30 + $0x10] sm:$0xf]  ;;  %s8224_s1 = sld [smem:[#allocation10_spill]] }
  0x58   : > { %v1442_v11 = vrot.slane %v1441_v10, 1 }
  0x5a   : > { %v1443_v15 = vadd.f32 %v1442_v11, %v1441_v10  ;;  %v6002_v10 = vld [vmem:[%s6549_s30 + $0x74] sm:$0xf0]  ;;  %v6001_v11 = vld [vmem:[%s6549_s30 + $0x74] sm:$0xf] }
  0xc5   : > { %v1434_v13 = vpop.xlane.xlu0 %1433 }
  0xcc   : > { %v1428_v12 = vpop.f32.mrf.mxu0 }
  0xcd   : > { %v1444_v14 = vmul.f32 2.0, %v1428_v12  ;;  %v5268_v12 = vor.u32 %v6002_v10, %v5267_v9  ;;  %v5990_v9 = vld [vmem:[%s6549_s30 + $0x14] sm:$0xf0] }
  0xcf   : > { %v1445_v16 = vsub.f32 %v1434_v13, %v1444_v14  ;;  %v5269_v13 = vld [vmem:[%s6549_s30 + $0x78] sm:$0xf0]  ;;  %v5259_v14 = vld [vmem:[%s6549_s30 + $0x60] sm:$0xf]  ;;  %1652 = vmatpush.bf16.msrb.mxu3 %v5268_v12  ;;  %v6027_v12 = vld [vmem:[%s6554_s6 + $0xc4] sm:$0xf] }
  0xd1   : > { %v1446_v17 = vadd.f32 %v1445_v16, %v1443_v15  ;;  %v6000_v15 = vld [vmem:[%s6549_s30 + $0x64] sm:$0xf0]  ;;  %v5272_v16 = vor.u32 %v6001_v11, %v5269_v13  ;;  %v5221_v11 = vld [vmem:[%s6549_s30 + $0x18] sm:$0xf0]  ;;  %v5373_v13 = vld [vmem:[%s6554_s6 + $0xc8] sm:$0xf0] }
  0xd3   : > { %v1447_v18 = vmax.f32 %v1446_v17, 0.0  ;;  %v5999_v17 = vld [vmem:[%s6549_s30 + $0x64] sm:$0xf]  ;;  %1665 = vmatpush.bf16.msrb.mxu2 %v5272_v16  ;;  %v5299_v16 = vld [vmem:[%s6554_s6 + $0x30] sm:$0xf] }
  0xd5   : > { %v1451_v19 = vsel %vm1450_vm3, %v1447_v18, inf }
  0xd6   : > { %1452 = vmin.xlane.f32.xlu0 %v1451_v19  ;;  %v5260_v19 = vor.u32 %v6000_v15, %v5259_v14  ;;  %v5220_v15 = vor.u32 %v5990_v9, %v5219_v8  ;;  %v5371_v9 = vld [vmem:[%s6554_s6 + $0xc0] sm:$0xf] }
  0xd8   : > { %1653 = vmatpush.bf16.msrb.mxu3 %v5260_v19 }
 0x149   : > { %v1453_v22 = vpop.xlane.xlu0 %1452 }
 0x14a   : > { %vm1454_vm4 = vcmp.le.f32.partialorder %v1447_v18, %v1453_v22  ;;  %v1472_v47 = vadd.f32 1e-08, %v1453_v22  ;;  %v5251_v22 = vld [vmem:[%s6549_s30 + $0x50] sm:$0xf] }
 0x14b   : > { %v1455_v23 = vsel %vm1454_vm4, %v6701_v21, 4 }
 0x14c   : > { %v1456_v24 = vsel %vm1450_vm3, %v1455_v23, 2147483647  ;;  %6270 = vrcp.f32 %v1472_v47  ;;  %v5998_v23 = vld [vmem:[%s6549_s30 + $0x54] sm:$0xf0] }
 0x14d   : > { %v1458_v25 = vshra.s32 %v1456_v24, 16  ;;  %v1457_v27 = vand.u32 65535, %v1456_v24  ;;  %v5997_v24 = vld [vmem:[%s6549_s30 + $0x54] sm:$0xf] }
 0x14f   : > { %v1460_v26 = vcvt.s32.f32 %v1458_v25  ;;  %v1459_v29 = vcvt.s32.f32 %v1457_v27  ;;  %v5253_v25 = vld [vmem:[%s6549_s30 + $0x58] sm:$0xf0] }
 0x150   : > { %v5256_v27 = vor.u32 %v5997_v24, %v5253_v25  ;;  %v5376_v24 = vor.u32 %v6027_v12, %v5373_v13  ;;  %v5987_v25 = vld [vmem:[%s6549_s30 + $0x4] sm:$0xf]  ;;  %v6009_v12 = vld [vmem:[%s6554_s6 + $0x34] sm:$0xf]  ;;  %v5301_v13 = vld [vmem:[%s6554_s6 + $0x38] sm:$0xf0] }
 0x151   : > { %1461 = vmin.xlane.f32.xlu1 %v1460_v26 }
 0x152   : > { %v6711_v54 = vpop.eup %6270 }
 0x1c4   : > { %v1462_v28 = vpop.xlane.xlu1 %1461 }
 0x1c5   : > { %vm1463_vm5 = vcmp.eq.f32.partialorder %v1460_v26, %v1462_v28  ;;  %v1468_v31 = vcvt.f32.s32 %v1462_v28  ;;  %v5252_v26 = vor.u32 %v5998_v23, %v5251_v22  ;;  %v5243_v28 = vld [vmem:[%s6549_s30 + $0x40] sm:$0xf]  ;;  %v5988_v23 = vld [vmem:[%s6549_s30 + $0x4] sm:$0xf0] }
 0x1c6   : > { %v1464_v30 = vsel %vm1463_vm5, %v1459_v29, inf  ;;  %v5996_v29 = vld [vmem:[%s6549_s30 + $0x44] sm:$0xf0]  ;;  %v5211_v22 = vld [vmem:[%s6549_s30] sm:$0xf] }
 0x1c7   : > { %1465 = vmin.xlane.f32.xlu1 %v1464_v30  ;;  %v1469_v33 = vshll.u32 %v1468_v31, 16  ;;  %v5995_v30 = vld [vmem:[%s6549_s30 + $0x44] sm:$0xf]  ;;  %v5245_v31 = vld [vmem:[%s6549_s30 + $0x48] sm:$0xf0]  ;;  %1654 = vmatpush.bf16.msrb.mxu3 %v5252_v26 }
 0x1c8   : > { %v5213_v26 = vld [vmem:[%s6549_s30 + $0x8] sm:$0xf0] }
 0x23a   : > { %v1466_v32 = vpop.xlane.xlu1 %1465 }
 0x23b   : > { %v1467_v34 = vcvt.f32.s32 %v1466_v32  ;;  %v5331_v32 = vld [vmem:[%s6554_s6 + $0x70] sm:$0xf] }
 0x23d   : > { %v1470_v35 = vadd.s32 %v1469_v33, %v1467_v34  ;;  %v5244_v33 = vor.u32 %v5996_v29, %v5243_v28  ;;  %v5235_v34 = vld [vmem:[%s6549_s30 + $0x30] sm:$0xf]  ;;  %v6017_v29 = vld [vmem:[%s6554_s6 + $0x74] sm:$0xf] }
 0x23e   : > { %v5395_v28 = vld [vmem:[%s6554_s6 + $0xf0] sm:$0xf] }
 0x23f   : > { %vm1471_vm6 = vcmp.eq.s32.totalorder %v6701_v21, %v1470_v35  ;;  %v5994_v35 = vld [vmem:[%s6549_s30 + $0x34] sm:$0xf0]  ;;  %1655 = vmatpush.bf16.msrb.mxu3 %v5244_v33 }
 0x240   : > { %v1476_v36 = vsel %vm1471_vm6, inf, %v1447_v18  ;;  %v1474_v56 = vsel %vm1471_vm6, %v6711_v54, 0.0  ;;  %v5261_v18 = vld [vmem:[%s6549_s30 + $0x68] sm:$0xf0]  ;;  %v5236_v47 = vor.u32 %v5994_v35, %v5235_v34  ;;  %v6034_v33 = vld [vmem:[%s6554_s6 + $0xf4] sm:$0xf0] }
 0x241   : > { %v1477_v37 = vsel %vm1450_vm3, %v1476_v36, inf  ;;  %v5264_v20 = vor.u32 %v5999_v17, %v5261_v18  ;;  %v6010_v17 = vld [vmem:[%s6554_s6 + $0x34] sm:$0xf0]  ;;  %v6025_v34 = vld [vmem:[%s6554_s6 + $0xb4] sm:$0xf] }
 0x242   : > { %1478 = vmin.xlane.f32.xlu2 %v1477_v37  ;;  %v5248_v37 = vor.u32 %v5995_v30, %v5245_v31  ;;  %v5333_v30 = vld [vmem:[%s6554_s6 + $0x78] sm:$0xf0]  ;;  %v5300_v31 = vor.u32 %v6010_v17, %v5299_v16  ;;  %v5304_v16 = vor.u32 %v6009_v12, %v5301_v13  ;;  %v6062_v13 = vld [vmem:[%s6564_s20 + $0xd4] sm:$0xf0] }
 0x243   : > { %1666 = vmatpush.bf16.msrb.mxu2 %v5264_v20  ;;  %1656 = vmatpush.bf16.msrb.mxu3 %v5236_v47  ;;  %v5365_v35 = vld [vmem:[%s6554_s6 + $0xb8] sm:$0xf0] }
 0x244   : > { %v5368_v47 = vor.u32 %v6025_v34, %v5365_v35  ;;  %v6020_v35 = vld [vmem:[%s6554_s6 + $0x84] sm:$0xf0] }
 0x247   : > { %1667 = vmatpush.bf16.msrb.mxu2 %v5256_v27 }
 0x24b   : > { %1668 = vmatpush.bf16.msrb.mxu2 %v5248_v37  ;;  %v5291_v37 = vld [vmem:[%s6554_s6 + $0x20] sm:$0xf] }
 0x2b5   : > { %v1479_v38 = vpop.xlane.xlu2 %1478 }
 0x2b6   : > { %vm1480_vm7 = vcmp.le.f32.partialorder %v1476_v36, %v1479_v38  ;;  %v1498_v48 = vadd.f32 1e-08, %v1479_v38  ;;  %v5993_v38 = vld [vmem:[%s6549_s30 + $0x34] sm:$0xf] }
 0x2b7   : > { %v1481_v39 = vsel %vm1480_vm7, %v6701_v21, 4 }
 0x2b8   : > { %v1482_v40 = vsel %vm1450_vm3, %v1481_v39, 2147483647  ;;  %6272 = vrcp.f32 %v1498_v48  ;;  %v5237_v39 = vld [vmem:[%s6549_s30 + $0x38] sm:$0xf0]  ;;  %v5227_v48 = vld [vmem:[%s6549_s30 + $0x20] sm:$0xf] }
 0x2b9   : > { %v1484_v41 = vshra.s32 %v1482_v40, 16  ;;  %v1483_v43 = vand.u32 65535, %v1482_v40 }
 0x2bb   : > { %v1486_v42 = vcvt.s32.f32 %v1484_v41  ;;  %v1485_v45 = vcvt.s32.f32 %v1483_v43  ;;  %v6033_v41 = vld [vmem:[%s6554_s6 + $0xf4] sm:$0xf]  ;;  %v5323_v43 = vld [vmem:[%s6554_s6 + $0x60] sm:$0xf] }
 0x2bd   : > { %1487 = vmin.xlane.f32.xlu2 %v1486_v42 }
 0x2be   : > { %v6713_v55 = vpop.eup %6272 }
 0x330   : > { %v1488_v44 = vpop.xlane.xlu2 %1487 }
 0x331   : > { %vm1489_vm8 = vcmp.eq.f32.partialorder %v1486_v42, %v1488_v44  ;;  %v1494_v49 = vcvt.f32.s32 %v1488_v44  ;;  %v5397_v42 = vld [vmem:[%s6554_s6 + $0xf8] sm:$0xf0]  ;;  %v6016_v44 = vld [vmem:[%s6554_s6 + $0x64] sm:$0xf0] }
 0x332   : > { %v1490_v46 = vsel %vm1489_vm8, %v1485_v45, inf  ;;  %v5400_v45 = vor.u32 %v6033_v41, %v5397_v42  ;;  %v5336_v41 = vor.u32 %v6017_v29, %v5333_v30 }
 0x333   : > { %1491 = vmin.xlane.f32.xlu0 %v1490_v46  ;;  %v1495_v51 = vshll.u32 %v1494_v49, 16  ;;  %v5324_v46 = vor.u32 %v6016_v44, %v5323_v43  ;;  %v6031_v49 = vld [vmem:[%s6554_s6 + $0xe4] sm:$0xf]  ;;  %v5396_v43 = vor.u32 %v6034_v33, %v5395_v28  ;;  %v5387_v44 = vld [vmem:[%s6554_s6 + $0xe0] sm:$0xf] }
 0x334   : > { %1877 = vmatpush.bf16.msrb.mxu0 %v5400_v45  ;;  %v6015_v45 = vld [vmem:[%s6554_s6 + $0x64] sm:$0xf]  ;;  %v6022_v28 = vld [vmem:[%s6554_s6 + $0x94] sm:$0xf0]  ;;  %v5339_v33 = vld [vmem:[%s6554_s6 + $0x80] sm:$0xf] }
 0x3a6   : > { %v1492_v50 = vpop.xlane.xlu0 %1491 }
 0x3a7   : > { %v1493_v52 = vcvt.f32.s32 %v1492_v50  ;;  %v5389_v50 = vld [vmem:[%s6554_s6 + $0xe8] sm:$0xf0] }
 0x3a9   : > { %v1496_v53 = vadd.s32 %v1495_v51, %v1493_v52  ;;  %v5240_v51 = vor.u32 %v5993_v38, %v5237_v39  ;;  %v5992_v52 = vld [vmem:[%s6549_s30 + $0x24] sm:$0xf0] }
 0x3aa   : > { %v6008_v38 = vld [vmem:[%s6554_s6 + $0x24] sm:$0xf0] }
 0x3ab   : > { %vm1497_vm9 = vcmp.eq.s32.totalorder %v6701_v21, %v1496_v53  ;;  %v5392_v53 = vor.u32 %v6031_v49, %v5389_v50  ;;  %1669 = vmatpush.bf16.msrb.mxu2 %v5240_v51  ;;  %v5292_v49 = vor.u32 %v6008_v38, %v5291_v37  ;;  %v6023_v50 = vld [vmem:[%s6554_s6 + $0xa4] sm:$0xf]  ;;  %v5283_v51 = vld [vmem:[%s6554_s6 + $0x10] sm:$0xf]  ;;  %v5277_v38 = vld [vmem:[%s6554_s6 + $0x8] sm:$0xf0] }
 0x3ac   : > { %v1502_v57 = vsel %vm1497_vm9, inf, %v1476_v36  ;;  %v6720_v58 = vsel %vm1497_vm9, %v6713_v55, %v1474_v56  ;;  %v6018_v36 = vld [vmem:[%s6554_s6 + $0x74] sm:$0xf0]  ;;  %v5315_v56 = vld [vmem:[%s6554_s6 + $0x50] sm:$0xf] }
 0x3ad   : > { %v1503_v59 = vsel %vm1450_vm3, %v1502_v57, inf  ;;  %v5332_v40 = vor.u32 %v6018_v36, %v5331_v32  ;;  %1878 = vmatpush.bf16.msrb.mxu0 %v5392_v53  ;;  %v5212_v32 = vor.u32 %v5988_v23, %v5211_v22  ;;  %v6024_v22 = vld [vmem:[%s6554_s6 + $0xa4] sm:$0xf0]  ;;  %v6003_v37 = vld [vmem:[%s6554_s6 + $0x4] sm:$0xf] }
 0x3ae   : > { %1504 = vmin.xlane.f32.xlu1 %v1503_v59  ;;  %v5991_v59 = vld [vmem:[%s6549_s30 + $0x24] sm:$0xf] }
 0x3af   : > { %1838 = vmatpush.bf16.msra.mxu1 %v5332_v40  ;;  %v5216_v40 = vor.u32 %v5987_v25, %v5213_v26  ;;  %v6005_v25 = vld [vmem:[%s6554_s6 + $0x14] sm:$0xf]  ;;  %v5285_v26 = vld [vmem:[%s6554_s6 + $0x18] sm:$0xf0] }
 0x3b0   : > { %v5288_v29 = vor.u32 %v6005_v25, %v5285_v26  ;;  %v6059_v26 = vld [vmem:[%s6564_s20 + $0xc4] sm:$0xf] }
 0x3b3   : > { %1839 = vmatpush.bf16.msra.mxu1 %v5324_v46  ;;  %v5325_v46 = vld [vmem:[%s6554_s6 + $0x68] sm:$0xf0] }
 0x3b4   : > { %v5328_v53 = vor.u32 %v6015_v45, %v5325_v46  ;;  %v6050_v45 = vld [vmem:[%s6564_s20 + $0x74] sm:$0xf0]  ;;  %v6049_v46 = vld [vmem:[%s6564_s20 + $0x74] sm:$0xf] }
 0x421   : > { %v6723_v60 = vpop.xlane.xlu1 %1504 }
 0x422   : > { %vm1506_vm10 = vcmp.le.f32.partialorder %v1502_v57, %v6723_v60  ;;  %v6014_v57 = vld [vmem:[%s6554_s6 + $0x54] sm:$0xf0] }
 0x423   : > { %v1507_v61 = vsel %vm1506_vm10, %v6701_v21, 4 }
 0x424   : > { %v1508_v62 = vsel %vm1450_vm3, %v1507_v61, 2147483647  ;;  %v5229_v61 = vld [vmem:[%s6549_s30 + $0x28] sm:$0xf0] }
 0x425   : > { %v1510_v63 = vshra.s32 %v1508_v62, 16  ;;  %v1509_v1 = vand.u32 65535, %v1508_v62  ;;  %v1524_v62 = vadd.f32 1e-08, %v6723_v60  ;;  %v5232_v7 = vor.u32 %v5991_v59, %v5229_v61  ;;  %v5989_v60 = vld [vmem:[%s6549_s30 + $0x14] sm:$0xf] }
 0x426   : > { %v5224_v20 = vor.u32 %v5989_v60, %v5221_v11  ;;  %v6013_v59 = vld [vmem:[%s6554_s6 + $0x54] sm:$0xf]  ;;  %v5317_v61 = vld [vmem:[%s6554_s6 + $0x58] sm:$0xf0]  ;;  %v6028_v60 = vld [vmem:[%s6554_s6 + $0xc4] sm:$0xf0] }
 0x427   : > { %v1512_v0 = vcvt.s32.f32 %v1510_v63  ;;  %v1511_v3 = vcvt.s32.f32 %v1509_v1  ;;  %v5316_v63 = vor.u32 %v6014_v57, %v5315_v56  ;;  %v5381_v1 = vld [vmem:[%s6554_s6 + $0xd8] sm:$0xf0]  ;;  %6274 = vrcp.f32 %v1524_v62  ;;  %1670 = vmatpush.bf16.msrb.mxu2 %v5232_v7  ;;  %v5379_v57 = vld [vmem:[%s6554_s6 + $0xd0] sm:$0xf]  ;;  %v5309_v7 = vld [vmem:[%s6554_s6 + $0x48] sm:$0xf0] }
 0x428   : > { %v5372_v11 = vor.u32 %v6028_v60, %v5371_v9 }
 0x429   : > { %1513 = vmin.xlane.f32.xlu2 %v1512_v0  ;;  %1840 = vmatpush.bf16.msra.mxu1 %v5316_v63  ;;  %v6030_v63 = vld [vmem:[%s6554_s6 + $0xd4] sm:$0xf0] }
 0x42b   : > { %1671 = vmatpush.bf16.msrb.mxu2 %v5224_v20  ;;  %v5355_v20 = vld [vmem:[%s6554_s6 + $0xa0] sm:$0xf] }
 0x42d   : > { %v6789_v36 = vpop.eup %6274 }
 0x42f   : > { %1672 = vmatpush.bf16.msrb.mxu2 %v5216_v40  ;;  %v5280_v40 = vor.u32 %v6003_v37, %v5277_v38 }
 0x49c   : > { %v6728_v2 = vpop.xlane.xlu2 %1513 }
 0x49d   : > { %vm1515_vm11 = vcmp.eq.f32.partialorder %v1512_v0, %v6728_v2  ;;  %v6029_v0 = vld [vmem:[%s6554_s6 + $0xd4] sm:$0xf]  ;;  %v1520_v6 = vcvt.f32.s32 %v6728_v2 }
 0x49e   : > { %v1516_v4 = vsel %vm1515_vm11, %v1511_v3, inf  ;;  %v5228_v3 = vor.u32 %v5992_v52, %v5227_v48  ;;  %v5384_v10 = vor.u32 %v6029_v0, %v5381_v1  ;;  %v6032_v48 = vld [vmem:[%s6554_s6 + $0xe4] sm:$0xf0]  ;;  %v6006_v52 = vld [vmem:[%s6554_s6 + $0x14] sm:$0xf0] }
 0x49f   : > { %1517 = vmin.xlane.f32.xlu0 %v1516_v4  ;;  %v5307_v4 = vld [vmem:[%s6554_s6 + $0x40] sm:$0xf]  ;;  %v1521_v18 = vshll.u32 %v1520_v6, 16  ;;  %v5388_v56 = vor.u32 %v6032_v48, %v5387_v44  ;;  %v5284_v0 = vor.u32 %v6006_v52, %v5283_v51  ;;  %v6021_v1 = vld [vmem:[%s6554_s6 + $0x94] sm:$0xf] }
 0x4a0   : > { %v5308_v14 = vor.u32 %v6012_v5, %v5307_v4  ;;  %1657 = vmatpush.bf16.msrb.mxu3 %v5228_v3  ;;  %1879 = vmatpush.bf16.msrb.mxu0 %v5384_v10  ;;  %v5349_v3 = vld [vmem:[%s6554_s6 + $0x98] sm:$0xf0]  ;;  %v5320_v4 = vor.u32 %v6013_v59, %v5317_v61  ;;  %v5380_v5 = vor.u32 %v6030_v63, %v5379_v57  ;;  %v6011_v6 = vld [vmem:[%s6554_s6 + $0x44] sm:$0xf]  ;;  %v5459_v44 = vld [vmem:[%s6564_s20 + $0x70] sm:$0xf] }
 0x4a1   : > { %v5352_v8 = vor.u32 %v6021_v1, %v5349_v3  ;;  %v5312_v10 = vor.u32 %v6011_v6, %v5309_v7  ;;  %v5461_v48 = vld [vmem:[%s6564_s20 + $0x78] sm:$0xf0]  ;;  %v6065_v52 = vld [vmem:[%s6564_s20 + $0xf4] sm:$0xf]  ;;  %v6048_v59 = vld [vmem:[%s6564_s20 + $0x64] sm:$0xf0]  ;;  %v1501_v63 = vadd.f32 %v6713_v55, %v6711_v54 }
 0x4a2   : > { %1841 = vmatpush.bf16.msra.mxu1 %v5308_v14  ;;  %v5363_v14 = vld [vmem:[%s6554_s6 + $0xb0] sm:$0xf]  ;;  %v6047_v61 = vld [vmem:[%s6564_s20 + $0x64] sm:$0xf]  ;;  %v5517_v54 = vld [vmem:[%s6564_s20 + $0xe8] sm:$0xf0] }
 0x4a3   : > { %v1527_v3 = vadd.f32 %v6789_v36, %v1501_v63  ;;  %v6063_v6 = vld [vmem:[%s6564_s20 + $0xe4] sm:$0xf]  ;;  %v5443_v55 = vld [vmem:[%s6564_s20 + $0x50] sm:$0xf]  ;;  %v5421_v63 = vld [vmem:[%s6564_s20 + $0x28] sm:$0xf0] }
 0x4a4   : > { %1658 = vmatpush.bf16.msrb.mxu3 %v5220_v15  ;;  %1880 = vmatpush.bf16.msrb.mxu0 %v5376_v24  ;;  %v1319_v15 = vld [vmem:[%s1296_s11] sm:$0xf]  ;;  %v5356_v24 = vor.u32 %v6024_v22, %v5355_v20  ;;  %v5520_v9 = vor.u32 %v6063_v6, %v5517_v54  ;;  %v5437_v22 = vld [vmem:[%s6564_s20 + $0x48] sm:$0xf0]  ;;  %v5411_v54 = vld [vmem:[%s6564_s20 + $0x10] sm:$0xf] }
 0x4a5   : > { %6276 = vrcp.f32 %v1527_v3  ;;  %v6056_v3 = vld [vmem:[%s6564_s20 + $0xa4] sm:$0xf0]  ;;  %v5485_v6 = vld [vmem:[%s6564_s20 + $0xa8] sm:$0xf0]  ;;  %s5981_s11 = sshll.u32 %s8243_s22, 5 }
 0x4a6   : > { %1842 = vmatpush.bf16.msra.mxu1 %v5300_v31  ;;  %v5275_v31 = vld [vmem:[%s6554_s6] sm:$0xf] }
 0x4a8   : > { %1659 = vmatpush.bf16.msrb.mxu3 %v5212_v32  ;;  %1881 = vmatpush.bf16.msrb.mxu0 %v5368_v47  ;;  %v6004_v32 = vld [vmem:[%s6554_s6 + $0x4] sm:$0xf0]  ;;  %v5460_v47 = vor.u32 %v6050_v45, %v5459_v44  ;;  %v5427_v44 = vld [vmem:[%s6564_s20 + $0x30] sm:$0xf]  ;;  %v6042_v45 = vld [vmem:[%s6564_s20 + $0x34] sm:$0xf0] }
 0x4a9   : > { %v5276_v34 = vor.u32 %v6004_v32, %v5275_v31 }
 0x4aa   : > { %1843 = vmatpush.bf16.msra.mxu1 %v5292_v49  ;;  %v5523_v49 = vld [vmem:[%s6564_s20 + $0xf0] sm:$0xf] }
 0x4ae   : > { %1844 = vmatpush.bf16.msra.mxu1 %v5284_v0 }
 0x4b2   : > { %1845 = vmatpush.bf16.msra.mxu1 %v5276_v34 }
 0x4b6   : > { %2066 = vmatpush.bf16.msrb.mxu1 %v5460_v47  ;;  %v5428_v47 = vor.u32 %v6042_v45, %v5427_v44 }
 0x512   : > { %v1518_v2 = vpop.xlane.xlu0 %1517 }
 0x513   : > { %v1519_v19 = vcvt.f32.s32 %v1518_v2  ;;  %v6026_v2 = vld [vmem:[%s6554_s6 + $0xb4] sm:$0xf0] }
 0x514   : > { %v5364_v17 = vor.u32 %v6026_v2, %v5363_v14  ;;  %v6061_v14 = vld [vmem:[%s6564_s20 + $0xd4] sm:$0xf]  ;;  %v5509_v2 = vld [vmem:[%s6564_s20 + $0xd8] sm:$0xf0] }
 0x515   : > { %v1522_v27 = vadd.s32 %v1521_v18, %v1519_v19  ;;  %v6007_v18 = vld [vmem:[%s6554_s6 + $0x24] sm:$0xf]  ;;  %v5293_v19 = vld [vmem:[%s6554_s6 + $0x28] sm:$0xf0] }
 0x516   : > { %v5296_v23 = vor.u32 %v6007_v18, %v5293_v19  ;;  %v6044_v18 = vld [vmem:[%s6564_s20 + $0x44] sm:$0xf0]  ;;  %v6043_v19 = vld [vmem:[%s6564_s20 + $0x44] sm:$0xf] }
 0x517   : > { %vm1523_vm13 = vcmp.eq.s32.totalorder %v6701_v21, %v1522_v27  ;;  %v5347_v27 = vld [vmem:[%s6554_s6 + $0x90] sm:$0xf]  ;;  %v5440_v25 = vor.u32 %v6043_v19, %v5437_v22  ;;  %v5405_v19 = vld [vmem:[%s6564_s20 + $0x8] sm:$0xf0]  ;;  %v5467_v22 = vld [vmem:[%s6564_s20 + $0x80] sm:$0xf] }
 0x518   : > { %v1526_v39 = vsel %vm1523_vm13, %v6789_v36, %v6720_v58  ;;  %v5357_v58 = vld [vmem:[%s6554_s6 + $0xa8] sm:$0xf0]  ;;  %v5348_v30 = vor.u32 %v6022_v28, %v5347_v27  ;;  %v5445_v36 = vld [vmem:[%s6564_s20 + $0x58] sm:$0xf0] }
 0x519   : > { %v1528_v42 = vpack.c.bf16 %v1526_v39, %v1526_v39  ;;  %v5360_v62 = vor.u32 %v6023_v50, %v5357_v58  ;;  %v5340_v39 = vor.u32 %v6020_v35, %v5339_v33  ;;  %v6066_v50 = vld [vmem:[%s6564_s20 + $0xf4] sm:$0xf0]  ;;  %v5464_v58 = vor.u32 %v6049_v46, %v5461_v48  ;;  %v5501_v27 = vld [vmem:[%s6564_s20 + $0xc8] sm:$0xf0]  ;;  %v6041_v46 = vld [vmem:[%s6564_s20 + $0x34] sm:$0xf] }
 0x51a   : > { %v5524_v51 = vor.u32 %v6066_v50, %v5523_v49  ;;  %v5504_v32 = vor.u32 %v6059_v26, %v5501_v27  ;;  %v5429_v48 = vld [vmem:[%s6564_s20 + $0x38] sm:$0xf0]  ;;  %v5491_v50 = vld [vmem:[%s6564_s20 + $0xb0] sm:$0xf]  ;;  %v5469_v26 = vld [vmem:[%s6564_s20 + $0x88] sm:$0xf0] }
 0x51b   : > { %5207 = vmatmul.msk.bf16.vlgmr.msra.gmra.mxu3 %vm1450_vm3, %v1528_v42  ;;  %5208 = vmatmul.msk.bf16.vlgmr.msra.gmra.mxu2 %vm1450_vm3, %v1528_v42  ;;  %v5341_v42 = vld [vmem:[%s6554_s6 + $0x88] sm:$0xf0]  ;;  %v5432_v49 = vor.u32 %v6041_v46, %v5429_v48 }
 0x51c   : > { %1864 = vmatpush.bf16.msra.mxu3 %v5336_v41  ;;  %1851 = vmatpush.bf16.msra.mxu2 %v5396_v43  ;;  %v6019_v41 = vld [vmem:[%s6554_s6 + $0x84] sm:$0xf] }
 0x51d   : > { %1882 = vmatpush.bf16.msrb.mxu0 %v5360_v62  ;;  %v5344_v43 = vor.u32 %v6019_v41, %v5341_v42  ;;  %v5453_v62 = vld [vmem:[%s6564_s20 + $0x68] sm:$0xf0] }
 0x51e   : > { %v5456_v1 = vor.u32 %v6047_v61, %v5453_v62  ;;  %v6039_v62 = vld [vmem:[%s6564_s20 + $0x24] sm:$0xf] }
 0x520   : > { %1865 = vmatpush.bf16.msra.mxu3 %v5328_v53  ;;  %1852 = vmatpush.bf16.msra.mxu2 %v5388_v56  ;;  %v5525_v53 = vld [vmem:[%s6564_s20 + $0xf8] sm:$0xf0]  ;;  %v5451_v56 = vld [vmem:[%s6564_s20 + $0x60] sm:$0xf] }
 0x521   : > { %1883 = vmatpush.bf16.msrb.mxu0 %v5352_v8  ;;  %v5528_v57 = vor.u32 %v6065_v52, %v5525_v53  ;;  %v5452_v0 = vor.u32 %v6048_v59, %v5451_v56  ;;  %v6046_v8 = vld [vmem:[%s6564_s20 + $0x54] sm:$0xf0]  ;;  %v5493_v53 = vld [vmem:[%s6564_s20 + $0xb8] sm:$0xf0]  ;;  %v5419_v56 = vld [vmem:[%s6564_s20 + $0x20] sm:$0xf] }
 0x522   : > { %v5444_v60 = vor.u32 %v6046_v8, %v5443_v55  ;;  %v6038_v55 = vld [vmem:[%s6564_s20 + $0x14] sm:$0xf0]  ;;  %v6037_v8 = vld [vmem:[%s6564_s20 + $0x14] sm:$0xf] }
 0x523   : > { %2067 = vmatpush.bf16.msrb.mxu1 %v5452_v0  ;;  %v5424_v0 = vor.u32 %v6039_v62, %v5421_v63 }
 0x524   : > { %1866 = vmatpush.bf16.msra.mxu3 %v5320_v4  ;;  %1853 = vmatpush.bf16.msra.mxu2 %v5380_v5  ;;  %v5515_v4 = vld [vmem:[%s6564_s20 + $0xe0] sm:$0xf]  ;;  %v6064_v5 = vld [vmem:[%s6564_s20 + $0xe4] sm:$0xf0] }
 0x525   : > { %1884 = vmatpush.bf16.msrb.mxu0 %v5344_v43  ;;  %v5516_v7 = vor.u32 %v6064_v5, %v5515_v4  ;;  %v6055_v4 = vld [vmem:[%s6564_s20 + $0xa4] sm:$0xf] }
 0x527   : > { %2068 = vmatpush.bf16.msrb.mxu1 %v5444_v60  ;;  %v5413_v60 = vld [vmem:[%s6564_s20 + $0x18] sm:$0xf0] }
 0x528   : > { %1867 = vmatpush.bf16.msra.mxu3 %v5312_v10  ;;  %1854 = vmatpush.bf16.msra.mxu2 %v5372_v11  ;;  %v6045_v10 = vld [vmem:[%s6564_s20 + $0x54] sm:$0xf]  ;;  %v5507_v11 = vld [vmem:[%s6564_s20 + $0xd0] sm:$0xf] }
 0x529   : > { %2105 = vmatpush.bf16.msra.mxu0 %v5528_v57  ;;  %v5448_v12 = vor.u32 %v6045_v10, %v5445_v36  ;;  %v6040_v57 = vld [vmem:[%s6564_s20 + $0x24] sm:$0xf0]  ;;  %v5416_v10 = vor.u32 %v6037_v8, %v5413_v60  ;;  %v5475_v36 = vld [vmem:[%s6564_s20 + $0x90] sm:$0xf] }
 0x52a   : > { %v5420_v61 = vor.u32 %v6040_v57, %v5419_v56 }
 0x52b   : > { %1673 = vmatmul.bf16.vlgmr.msrb.gmra.mxu2 %v1319_v15  ;;  %1660 = vmatmul.bf16.vlgmr.msrb.gmra.mxu3 %v1319_v15  ;;  %v5508_v15 = vor.u32 %v6062_v13, %v5507_v11  ;;  %v6054_v11 = vld [vmem:[%s6564_s20 + $0x94] sm:$0xf0] }
 0x52c   : > { %1868 = vmatpush.bf16.msra.mxu3 %v5304_v16  ;;  %1855 = vmatpush.bf16.msra.mxu2 %v5364_v17  ;;  %v5512_v16 = vor.u32 %v6061_v14, %v5509_v2  ;;  %v5435_v17 = vld [vmem:[%s6564_s20 + $0x40] sm:$0xf]  ;;  %v5476_v13 = vor.u32 %v6054_v11, %v5475_v36  ;;  %v5477_v14 = vld [vmem:[%s6564_s20 + $0x98] sm:$0xf0] }
 0x52d   : > { %2106 = vmatpush.bf16.msra.mxu0 %v5520_v9  ;;  %v5436_v20 = vor.u32 %v6044_v18, %v5435_v17  ;;  %v5412_v9 = vor.u32 %v6038_v55, %v5411_v54  ;;  %v6035_v18 = vld [vmem:[%s6564_s20 + $0x4] sm:$0xf] }
 0x52f   : > { %2069 = vmatpush.bf16.msrb.mxu1 %v5436_v20  ;;  %v5408_v20 = vor.u32 %v6035_v18, %v5405_v19 }
 0x530   : > { %1869 = vmatpush.bf16.msra.mxu3 %v5296_v23  ;;  %1856 = vmatpush.bf16.msra.mxu2 %v5356_v24  ;;  %v5499_v23 = vld [vmem:[%s6564_s20 + $0xc0] sm:$0xf]  ;;  %v6060_v24 = vld [vmem:[%s6564_s20 + $0xc4] sm:$0xf0] }
 0x531   : > { %v5500_v28 = vor.u32 %v6060_v24, %v5499_v23  ;;  %2107 = vmatpush.bf16.msra.mxu0 %v5512_v16  ;;  %v6036_v16 = vld [vmem:[%s6564_s20 + $0x4] sm:$0xf0]  ;;  %v6051_v24 = vld [vmem:[%s6564_s20 + $0x84] sm:$0xf] }
 0x532   : > { %v6052_v23 = vld [vmem:[%s6564_s20 + $0x84] sm:$0xf0]  ;;  %v5472_v27 = vor.u32 %v6051_v24, %v5469_v26 }
 0x533   : > { %2070 = vmatpush.bf16.msrb.mxu1 %v5428_v47 }
 0x534   : > { %1870 = vmatpush.bf16.msra.mxu3 %v5288_v29  ;;  %1857 = vmatpush.bf16.msra.mxu2 %v5348_v30  ;;  %v6277_v29 = vpop.eup %6276 }
 0x535   : > { %2108 = vmatpush.bf16.msra.mxu0 %v5504_v32 }
 0x537   : > { %2071 = vmatpush.bf16.msrb.mxu1 %v5420_v61 }
 0x538   : > { %1858 = vmatpush.bf16.msra.mxu2 %v5340_v39  ;;  %1871 = vmatpush.bf16.msra.mxu3 %v5280_v40 }
 0x53b   : > { %2072 = vmatpush.bf16.msrb.mxu1 %v5412_v9 }
 0x53c   : > { %2092 = vmatpush.bf16.msrb.mxu3 %v5464_v58  ;;  %2079 = vmatpush.bf16.msrb.mxu2 %v5524_v51  ;;  %v6058_v58 = vld [vmem:[%s6564_s20 + $0xb4] sm:$0xf0]  ;;  %v6057_v51 = vld [vmem:[%s6564_s20 + $0xb4] sm:$0xf] }
 0x53d   : > { %v5492_v52 = vor.u32 %v6058_v58, %v5491_v50  ;;  %v5496_v59 = vor.u32 %v6057_v51, %v5493_v53 }
 0x53f   : > { %2109 = vmatpush.bf16.msra.mxu0 %v5496_v59 }
 0x540   : > { %2093 = vmatpush.bf16.msrb.mxu3 %v5456_v1  ;;  %2080 = vmatpush.bf16.msrb.mxu2 %v5516_v7  ;;  %v5483_v1 = vld [vmem:[%s6564_s20 + $0xa0] sm:$0xf]  ;;  %v5488_v7 = vor.u32 %v6055_v4, %v5485_v6 }
 0x541   : > { %v5484_v5 = vor.u32 %v6056_v3, %v5483_v1 }
 0x543   : > { %2110 = vmatpush.bf16.msra.mxu0 %v5488_v7 }
 0x544   : > { %2094 = vmatpush.bf16.msrb.mxu3 %v5448_v12  ;;  %2081 = vmatpush.bf16.msrb.mxu2 %v5508_v15  ;;  %v6053_v12 = vld [vmem:[%s6564_s20 + $0x94] sm:$0xf]  ;;  %v5403_v15 = vld [vmem:[%s6564_s20] sm:$0xf] }
 0x545   : > { %v5480_v2 = vor.u32 %v6053_v12, %v5477_v14  ;;  %v5404_v17 = vor.u32 %v6036_v16, %v5403_v15 }
 0x547   : > { %2111 = vmatpush.bf16.msra.mxu0 %v5480_v2  ;;  %2073 = vmatpush.bf16.msrb.mxu1 %v5404_v17 }
 0x548   : > { %2095 = vmatpush.bf16.msrb.mxu3 %v5440_v25  ;;  %2082 = vmatpush.bf16.msrb.mxu2 %v5500_v28  ;;  %v5468_v25 = vor.u32 %v6052_v23, %v5467_v22  ;;  %v2122_v28 = vld [vmem:[%s1278_s15] sm:$0x7]  ;;  %s8222_s15 = sld [smem:[#allocation9_spill]] }
 0x549   : > { %v2239_v59 = vmul.f32 %v2122_v28, %v2122_v28 }
 0x54b   : > { %2112 = vmatpush.bf16.msra.mxu0 %v5472_v27  ;;  %v2241_v61 = vsel %vm2240_vm14, %v2239_v59, 0.0 }
 0x54c   : > { %2096 = vmatpush.bf16.msrb.mxu3 %v5432_v49  ;;  %2083 = vmatpush.bf16.msrb.mxu2 %v5492_v52  ;;  %v2242_v62 = vrot.slane %v2241_v61, 4 }
 0x54e   : > { %v2243_v1 = vadd.f32 %v2242_v62, %v2241_v61 }
 0x550   : > { %2097 = vmatpush.bf16.msrb.mxu3 %v5424_v0  ;;  %2084 = vmatpush.bf16.msrb.mxu2 %v5484_v5  ;;  %v1402_v0 = vld [vmem:[%s6569_s27] sm:$0x3]  ;;  %v2244_v6 = vrot.slane %v2243_v1, 2 }
 0x551   : > { %v1903_v4 = vperm.slane %v1402_v0, 1  ;;  %v1902_v5 = vperm.slane %v1402_v0, 0 }
 0x554   : > { %2098 = vmatpush.bf16.msrb.mxu3 %v5416_v10  ;;  %2085 = vmatpush.bf16.msrb.mxu2 %v5476_v13  ;;  %v2245_v10 = vadd.f32 %v2244_v6, %v2243_v1 }
 0x556   : > { %v2246_v2 = vrot.slane %v2245_v10, 1 }
 0x558   : > { %2099 = vmatpush.bf16.msrb.mxu3 %v5408_v20  ;;  %2086 = vmatpush.bf16.msrb.mxu2 %v5468_v25  ;;  %v2247_v24 = vadd.f32 %v2246_v2, %v2245_v10 }
 0x59e   : > { %v1550_v30 = vpop.f32.mrf.mxu3  ;;  %v1563_v31 = vpop.f32.mrf.mxu2 }
 0x59f   : > { %v1568_v33 = vmul.f32 %v6277_v29, %v1550_v30  ;;  %v1569_v34 = vmul.f32 %v6277_v29, %v1563_v31  ;;  %v1369_v31 = vld [vmem:[%s6559_s12] sm:$0x3] }
 0x5a0   : > { %v1892_v45 = vperm.slane %v1369_v31, 1 }
 0x5a1   : > { %v1570_v35 = vpack.c.bf16 %v1568_v33, %v1568_v33  ;;  %v1571_v37 = vpack.c.bf16 %v1569_v34, %v1569_v34  ;;  %v1891_v33 = vperm.slane %v1369_v31, 0 }
 0x5a3   : > { %1846 = vmatmul.bf16.vlgmr.msra.gmra.mxu1 %v1570_v35  ;;  %1859 = vmatmul.bf16.vlgmr.msra.gmra.mxu2 %v1571_v37 }
 0x5a4   : > { %1872 = vmatmul.bf16.vlgmr.msra.gmra.mxu3 %v1570_v35  ;;  %1885 = vmatmul.bf16.vlgmr.msrb.gmra.mxu0 %v1571_v37  ;;  %v2120_v35 = vld [vmem:[%s1262_s18] sm:$0xff]  ;;  %v2121_v37 = vld [vmem:[%s1262_s18 + $0x8] sm:$0xff]  ;;  %s1257_s18 = scalar_lea.vmem %s8221_s10, %s5981_s11  ;;  %s8226_s10 = sld [smem:[#allocation3_spill]] }
 0x5a5   : > { %5529 = vmatpush.msk.msra.mxu1 %vm1407_vm0, %v2122_v28 }
 0x5a6   : > { %v1552_v38 = vpop.f32.mrf.mxu3  ;;  %v1565_v39 = vpop.f32.mrf.mxu2 }
 0x5ae   : > { %v6873_v40 = vpop.f32.mrf.mxu2  ;;  %v6875_v41 = vpop.f32.mrf.mxu3 }
 0x5b6   : > { %v1676_v42 = vpop.f32.mrf.mxu2  ;;  %v1663_v43 = vpop.f32.mrf.mxu3 }
 0x5b7   : > { %v2231_v42 = vmul.f32 %v2120_v35, %v2120_v35  ;;  %v2232_v43 = vmul.f32 %v2121_v37, %v2121_v37 }
 0x5b9   : > { %v2233_v49 = vsel %vm1403_vm1, %v2231_v42, 0.0  ;;  %v2236_v50 = vsel %vm1403_vm1, %v2232_v43, 0.0 }
 0x5ba   : > { %2234 = vadd.xlane.f32.xlu1 %v2233_v49  ;;  %2237 = vadd.xlane.f32.xlu2 %v2236_v50 }
 0x620   : > { %v1847_v29 = vpop.f32.mrf.mxu1 }
 0x621   : > { %v1886_v30 = vpop.f32.mrf.mxu0  ;;  %v1848_v32 = vadd.f32 %v1847_v29, %v6875_v41 }
 0x626   : > { %v1860_v34 = vpop.f32.mrf.mxu2 }
 0x627   : > { %v1861_v38 = vadd.f32 %v1860_v34, %v1848_v32  ;;  %v1873_v39 = vpop.f32.mrf.mxu3 }
 0x628   : > { %v1874_v44 = vadd.f32 %v1873_v39, %v6873_v40  ;;  %v1849_v46 = vpop.f32.mrf.mxu1 }
 0x629   : > { %v1895_v47 = vadd.f32 %v1891_v33, %v1861_v38  ;;  %v1888_v48 = vpop.f32.mrf.mxu0 }
 0x62a   : > { %v1887_v58 = vadd.f32 %v1886_v30, %v1874_v44 }
 0x62b   : > { %v1897_v41 = vmax.f32 %v1895_v47, 0.0 }
 0x62c   : > { %v1896_v51 = vadd.f32 %v1892_v45, %v1887_v58 }
 0x62d   : > { %v1899_v52 = vpack.c.bf16 %v1897_v41, %v1897_v41  ;;  %v2235_v20 = vpop.xlane.xlu1 %2234  ;;  %v2238_v29 = vpop.xlane.xlu2 %2237 }
 0x62e   : > { %v1898_v53 = vmax.f32 %v1896_v51, 0.0  ;;  %v1862_v56 = vpop.f32.mrf.mxu2 }
 0x62f   : > { %v1875_v57 = vpop.f32.mrf.mxu3  ;;  %2074 = vmatmul.bf16.vlgmr.msrb.gmra.mxu1 %v1899_v52  ;;  %2100 = vmatmul.bf16.vlgmr.msrb.gmra.mxu3 %v1899_v52 }
 0x630   : > { %v1900_v40 = vpack.c.bf16 %v1898_v53, %v1898_v53 }
 0x632   : > { %2087 = vmatmul.bf16.vlgmr.msrb.gmra.mxu2 %v1900_v40  ;;  %2113 = vmatmul.bf16.vlgmr.msra.gmra.mxu0 %v1900_v40 }
 0x63f   : > { %5530 = vmatmul.msk.f32.vlgmr.msra.gmra.mxu1 %vm1403_vm1, %v2120_v35 }
 0x647   : > { %5531 = vmatmul.msk.f32.gmra.mxu1 %vm1403_vm1, %v2121_v37 }
 0x6ac   : > { %v2075_v63 = vpop.f32.mrf.mxu1 }
 0x6ad   : > { %v2076_v55 = vadd.f32 %v2075_v63, %v1902_v5 }
 0x6af   : > { %v2114_v3 = vpop.f32.mrf.mxu0 }
 0x6b2   : > { %v2101_v7 = vpop.f32.mrf.mxu3 }
 0x6b3   : > { %v2102_v54 = vadd.f32 %v2101_v7, %v1903_v4 }
 0x6b4   : > { %v2077_v8 = vpop.f32.mrf.mxu1 }
 0x6b5   : > { %v2115_v9 = vadd.f32 %v2114_v3, %v2102_v54  ;;  %v2088_v60 = vpop.f32.mrf.mxu2 }
 0x6b6   : > { %v2089_v36 = vadd.f32 %v2088_v60, %v2076_v55 }
 0x6b7   : > { %v2119_v11 = vmax.f32 %v2115_v9, 0.0  ;;  %v2116_v12 = vpop.f32.mrf.mxu0 }
 0x6b8   : > { %v2118_v13 = vmax.f32 %v2089_v36, 0.0 }
 0x6b9   : > { %v2413_v14 = vpack.c.bf16 %v2119_v11, %v2119_v11 }
 0x6ba   : > { %v2412_v15 = vpack.c.bf16 %v2118_v13, %v2118_v13  ;;  %v2103_v16 = vpop.f32.mrf.mxu3 }
 0x6bb   : > { %v2422_v17 = vsel %vm2417_vm15, %v2413_v14, 0 }
 0x6bc   : > { %v2225_v18 = vpop.f32.mrf.mxu1  ;;  %v2419_v19 = vsel %vm2417_vm15, %v2412_v15, 0  ;;  %2445 = vmatpush.bf16.msrb.mxu1 %v2422_v17 }
 0x6bd   : > { %v2090_v22 = vpop.f32.mrf.mxu2  ;;  %v2248_v23 = vmul.f32 2.0, %v2225_v18  ;;  %2431 = vmatpush.bf16.msra.mxu2 %v2419_v19 }
 0x6bf   : > { %v2250_v25 = vsub.f32 %v2235_v20, %v2248_v23 }
 0x6c1   : > { %v2252_v26 = vadd.f32 %v2250_v25, %v2247_v24 }
 0x6c3   : > { %v2254_v27 = vmax.f32 %v2252_v26, 0.0 }
 0x6c4   : > { %v2228_v28 = vpop.f32.mrf.mxu1 }
 0x6c5   : > { %v2249_v30 = vmul.f32 2.0, %v2228_v28  ;;  %v2257_v31 = vsel %vm2256_vm2, %v2254_v27, inf }
 0x6c6   : > { %2258 = vmin.xlane.f32.xlu0 %v2257_v31 }
 0x6c7   : > { %v2251_v32 = vsub.f32 %v2238_v29, %v2249_v30 }
 0x6c9   : > { %v2253_v33 = vadd.f32 %v2251_v32, %v2247_v24 }
 0x6cb   : > { %v2255_v34 = vmax.f32 %v2253_v33, 0.0 }
 0x6cd   : > { %v2260_v35 = vsel %vm2256_vm2, %v2255_v34, inf }
 0x6ce   : > { %2261 = vmin.xlane.f32.xlu1 %v2260_v35 }
 0x739   : > { %v6926_v37 = vpop.xlane.xlu0 %2258 }
 0x73a   : > { %vm2263_vm3 = vcmp.le.f32.partialorder %v2254_v27, %v6926_v37  ;;  %v2299_v23 = vadd.f32 1e-08, %v6926_v37 }
 0x73b   : > { %v2265_v38 = vsel %vm2263_vm3, %v6701_v21, 8 }
 0x73c   : > { %v2267_v39 = vsel %vm2256_vm2, %v2265_v38, 2147483647  ;;  %6278 = vrcp.f32 %v2299_v23  ;;  %v6068_v23 = vld [vmem:[%s6574_s4 + $0x4] sm:$0xf] }
 0x73d   : > { %v2269_v42 = vshra.s32 %v2267_v39, 16  ;;  %v2268_v49 = vand.u32 65535, %v2267_v39 }
 0x73f   : > { %v2271_v43 = vcvt.s32.f32 %v2269_v42  ;;  %v2270_v58 = vcvt.s32.f32 %v2268_v49 }
 0x741   : > { %2272 = vmin.xlane.f32.xlu2 %v2271_v43  ;;  %v6931_v44 = vpop.xlane.xlu1 %2261 }
 0x742   : > { %vm2264_vm4 = vcmp.le.f32.partialorder %v2255_v34, %v6931_v44  ;;  %v2300_v29 = vadd.f32 1e-08, %v6931_v44  ;;  %v6950_v32 = vpop.eup %6278 }
 0x743   : > { %v2266_v45 = vsel %vm2264_vm4, %v6701_v21, 8 }
 0x744   : > { %v2282_v46 = vsel %vm2256_vm2, %v2266_v45, 2147483647 }
 0x745   : > { %v2284_v47 = vshra.s32 %v2282_v46, 16  ;;  %v2283_v51 = vand.u32 65535, %v2282_v46 }
 0x747   : > { %v2286_v48 = vcvt.s32.f32 %v2284_v47  ;;  %v2285_v53 = vcvt.s32.f32 %v2283_v51 }
 0x749   : > { %2287 = vmin.xlane.f32.xlu0 %v2286_v48 }
 0x7b4   : > { %v2273_v50 = vpop.xlane.xlu2 %2272 }
 0x7b5   : > { %vm2274_vm5 = vcmp.eq.f32.partialorder %v2271_v43, %v2273_v50  ;;  %v2279_v57 = vcvt.f32.s32 %v2273_v50 }
 0x7b6   : > { %v2275_v41 = vsel %vm2274_vm5, %v2270_v58, inf }
 0x7b7   : > { %2276 = vmin.xlane.f32.xlu1 %v2275_v41  ;;  %v2280_v59 = vshll.u32 %v2279_v57, 16 }
 0x7bc   : > { %v2288_v52 = vpop.xlane.xlu0 %2287 }
 0x7bd   : > { %vm2289_vm6 = vcmp.eq.f32.partialorder %v2286_v48, %v2288_v52  ;;  %v2294_v63 = vcvt.f32.s32 %v2288_v52 }
 0x7be   : > { %v2290_v56 = vsel %vm2289_vm6, %v2285_v53, inf  ;;  %vm2505_vm6 = vcmask 523264  }
 0x7bf   : > { %2291 = vmin.xlane.f32.xlu2 %v2290_v56  ;;  %v2295_v4 = vshll.u32 %v2294_v63, 16 }
 0x82a   : > { %v2277_v40 = vpop.xlane.xlu1 %2276 }
 0x82b   : > { %v2278_v61 = vcvt.f32.s32 %v2277_v40 }
 0x82d   : > { %v2281_v62 = vadd.s32 %v2280_v59, %v2278_v61 }
 0x82f   : > { %vm2297_vm7 = vcmp.eq.s32.totalorder %v6701_v21, %v2281_v62 }
 0x830   : > { %v2307_v0 = vsel %vm2297_vm7, inf, %v2254_v27 }
 0x831   : > { %v2309_v1 = vsel %vm2256_vm2, %v2307_v0, inf }
 0x832   : > { %v2292_v3 = vpop.xlane.xlu2 %2291  ;;  %2310 = vmin.xlane.f32.xlu0 %v2309_v1 }
 0x833   : > { %v2293_v5 = vcvt.f32.s32 %v2292_v3 }
 0x835   : > { %v2296_v6 = vadd.s32 %v2295_v4, %v2293_v5 }
 0x837   : > { %vm2298_vm8 = vcmp.eq.s32.totalorder %v6701_v21, %v2296_v6 }
 0x838   : > { %v2308_v7 = vsel %vm2298_vm8, inf, %v2255_v34  ;;  %v2303_v34 = vsel %vm2297_vm7, %v6950_v32, 0.0 }
 0x839   : > { %v2312_v54 = vsel %vm2256_vm2, %v2308_v7, inf }
 0x83a   : > { %2313 = vmin.xlane.f32.xlu1 %v2312_v54  ;;  %v6074_v54 = vld [vmem:[%s6574_s4 + $0x34] sm:$0xf] }
 0x8a5   : > { %v2311_v55 = vpop.xlane.xlu0 %2310 }
 0x8a6   : > { %vm2315_vm9 = vcmp.le.f32.partialorder %v2307_v0, %v2311_v55  ;;  %v2351_v24 = vadd.f32 1e-08, %v2311_v55  ;;  %v5566_v55 = vld [vmem:[%s6574_s4 + $0x38] sm:$0xf0] }
 0x8a7   : > { %v2317_v8 = vsel %vm2315_vm9, %v6701_v21, 8  ;;  %vm3033_vm9 = vcmask 130048  }
 0x8a8   : > { %v2319_v9 = vsel %vm2256_vm2, %v2317_v8, 2147483647  ;;  %6280 = vrcp.f32 %v2351_v24  ;;  %v6072_v8 = vld [vmem:[%s6574_s4 + $0x24] sm:$0xf]  ;;  %v5686_v24 = vld [vmem:[%s6579_s8 + $0xe0] sm:$0xf] }
 0x8a9   : > { %v2321_v60 = vshra.s32 %v2319_v9, 16  ;;  %v2320_v2 = vand.u32 65535, %v2319_v9  ;;  %6282 = vrcp.f32 %v2300_v29  ;;  %v5569_v9 = vor.u32 %v6074_v54, %v5566_v55  ;;  %v5696_v29 = vld [vmem:[%s6579_s8 + $0xf8] sm:$0xf0]  ;;  %v5614_v55 = vld [vmem:[%s6579_s8 + $0x50] sm:$0xf] }
 0x8aa   : > { %v5680_v54 = vld [vmem:[%s6579_s8 + $0xd8] sm:$0xf0] }
 0x8ab   : > { %v2323_v10 = vcvt.s32.f32 %v2321_v60  ;;  %v2322_v16 = vcvt.s32.f32 %v2320_v2  ;;  %v5558_v60 = vld [vmem:[%s6574_s4 + $0x28] sm:$0xf0]  ;;  %2527 = vmatpush.bf16.msra.mxu3 %v5569_v9  ;;  %v6073_v2 = vld [vmem:[%s6574_s4 + $0x24] sm:$0xf0]  ;;  %v5662_v9 = vld [vmem:[%s6579_s8 + $0xb0] sm:$0xf] }
 0x8ad   : > { %2324 = vmin.xlane.f32.xlu2 %v2323_v10  ;;  %v2314_v36 = vpop.xlane.xlu1 %2313 }
 0x8ae   : > { %vm2316_vm10 = vcmp.le.f32.partialorder %v2308_v7, %v2314_v36  ;;  %v2352_v30 = vadd.f32 1e-08, %v2314_v36  ;;  %v6952_v33 = vpop.eup %6280  ;;  %v6075_v36 = vld [vmem:[%s6574_s4 + $0x34] sm:$0xf0] }
 0x8af   : > { %v2318_v11 = vsel %vm2316_vm10, %v6701_v21, 8  ;;  %v6962_v46 = vpop.eup %6282 }
 0x8b0   : > { %v2334_v12 = vsel %vm2256_vm2, %v2318_v11, 2147483647  ;;  %6284 = vrcp.f32 %v2352_v30  ;;  %v2304_v48 = vsel %vm2298_vm8, %v6962_v46, 0.0 }
 0x8b1   : > { %v2336_v13 = vshra.s32 %v2334_v12, 16  ;;  %v2335_v18 = vand.u32 65535, %v2334_v12  ;;  %v5556_v12 = vld [vmem:[%s6574_s4 + $0x20] sm:$0xf] }
 0x8b3   : > { %v2338_v14 = vcvt.s32.f32 %v2336_v13  ;;  %v2337_v20 = vcvt.s32.f32 %v2335_v18  ;;  %v5561_v13 = vor.u32 %v6072_v8, %v5558_v60  ;;  %v6107_v18 = vld [vmem:[%s6579_s8 + $0xf4] sm:$0xf0] }
 0x8b4   : > { %v6087_v8 = vld [vmem:[%s6579_s8 + $0x54] sm:$0xf0] }
 0x8b5   : > { %2339 = vmin.xlane.f32.xlu0 %v2338_v14  ;;  %2528 = vmatpush.bf16.msra.mxu3 %v5561_v13  ;;  %v6099_v60 = vld [vmem:[%s6579_s8 + $0xb4] sm:$0xf0] }
 0x8b6   : > { %v6964_v47 = vpop.eup %6284 }
 0x920   : > { %v2325_v15 = vpop.xlane.xlu2 %2324 }
 0x921   : > { %vm2326_vm11 = vcmp.eq.f32.partialorder %v2323_v10, %v2325_v15  ;;  %v2331_v25 = vcvt.f32.s32 %v2325_v15  ;;  %v5564_v10 = vld [vmem:[%s6574_s4 + $0x30] sm:$0xf]  ;;  %v5550_v15 = vld [vmem:[%s6574_s4 + $0x18] sm:$0xf0] }
 0x922   : > { %v2327_v17 = vsel %vm2326_vm11, %v2322_v16, inf  ;;  %v5565_v11 = vor.u32 %v6075_v36, %v5564_v10  ;;  %v5557_v16 = vor.u32 %v6073_v2, %v5556_v12  ;;  %v5672_v2 = vld [vmem:[%s6579_s8 + $0xc8] sm:$0xf0] }
 0x923   : > { %2328 = vmin.xlane.f32.xlu1 %v2327_v17  ;;  %v2332_v27 = vshll.u32 %v2331_v25, 16  ;;  %v5694_v17 = vld [vmem:[%s6579_s8 + $0xf0] sm:$0xf]  ;;  %v6105_v25 = vld [vmem:[%s6579_s8 + $0xe4] sm:$0xf0] }
 0x924   : > { %2513 = vmatpush.bf16.msrb.mxu2 %v5565_v11  ;;  %v5687_v30 = vor.u32 %v6105_v25, %v5686_v24 }
 0x928   : > { %v2340_v19 = vpop.xlane.xlu0 %2339  ;;  %2514 = vmatpush.bf16.msrb.mxu2 %v5557_v16 }
 0x929   : > { %vm2341_vm12 = vcmp.eq.f32.partialorder %v2338_v14, %v2340_v19  ;;  %v2346_v35 = vcvt.f32.s32 %v2340_v19  ;;  %v6070_v14 = vld [vmem:[%s6574_s4 + $0x14] sm:$0xf]  ;;  %v5695_v19 = vor.u32 %v6107_v18, %v5694_v17 }
 0x92a   : > { %v2342_v22 = vsel %vm2341_vm12, %v2337_v20, inf  ;;  %v5548_v20 = vld [vmem:[%s6574_s4 + $0x10] sm:$0xf] }
 0x92b   : > { %2343 = vmin.xlane.f32.xlu2 %v2342_v22  ;;  %v2347_v43 = vshll.u32 %v2346_v35, 16  ;;  %v6071_v22 = vld [vmem:[%s6574_s4 + $0x14] sm:$0xf0]  ;;  %2711 = vmatpush.bf16.msra.mxu1 %v5695_v19  ;;  %v5630_v35 = vld [vmem:[%s6579_s8 + $0x70] sm:$0xf] }
 0x92c   : > { %v6090_v19 = vld [vmem:[%s6579_s8 + $0x74] sm:$0xf] }
 0x92f   : > { %2712 = vmatpush.bf16.msra.mxu1 %v5687_v30 }
 0x996   : > { %v2329_v26 = vpop.xlane.xlu1 %2328 }
 0x997   : > { %v2330_v28 = vcvt.f32.s32 %v2329_v26  ;;  %v5553_v26 = vor.u32 %v6070_v14, %v5550_v15  ;;  %v6100_v14 = vld [vmem:[%s6579_s8 + $0xc4] sm:$0xf] }
 0x998   : > { %v5675_v18 = vor.u32 %v6100_v14, %v5672_v2  ;;  %v5640_v14 = vld [vmem:[%s6579_s8 + $0x88] sm:$0xf0] }
 0x999   : > { %v2333_v31 = vadd.s32 %v2332_v27, %v2330_v28  ;;  %v5542_v27 = vld [vmem:[%s6574_s4 + $0x8] sm:$0xf0]  ;;  %v6106_v28 = vld [vmem:[%s6579_s8 + $0xf4] sm:$0xf]  ;;  %2529 = vmatpush.bf16.msra.mxu3 %v5553_v26 }
 0x99b   : > { %vm2349_vm13 = vcmp.eq.s32.totalorder %v6701_v21, %v2333_v31  ;;  %v5549_v31 = vor.u32 %v6071_v22, %v5548_v20  ;;  %v5632_v20 = vld [vmem:[%s6579_s8 + $0x78] sm:$0xf0]  ;;  %v6098_v22 = vld [vmem:[%s6579_s8 + $0xb4] sm:$0xf] }
 0x99c   : > { %v2359_v37 = vsel %vm2349_vm13, inf, %v2307_v0  ;;  %v6959_v38 = vsel %vm2349_vm13, %v6952_v33, %v2303_v34  ;;  %v5540_v34 = vld [vmem:[%s6574_s4] sm:$0xf] }
 0x99d   : > { %v2361_v39 = vsel %vm2256_vm2, %v2359_v37, inf  ;;  %2515 = vmatpush.bf16.msrb.mxu2 %v5549_v31  ;;  %v6088_v31 = vld [vmem:[%s6579_s8 + $0x64] sm:$0xf] }
 0x99e   : > { %v2344_v42 = vpop.xlane.xlu2 %2343  ;;  %2362 = vmin.xlane.f32.xlu0 %v2361_v39  ;;  %v6069_v39 = vld [vmem:[%s6574_s4 + $0x4] sm:$0xf0] }
 0x99f   : > { %v2345_v44 = vcvt.f32.s32 %v2344_v42 }
 0x9a1   : > { %v2348_v45 = vadd.s32 %v2347_v43, %v2345_v44  ;;  %v5678_v43 = vld [vmem:[%s6579_s8 + $0xd0] sm:$0xf]  ;;  %v6103_v44 = vld [vmem:[%s6579_s8 + $0xd4] sm:$0xf0] }
 0x9a3   : > { %vm2350_vm14 = vcmp.eq.s32.totalorder %v6701_v21, %v2348_v45  ;;  %v5622_v45 = vld [vmem:[%s6579_s8 + $0x60] sm:$0xf] }
 0x9a4   : > { %v2360_v49 = vsel %vm2350_vm14, inf, %v2308_v7  ;;  %v6971_v50 = vsel %vm2350_vm14, %v6964_v47, %v2304_v48  ;;  %v5545_v48 = vor.u32 %v6068_v23, %v5542_v27  ;;  %v5664_v23 = vld [vmem:[%s6579_s8 + $0xb8] sm:$0xf0] }
 0x9a5   : > { %v2364_v58 = vsel %vm2256_vm2, %v2360_v49, inf }
 0x9a6   : > { %2365 = vmin.xlane.f32.xlu1 %v2364_v58  ;;  %v6089_v58 = vld [vmem:[%s6579_s8 + $0x64] sm:$0xf0]  ;;  %2530 = vmatpush.bf16.msra.mxu3 %v5545_v48 }
 0xa11   : > { %v6974_v41 = vpop.xlane.xlu0 %2362 }
 0xa12   : > { %vm2367_vm15 = vcmp.le.f32.partialorder %v2359_v37, %v6974_v41  ;;  %v6091_v37 = vld [vmem:[%s6579_s8 + $0x74] sm:$0xf0] }
 0xa13   : > { %v2369_v51 = vsel %vm2367_vm15, %v6701_v21, 8  ;;  %v5631_v42 = vor.u32 %v6091_v37, %v5630_v35  ;;  %v5616_v35 = vld [vmem:[%s6579_s8 + $0x58] sm:$0xf0] }
 0xa14   : > { %v2371_v52 = vsel %vm2256_vm2, %v2369_v51, 2147483647  ;;  %v5699_v51 = vor.u32 %v6106_v28, %v5696_v29  ;;  %v5635_v28 = vor.u32 %v6090_v19, %v5632_v20  ;;  %v5667_v29 = vor.u32 %v6098_v22, %v5664_v23  ;;  %v6077_v20 = vld [vmem:[%s6579_s8 + $0x4] sm:$0xf0]  ;;  %v6076_v22 = vld [vmem:[%s6579_s8 + $0x4] sm:$0xf] }
 0xa15   : > { %v2373_v53 = vshra.s32 %v2371_v52, 16  ;;  %v2372_v63 = vand.u32 65535, %v2371_v52  ;;  %v5541_v52 = vor.u32 %v6069_v39, %v5540_v34  ;;  %2697 = vmatpush.bf16.msrb.mxu0 %v5631_v42  ;;  %v5624_v34 = vld [vmem:[%s6579_s8 + $0x68] sm:$0xf0]  ;;  %v5606_v39 = vld [vmem:[%s6579_s8 + $0x40] sm:$0xf] }
 0xa16   : > { %2739 = vmatpush.bf16.msrb.mxu3 %v5699_v51  ;;  %v6085_v42 = vld [vmem:[%s6579_s8 + $0x44] sm:$0xf0]  ;;  %v6096_v51 = vld [vmem:[%s6579_s8 + $0xa4] sm:$0xf] }
 0xa17   : > { %v2375_v56 = vcvt.s32.f32 %v2373_v53  ;;  %v2374_v1 = vcvt.s32.f32 %v2372_v63  ;;  %v5670_v53 = vld [vmem:[%s6579_s8 + $0xc0] sm:$0xf]  ;;  %v2403_v63 = vadd.f32 1e-08, %v6974_v41  ;;  %2516 = vmatpush.bf16.msrb.mxu2 %v5541_v52  ;;  %v5615_v41 = vor.u32 %v6087_v8, %v5614_v55 }
 0xa18   : > { %v5590_v8 = vld [vmem:[%s6579_s8 + $0x20] sm:$0xf] }
 0xa19   : > { %2376 = vmin.xlane.f32.xlu2 %v2375_v56  ;;  %v6979_v57 = vpop.xlane.xlu1 %2365  ;;  %6286 = vrcp.f32 %v2403_v63  ;;  %v5600_v63 = vld [vmem:[%s6579_s8 + $0x38] sm:$0xf0] }
 0xa1a   : > { %vm2368_vm3 = vcmp.le.f32.partialorder %v2360_v49, %v6979_v57  ;;  %v5679_v49 = vor.u32 %v6103_v44, %v5678_v43  ;;  %v2404_v10 = vadd.f32 1e-08, %v6979_v57  ;;  %v6084_v43 = vld [vmem:[%s6579_s8 + $0x44] sm:$0xf]  ;;  %v5607_v44 = vor.u32 %v6085_v42, %v5606_v39 }
 0xa1b   : > { %v2370_v40 = vsel %vm2368_vm3, %v6701_v21, 8 }
 0xa1c   : > { %v2386_v59 = vsel %vm2256_vm2, %v2370_v40, 2147483647  ;;  %v6104_v40 = vld [vmem:[%s6579_s8 + $0xe4] sm:$0xf]  ;;  %2713 = vmatpush.bf16.msra.mxu1 %v5679_v49  ;;  %6288 = vrcp.f32 %v2404_v10  ;;  %v5654_v49 = vld [vmem:[%s6579_s8 + $0xa0] sm:$0xf] }
 0xa1d   : > { %v2388_v61 = vshra.s32 %v2386_v59, 16  ;;  %v2387_v4 = vand.u32 65535, %v2386_v59  ;;  %v5688_v59 = vld [vmem:[%s6579_s8 + $0xe8] sm:$0xf0] }
 0xa1e   : > { %v5592_v10 = vld [vmem:[%s6579_s8 + $0x28] sm:$0xf0] }
 0xa1f   : > { %v2390_v62 = vcvt.s32.f32 %v2388_v61  ;;  %v2389_v6 = vcvt.s32.f32 %v2387_v4  ;;  %v5623_v61 = vor.u32 %v6089_v58, %v5622_v45  ;;  %v7046_v24 = vpop.eup %6286  ;;  %v5608_v45 = vld [vmem:[%s6579_s8 + $0x48] sm:$0xf0]  ;;  %v6097_v58 = vld [vmem:[%s6579_s8 + $0xa4] sm:$0xf0] }
 0xa20   : > { %v5611_v48 = vor.u32 %v6084_v43, %v5608_v45  ;;  %v5655_v52 = vor.u32 %v6097_v58, %v5654_v49  ;;  %v2899_v49 = vld [vmem:[%s1257_s18 + $0x10] sm:$0xff]  ;;  %v2900_v58 = vld [vmem:[%s1257_s18 + $0x18] sm:$0xff] }
 0xa21   : > { %2391 = vmin.xlane.f32.xlu0 %v2390_v62  ;;  %2698 = vmatpush.bf16.msrb.mxu0 %v5623_v61 }
 0xa22   : > { %v7048_v25 = vpop.eup %6288 }
 0xa25   : > { %2699 = vmatpush.bf16.msrb.mxu0 %v5615_v41  ;;  %v6081_v41 = vld [vmem:[%s6579_s8 + $0x24] sm:$0xf0] }
 0xa29   : > { %2700 = vmatpush.bf16.msrb.mxu0 %v5607_v44 }
 0xa8c   : > { %v6984_v0 = vpop.xlane.xlu2 %2376 }
 0xa8d   : > { %vm2378_vm4 = vcmp.eq.f32.partialorder %v2375_v56, %v6984_v0  ;;  %v6101_v56 = vld [vmem:[%s6579_s8 + $0xc4] sm:$0xf0] }
 0xa8e   : > { %v2379_v3 = vsel %vm2378_vm4, %v2374_v1, inf  ;;  %v5671_v4 = vor.u32 %v6101_v56, %v5670_v53  ;;  %v5656_v53 = vld [vmem:[%s6579_s8 + $0xa8] sm:$0xf0]  ;;  %v5598_v56 = vld [vmem:[%s6579_s8 + $0x30] sm:$0xf] }
 0xa8f   : > { %2380 = vmin.xlane.f32.xlu1 %v2379_v3  ;;  %v6102_v3 = vld [vmem:[%s6579_s8 + $0xd4] sm:$0xf] }
 0xa90   : > { %2714 = vmatpush.bf16.msra.mxu1 %v5671_v4  ;;  %v5683_v13 = vor.u32 %v6102_v3, %v5680_v54  ;;  %v5646_v3 = vld [vmem:[%s6579_s8 + $0x90] sm:$0xf]  ;;  %v6095_v4 = vld [vmem:[%s6579_s8 + $0x94] sm:$0xf0]  ;;  %v5648_v54 = vld [vmem:[%s6579_s8 + $0x98] sm:$0xf0] }
 0xa94   : > { %v6987_v5 = vpop.xlane.xlu0 %2391 }
 0xa95   : > { %vm2393_vm5 = vcmp.eq.f32.partialorder %v2390_v62, %v6987_v5  ;;  %v7025_v62 = vld [vmem:[%s1292_s2] sm:$0xff]  ;;  %v2398_v12 = vcvt.f32.s32 %v6987_v5  ;;  %s8223_s2 = sld [smem:[#allocation8_spill]] }
 0xa96   : > { %v2394_v7 = vsel %vm2393_vm5, %v2389_v6, inf  ;;  %v2383_v6 = vcvt.f32.s32 %v6984_v0  ;;  %5571 = vmatmul.msk.bf16.vlgmr.msra.gmra.mxu3 %vm2505_vm6, %v7025_v62  ;;  %v5663_v0 = vor.u32 %v6099_v60, %v5662_v9  ;;  %v6080_v9 = vld [vmem:[%s6579_s8 + $0x24] sm:$0xf]  ;;  %v5591_v60 = vor.u32 %v6081_v41, %v5590_v8  ;;  %v6119_v8 = vld [vmem:[%s8222_s15 + $0x58] sm:$0xff]  ;;  %v6109_v41 = vld [vmem:[%s8222_s15 + $0x8] sm:$0xff] }
 0xa97   : > { %2395 = vmin.xlane.f32.xlu2 %v2394_v7  ;;  %v5691_v7 = vor.u32 %v6104_v40, %v5688_v59  ;;  %v2399_v16 = vshll.u32 %v2398_v12, 16  ;;  %v6083_v40 = vld [vmem:[%s6579_s8 + $0x34] sm:$0xf0]  ;;  %v5659_v59 = vor.u32 %v6096_v51, %v5656_v53  ;;  %v6092_v12 = vld [vmem:[%s6579_s8 + $0x84] sm:$0xf]  ;;  %v2995_v53 = vmul.f32 %v2900_v58, %v2900_v58 }
 0xa98   : > { %v2384_v11 = vshll.u32 %v2383_v6, 16  ;;  %2715 = vmatpush.bf16.msra.mxu1 %v5663_v0  ;;  %v5599_v61 = vor.u32 %v6083_v40, %v5598_v56  ;;  %v6094_v6 = vld [vmem:[%s6579_s8 + $0x94] sm:$0xf]  ;;  %v5638_v0 = vld [vmem:[%s6579_s8 + $0x80] sm:$0xf]  ;;  %v5643_v2 = vor.u32 %v6092_v12, %v5640_v14  ;;  %v6115_v56 = vld [vmem:[%s8222_s15 + $0x38] sm:$0xff] }
 0xa99   : > { %2740 = vmatpush.bf16.msrb.mxu3 %v5691_v7  ;;  %v5647_v7 = vor.u32 %v6095_v4, %v5646_v3  ;;  %v5651_v55 = vor.u32 %v6094_v6, %v5648_v54  ;;  %v6122_v3 = vld [vmem:[%s8222_s15 + $0x70] sm:$0xff]  ;;  %v6112_v4 = vld [vmem:[%s8222_s15 + $0x20] sm:$0xff]  ;;  %v6121_v6 = vld [vmem:[%s8222_s15 + $0x68] sm:$0xff] }
 0xa9a   : > { %2701 = vmatpush.bf16.msrb.mxu0 %v5599_v61  ;;  %v3005_v61 = vsel %vm1403_vm1, %v2995_v53, 0.0  ;;  %v6120_v54 = vld [vmem:[%s8222_s15 + $0x60] sm:$0xff] }
 0xa9c   : > { %2716 = vmatpush.bf16.msra.mxu1 %v5655_v52  ;;  %v2994_v52 = vmul.f32 %v2899_v49, %v2899_v49 }
 0xa9d   : > { %2741 = vmatpush.bf16.msrb.mxu3 %v5683_v13 }
 0xa9e   : > { %2702 = vmatpush.bf16.msrb.mxu0 %v5591_v60  ;;  %v6108_v60 = vld [vmem:[%s8222_s15] sm:$0xff] }
 0xaa0   : > { %2717 = vmatpush.bf16.msra.mxu1 %v5647_v7  ;;  %v6111_v7 = vld [vmem:[%s8222_s15 + $0x18] sm:$0xff] }
 0xaa1   : > { %2742 = vmatpush.bf16.msrb.mxu3 %v5675_v18  ;;  %v5584_v18 = vld [vmem:[%s6579_s8 + $0x18] sm:$0xf0] }
 0xaa5   : > { %2743 = vmatpush.bf16.msrb.mxu3 %v5667_v29  ;;  %v2357_v29 = vadd.f32 %v6952_v33, %v6950_v32 }
 0xaa9   : > { %2744 = vmatpush.bf16.msrb.mxu3 %v5659_v59  ;;  %v3002_v59 = vsel %vm1403_vm1, %v2994_v52, 0.0 }
 0xaaa   : > { %3003 = vadd.xlane.f32.xlu2 %v3002_v59 }
 0xaad   : > { %2745 = vmatpush.bf16.msrb.mxu3 %v5651_v55  ;;  %v6110_v55 = vld [vmem:[%s8222_s15 + $0x10] sm:$0xff] }
 0xab1   : > { %2746 = vmatpush.bf16.msrb.mxu3 %v5643_v2 }
 0xb02   : > { %v2381_v1 = vpop.xlane.xlu1 %2380 }
 0xb03   : > { %v2382_v36 = vcvt.f32.s32 %v2381_v1 }
 0xb05   : > { %v2385_v57 = vadd.s32 %v2384_v11, %v2382_v36  ;;  %v5595_v36 = vor.u32 %v6080_v9, %v5592_v10  ;;  %v6093_v11 = vld [vmem:[%s6579_s8 + $0x84] sm:$0xf0]  ;;  %v6118_v9 = vld [vmem:[%s8222_s15 + $0x50] sm:$0xff] }
 0xb06   : > { %v5639_v13 = vor.u32 %v6093_v11, %v5638_v0  ;;  %v6117_v10 = vld [vmem:[%s8222_s15 + $0x48] sm:$0xff]  ;;  %v6116_v11 = vld [vmem:[%s8222_s15 + $0x40] sm:$0xff] }
 0xb07   : > { %vm2401_vm7 = vcmp.eq.s32.totalorder %v6701_v21, %v2385_v57  ;;  %v5582_v57 = vld [vmem:[%s6579_s8 + $0x10] sm:$0xf] }
 0xb08   : > { %v2407_v26 = vsel %vm2401_vm7, %v7046_v24, %v6959_v38  ;;  %v5627_v38 = vor.u32 %v6088_v31, %v5624_v34  ;;  %2718 = vmatpush.bf16.msra.mxu1 %v5639_v13  ;;  %v2409_v31 = vadd.f32 %v7046_v24, %v2357_v29  ;;  %v2897_v24 = vld [vmem:[%s1257_s18] sm:$0xff] }
 0xb0a   : > { %v2396_v15 = vpop.xlane.xlu2 %2395  ;;  %6290 = vrcp.f32 %v2409_v31 }
 0xb0b   : > { %v2397_v17 = vcvt.f32.s32 %v2396_v15  ;;  %v6079_v15 = vld [vmem:[%s6579_s8 + $0x14] sm:$0xf0] }
 0xb0d   : > { %v2400_v5 = vadd.s32 %v2399_v16, %v2397_v17  ;;  %v6078_v16 = vld [vmem:[%s6579_s8 + $0x14] sm:$0xf]  ;;  %v5583_v17 = vor.u32 %v6079_v15, %v5582_v57 }
 0xb0e   : > { %v5587_v19 = vor.u32 %v6078_v16, %v5584_v18  ;;  %v2165_v18 = vld [vmem:[%s8223_s2] sm:$0x3] }
 0xb0f   : > { %vm2402_vm8 = vcmp.eq.s32.totalorder %v6701_v21, %v2400_v5  ;;  %2703 = vmatpush.bf16.msrb.mxu0 %v5583_v17  ;;  %v5574_v5 = vld [vmem:[%s6579_s8] sm:$0xf] }
 0xb10   : > { %v2408_v27 = vsel %vm2402_vm8, %v7048_v25, %v6971_v50  ;;  %v6086_v50 = vld [vmem:[%s6579_s8 + $0x54] sm:$0xf]  ;;  %v5575_v23 = vor.u32 %v6077_v20, %v5574_v5 }
 0xb11   : > { %v2411_v30 = vpack.c.bf16 %v2408_v27, %v2407_v26  ;;  %v5619_v37 = vor.u32 %v6086_v50, %v5616_v35  ;;  %v5576_v26 = vld [vmem:[%s6579_s8 + $0x8] sm:$0xf0]  ;;  %v6291_v35 = vpop.eup %6290 }
 0xb12   : > { %v5579_v27 = vor.u32 %v6076_v22, %v5576_v26 }
 0xb13   : > { %5532 = vmatmul.msk.bf16.vlgmr.msra.gmra.mxu2 %vm2256_vm2, %v2411_v30  ;;  %5533 = vmatmul.msk.bf16.vlgmr.msrb.gmra.mxu1 %vm2256_vm2, %v2411_v30  ;;  %v2358_v30 = vadd.f32 %v6964_v47, %v6962_v46  ;;  %vm3009_vm2 = vcmask 124928  }
 0xb14   : > { %2725 = vmatpush.bf16.msra.mxu2 %v5635_v28  ;;  %2704 = vmatpush.bf16.msrb.mxu0 %v5575_v23  ;;  %v7097_v28 = vld [vmem:[%s1274_s7] sm:$0x7]  ;;  %v2754_v23 = vperm.slane %v2165_v18, 0  ;;  %s8225_s7 = sld [smem:[#allocation5_spill]] }
 0xb15   : > { %v2410_v34 = vadd.f32 %v7048_v25, %v2358_v30  ;;  %v2992_v25 = vmul.f32 %v2897_v24, %v2897_v24  ;;  %v3008_v12 = vmul.f32 %v7097_v28, %v7097_v28 }
 0xb17   : > { %6292 = vrcp.f32 %v2410_v34  ;;  %v2996_v45 = vsel %vm1403_vm1, %v2992_v25, 0.0  ;;  %v3010_v2 = vsel %vm3009_vm2, %v3008_v12, 0.0 }
 0xb18   : > { %2726 = vmatpush.bf16.msra.mxu2 %v5627_v38  ;;  %2997 = vadd.xlane.f32.xlu0 %v2996_v45  ;;  %v3011_v16 = vrot.slane %v3010_v2, 4 }
 0xb19   : > { %2867 = vmatpush.bf16.msra.mxu0 %v6115_v56 }
 0xb1a   : > { %v3012_v20 = vadd.f32 %v3011_v16, %v3010_v2  ;;  %s1270_s2 = scalar_lea.vmem %s8225_s7, %s6687_s28  ;;  %s8227_s28 = sld [smem:[#allocation12_spill]] }
 0xb1b   : > { %s8228_s7 = sld [smem:[#allocation11_spill]] }
 0xb1c   : > { %2727 = vmatpush.bf16.msra.mxu2 %v5619_v37  ;;  %v3013_v31 = vrot.slane %v3012_v20, 2 }
 0xb1d   : > { %v6293_v37 = vpop.eup %6292 }
 0xb20   : > { %2728 = vmatpush.bf16.msra.mxu2 %v5611_v48  ;;  %v2898_v48 = vld [vmem:[%s1257_s18 + $0x8] sm:$0xff]  ;;  %3006 = vadd.xlane.f32.xlu0 %v3005_v61  ;;  %s5980_s18 = sshll.u32 %s8243_s22, 6 }
 0xb21   : > { %v2993_v51 = vmul.f32 %v2898_v48, %v2898_v48 }
 0xb23   : > { %5570 = vmatmul.msk.bf16.vlgmr.msrb.gmra.mxu2 %vm2505_vm6, %v7025_v62  ;;  %v6082_v62 = vld [vmem:[%s6579_s8 + $0x34] sm:$0xf]  ;;  %v2999_v40 = vsel %vm1403_vm1, %v2993_v51, 0.0 }
 0xb24   : > { %v5603_v1 = vor.u32 %v6082_v62, %v5600_v63  ;;  %v6114_v62 = vld [vmem:[%s8222_s15 + $0x30] sm:$0xff]  ;;  %3000 = vadd.xlane.f32.xlu1 %v2999_v40  ;;  %v6123_v63 = vld [vmem:[%s8222_s15 + $0x78] sm:$0xff] }
 0xb25   : > { %2868 = vmatpush.bf16.msra.mxu0 %v6114_v62  ;;  %2881 = vmatpush.bf16.msrb.mxu1 %v6123_v63 }
 0xb26   : > { %2729 = vmatpush.bf16.msra.mxu2 %v5603_v1  ;;  %v6113_v1 = vld [vmem:[%s8222_s15 + $0x28] sm:$0xff] }
 0xb29   : > { %2869 = vmatpush.bf16.msra.mxu0 %v6113_v1  ;;  %2882 = vmatpush.bf16.msrb.mxu1 %v6122_v3 }
 0xb2a   : > { %2730 = vmatpush.bf16.msra.mxu2 %v5595_v36  ;;  %v2532_v36 = vpop.f32.mrf.mxu3 }
 0xb2d   : > { %2870 = vmatpush.bf16.msra.mxu0 %v6112_v4  ;;  %2883 = vmatpush.bf16.msrb.mxu1 %v6121_v6 }
 0xb2e   : > { %2731 = vmatpush.bf16.msra.mxu2 %v5587_v19 }
 0xb31   : > { %2871 = vmatpush.bf16.msra.mxu0 %v6111_v7  ;;  %2884 = vmatpush.bf16.msrb.mxu1 %v6120_v54  ;;  %v3004_v54 = vpop.xlane.xlu2 %3003 }
 0xb32   : > { %2732 = vmatpush.bf16.msra.mxu2 %v5579_v27  ;;  %v2534_v13 = vpop.f32.mrf.mxu3 }
 0xb35   : > { %2872 = vmatpush.bf16.msra.mxu0 %v6110_v55  ;;  %2885 = vmatpush.bf16.msrb.mxu1 %v6119_v8 }
 0xb36   : > { %5764 = vmatpush.msk.msrb.mxu2 %vm1407_vm0, %v7097_v28 }
 0xb39   : > { %2873 = vmatpush.bf16.msra.mxu0 %v6109_v41  ;;  %2886 = vmatpush.bf16.msrb.mxu1 %v6118_v9 }
 0xb3d   : > { %2874 = vmatpush.bf16.msra.mxu0 %v6108_v60  ;;  %2887 = vmatpush.bf16.msrb.mxu1 %v6117_v10 }
 0xb41   : > { %2888 = vmatpush.bf16.msrb.mxu1 %v6116_v11 }
 0xb90   : > { %v2447_v38 = vpop.f32.mrf.mxu1 }
 0xb91   : > { %v2455_v42 = vmul.f32 %v6291_v35, %v2447_v38 }
 0xb96   : > { %v2433_v50 = vpop.f32.mrf.mxu2 }
 0xb97   : > { %v2454_v33 = vmul.f32 %v6291_v35, %v2433_v50  ;;  %v2755_v50 = vperm.slane %v2165_v18, 1  ;;  %v3001_v62 = vpop.xlane.xlu1 %3000 }
 0xb98   : > { %v2449_v39 = vpop.f32.mrf.mxu1 }
 0xb99   : > { %v2457_v43 = vmul.f32 %v6293_v37, %v2449_v39  ;;  %v3014_v39 = vadd.f32 %v3013_v31, %v3012_v20 }
 0xb9b   : > { %v2459_v44 = vpack.c.bf16 %v2457_v43, %v2455_v42  ;;  %v3015_v25 = vrot.slane %v3014_v39, 1 }
 0xb9d   : > { %2719 = vmatmul.bf16.vlgmr.msra.gmra.mxu1 %v2459_v44  ;;  %2747 = vmatmul.bf16.vlgmr.msrb.gmra.mxu3 %v2459_v44  ;;  %v3016_v53 = vadd.f32 %v3015_v25, %v3014_v39 }
 0xb9e   : > { %v2435_v32 = vpop.f32.mrf.mxu2 }
 0xb9f   : > { %v2456_v46 = vmul.f32 %v6293_v37, %v2435_v32 }
 0xba1   : > { %v2458_v47 = vpack.c.bf16 %v2456_v46, %v2454_v33 }
 0xba3   : > { %2705 = vmatmul.bf16.vlgmr.msrb.gmra.mxu0 %v2458_v47  ;;  %2733 = vmatmul.bf16.vlgmr.msra.gmra.mxu2 %v2458_v47 }
 0xba6   : > { %v2518_v0 = vpop.f32.mrf.mxu2 }
 0xbae   : > { %v2520_v14 = vpop.f32.mrf.mxu2 }
 0xbb3   : > { %5765 = vmatmul.msk.f32.vlgmr.msrb.gmra.mxu2 %vm1403_vm1, %v2897_v24 }
 0xbbb   : > { %5766 = vmatmul.msk.f32.gmra.mxu2 %vm1403_vm1, %v2898_v48 }
 0xbc3   : > { %5767 = vmatmul.msk.f32.gmra.mxu2 %vm1403_vm1, %v2899_v49 }
 0xbcb   : > { %5768 = vmatmul.msk.f32.gmra.mxu2 %vm1403_vm1, %v2900_v58  ;;  %v2998_v58 = vpop.xlane.xlu0 %2997 }
 0xc1a   : > { %v2720_v57 = vpop.f32.mrf.mxu1 }
 0xc20   : > { %v2706_v15 = vpop.f32.mrf.mxu0  ;;  %v2748_v19 = vpop.f32.mrf.mxu3 }
 0xc21   : > { %v2707_v17 = vadd.f32 %v2706_v15, %v2518_v0 }
 0xc22   : > { %v2722_v30 = vpop.f32.mrf.mxu1 }
 0xc23   : > { %v2721_v22 = vadd.f32 %v2720_v57, %v2707_v17 }
 0xc25   : > { %v2758_v28 = vadd.f32 %v2754_v23, %v2721_v22 }
 0xc26   : > { %v2734_v5 = vpop.f32.mrf.mxu2 }
 0xc27   : > { %v2735_v27 = vadd.f32 %v2734_v5, %v2532_v36  ;;  %v2762_v42 = vmax.f32 %v2758_v28, 0.0  ;;  %v3007_v36 = vpop.xlane.xlu0 %3006 }
 0xc28   : > { %v2708_v26 = vpop.f32.mrf.mxu0  ;;  %v2750_v32 = vpop.f32.mrf.mxu3 }
 0xc29   : > { %v2709_v29 = vadd.f32 %v2708_v26, %v2520_v14  ;;  %v2749_v38 = vadd.f32 %v2748_v19, %v2735_v27  ;;  %v6263_v19 = vld [vmem:[%s8224_s1] ss:$0 sm:$0xff]  ;;  %s7311_s1 = scalar_lea.vmem %s8226_s10, %s5980_s18  ;;  %s8229_s10 = sld [smem:[#allocation7_spill]] }
 0xc2b   : > { %v2723_v34 = vadd.f32 %v2722_v30, %v2709_v29  ;;  %v2759_v33 = vadd.f32 %v2755_v50, %v2749_v38 }
 0xc2d   : > { %v2760_v35 = vadd.f32 %v2754_v23, %v2723_v34  ;;  %v2763_v45 = vmax.f32 %v2759_v33, 0.0 }
 0xc2e   : > { %v2736_v37 = vpop.f32.mrf.mxu2 }
 0xc2f   : > { %v2764_v43 = vmax.f32 %v2760_v35, 0.0  ;;  %v2737_v44 = vadd.f32 %v2736_v37, %v2534_v13  ;;  %s1287_s18 = scalar_lea.vmem %s8229_s10, %s5982_s16  ;;  %s8230_s16 = sld [smem:[#allocation14_spill]] }
 0xc30   : > { %s8233_s10 = sld [smem:[#allocation16_spill]] }
 0xc31   : > { %v2766_v46 = vpack.c.bf16 %v2764_v43, %v2762_v42  ;;  %v2751_v47 = vadd.f32 %v2750_v32, %v2737_v44 }
 0xc33   : > { %v2761_v24 = vadd.f32 %v2755_v50, %v2751_v47  ;;  %2875 = vmatmul.bf16.vlgmr.msra.gmra.mxu0 %v2766_v46 }
 0xc35   : > { %v2765_v48 = vmax.f32 %v2761_v24, 0.0 }
 0xc36   : > { %v2980_v49 = vpop.f32.mrf.mxu2 }
 0xc37   : > { %v2767_v51 = vpack.c.bf16 %v2765_v48, %v2763_v45  ;;  %v3017_v52 = vmul.f32 2.0, %v2980_v49 }
 0xc39   : > { %v3021_v56 = vsub.f32 %v2998_v58, %v3017_v52  ;;  %2889 = vmatmul.bf16.vlgmr.msrb.gmra.mxu1 %v2767_v51 }
 0xc3b   : > { %v3025_v40 = vadd.f32 %v3021_v56, %v3016_v53 }
 0xc3d   : > { %v7138_v59 = vmax.f32 %v3025_v40, 0.0 }
 0xc3e   : > { %v2983_v61 = vpop.f32.mrf.mxu2 }
 0xc3f   : > { %v3018_v63 = vmul.f32 2.0, %v2983_v61  ;;  %v3034_v1 = vsel %vm3033_vm9, %v7138_v59, inf }
 0xc40   : > { %3035 = vmin.xlane.f32.xlu1 %v3034_v1 }
 0xc41   : > { %v3022_v3 = vsub.f32 %v3001_v62, %v3018_v63 }
 0xc43   : > { %v3026_v4 = vadd.f32 %v3022_v3, %v3016_v53 }
 0xc45   : > { %v7142_v6 = vmax.f32 %v3026_v4, 0.0 }
 0xc46   : > { %v2986_v7 = vpop.f32.mrf.mxu2 }
 0xc47   : > { %v3019_v55 = vmul.f32 2.0, %v2986_v7  ;;  %v3037_v8 = vsel %vm3033_vm9, %v7142_v6, inf }
 0xc48   : > { %3038 = vmin.xlane.f32.xlu2 %v3037_v8 }
 0xc49   : > { %v3023_v41 = vsub.f32 %v3004_v54, %v3019_v55 }
 0xc4b   : > { %v3027_v9 = vadd.f32 %v3023_v41, %v3016_v53 }
 0xc4d   : > { %v7146_v60 = vmax.f32 %v3027_v9, 0.0 }
 0xc4e   : > { %v2989_v10 = vpop.f32.mrf.mxu2 }
 0xc4f   : > { %v3020_v0 = vmul.f32 2.0, %v2989_v10  ;;  %v3040_v11 = vsel %vm3033_vm9, %v7146_v60, inf }
 0xc50   : > { %3041 = vmin.xlane.f32.xlu0 %v3040_v11 }
 0xc51   : > { %v3024_v12 = vsub.f32 %v3007_v36, %v3020_v0 }
 0xc53   : > { %v3028_v13 = vadd.f32 %v3024_v12, %v3016_v53 }
 0xc55   : > { %v7150_v14 = vmax.f32 %v3028_v13, 0.0 }
 0xc57   : > { %v3043_v2 = vsel %vm3033_vm9, %v7150_v14, inf }
 0xc58   : > { %3044 = vmin.xlane.f32.xlu1 %v3043_v2 }
 0xcb0   : > { %v2876_v57 = vpop.f32.mrf.mxu0 }
 0xcb1   : > { %v2877_v23 = vadd.f32 %v6263_v19, %v2876_v57 }
 0xcb3   : > { %v7154_v15 = vpop.xlane.xlu1 %3035 }
 0xcb4   : > { %vm3046_vm10 = vcmp.le.f32.partialorder %v7138_v59, %v7154_v15 }
 0xcb5   : > { %v3050_v16 = vsel %vm3046_vm10, %v6701_v21, 16 }
 0xcb6   : > { %v2890_v17 = vpop.f32.mrf.mxu1  ;;  %v3054_v18 = vsel %vm3033_vm9, %v3050_v16, 2147483647 }
 0xcb7   : > { %v3056_v5 = vshra.s32 %v3054_v18, 16  ;;  %v2891_v27 = vadd.f32 %v2890_v17, %v2877_v23  ;;  %v3055_v48 = vand.u32 65535, %v3054_v18 }
 0xcb8   : > { %v2878_v22 = vpop.f32.mrf.mxu0 }
 0xcb9   : > { %v3058_v20 = vcvt.s32.f32 %v3056_v5  ;;  %v2879_v29 = vadd.f32 %v6263_v19, %v2878_v22  ;;  %v2895_v50 = vmax.f32 %v2891_v27, 0.0  ;;  %v3057_v58 = vcvt.s32.f32 %v3055_v48 }
 0xcbb   : > { %3059 = vmin.xlane.f32.xlu2 %v3058_v20  ;;  %v7161_v26 = vpop.xlane.xlu2 %3038 }
 0xcbc   : > { %vm3047_vm11 = vcmp.le.f32.partialorder %v7142_v6, %v7161_v26 }
 0xcbd   : > { %v3051_v30 = vsel %vm3047_vm11, %v6701_v21, 16 }
 0xcbe   : > { %v2892_v31 = vpop.f32.mrf.mxu1  ;;  %v3069_v28 = vsel %vm3033_vm9, %v3051_v30, 2147483647 }
 0xcbf   : > { %v2893_v34 = vadd.f32 %v2892_v31, %v2879_v29  ;;  %v3071_v38 = vshra.s32 %v3069_v28, 16  ;;  %v3070_v52 = vand.u32 65535, %v3069_v28 }
 0xcc1   : > { %v2896_v35 = vmax.f32 %v2893_v34, 0.0  ;;  %v3073_v37 = vcvt.s32.f32 %v3071_v38  ;;  %v3072_v56 = vcvt.s32.f32 %v3070_v52 }
 0xcc3   : > { %v3344_v39 = vpack.c.bf16 %v2896_v35, %v2895_v50  ;;  %3074 = vmin.xlane.f32.xlu0 %v3073_v37  ;;  %v7167_v42 = vpop.xlane.xlu0 %3041 }
 0xcc4   : > { %vm3048_vm12 = vcmp.le.f32.partialorder %v7146_v60, %v7167_v42 }
 0xcc5   : > { %v3052_v43 = vsel %vm3048_vm12, %v6701_v21, 16  ;;  %3358 = vmatpush.bf16.msra.mxu3 %v3344_v39 }
 0xcc6   : > { %v3084_v44 = vsel %vm3033_vm9, %v3052_v43, 2147483647 }
 0xcc7   : > { %v3086_v32 = vshra.s32 %v3084_v44, 16  ;;  %v3085_v61 = vand.u32 65535, %v3084_v44 }
 0xcc9   : > { %v3088_v33 = vcvt.s32.f32 %v3086_v32  ;;  %v3087_v63 = vcvt.s32.f32 %v3085_v61 }
 0xccb   : > { %3089 = vmin.xlane.f32.xlu1 %v3088_v33  ;;  %v7173_v46 = vpop.xlane.xlu1 %3044 }
 0xccc   : > { %vm3049_vm13 = vcmp.le.f32.partialorder %v7150_v14, %v7173_v46 }
 0xccd   : > { %v3053_v47 = vsel %vm3049_vm13, %v6701_v21, 16 }
 0xcce   : > { %v3099_v24 = vsel %vm3033_vm9, %v3053_v47, 2147483647 }
 0xccf   : > { %v3101_v25 = vshra.s32 %v3099_v24, 16  ;;  %v3100_v3 = vand.u32 65535, %v3099_v24 }
 0xcd1   : > { %v3103_v45 = vcvt.s32.f32 %v3101_v25  ;;  %v3102_v7 = vcvt.s32.f32 %v3100_v3 }
 0xcd3   : > { %3104 = vmin.xlane.f32.xlu2 %v3103_v45 }
 0xd2e   : > { %v3060_v49 = vpop.xlane.xlu2 %3059 }
 0xd2f   : > { %vm3061_vm14 = vcmp.eq.f32.partialorder %v3058_v20, %v3060_v49  ;;  %v3066_v55 = vcvt.f32.s32 %v3060_v49 }
 0xd30   : > { %v3062_v51 = vsel %vm3061_vm14, %v3057_v58, inf }
 0xd31   : > { %3063 = vmin.xlane.f32.xlu0 %v3062_v51  ;;  %v3067_v41 = vshll.u32 %v3066_v55, 16 }
 0xd36   : > { %v3075_v53 = vpop.xlane.xlu0 %3074 }
 0xd37   : > { %vm3076_vm15 = vcmp.eq.f32.partialorder %v3073_v37, %v3075_v53  ;;  %v3081_v36 = vcvt.f32.s32 %v3075_v53 }
 0xd38   : > { %v3077_v40 = vsel %vm3076_vm15, %v3072_v56, inf }
 0xd39   : > { %3078 = vmin.xlane.f32.xlu1 %v3077_v40  ;;  %v3082_v13 = vshll.u32 %v3081_v36, 16 }
 0xd3e   : > { %v3090_v62 = vpop.xlane.xlu1 %3089 }
 0xd3f   : > { %vm3091_vm3 = vcmp.eq.f32.partialorder %v3088_v33, %v3090_v62  ;;  %v3096_v16 = vcvt.f32.s32 %v3090_v62 }
 0xd40   : > { %v3092_v1 = vsel %vm3091_vm3, %v3087_v63, inf }
 0xd41   : > { %3093 = vmin.xlane.f32.xlu2 %v3092_v1  ;;  %v3097_v19 = vshll.u32 %v3096_v16, 16 }
 0xd46   : > { %v3105_v4 = vpop.xlane.xlu2 %3104 }
 0xd47   : > { %vm3106_vm4 = vcmp.eq.f32.partialorder %v3103_v45, %v3105_v4  ;;  %v3111_v22 = vcvt.f32.s32 %v3105_v4 }
 0xd48   : > { %v3107_v54 = vsel %vm3106_vm4, %v3102_v7, inf }
 0xd49   : > { %3108 = vmin.xlane.f32.xlu0 %v3107_v54  ;;  %v3112_v29 = vshll.u32 %v3111_v22, 16 }
 0xda4   : > { %v3064_v8 = vpop.xlane.xlu0 %3063 }
 0xda5   : > { %v3065_v9 = vcvt.f32.s32 %v3064_v8 }
 0xda7   : > { %v7179_v10 = vadd.s32 %v3067_v41, %v3065_v9 }
 0xda9   : > { %vm3114_vm5 = vcmp.eq.s32.totalorder %v6701_v21, %v7179_v10 }
 0xdaa   : > { %v7187_v0 = vsel %vm3114_vm5, inf, %v7138_v59 }
 0xdab   : > { %v3138_v11 = vsel %vm3033_vm9, %v7187_v0, inf }
 0xdac   : > { %3139 = vmin.xlane.f32.xlu1 %v3138_v11  ;;  %v3079_v12 = vpop.xlane.xlu1 %3078  ;;  %v3118_v11 = vadd.f32 1e-08, %v7154_v15 }
 0xdad   : > { %v3080_v2 = vcvt.f32.s32 %v3079_v12 }
 0xdae   : > { %6294 = vrcp.f32 %v3118_v11 }
 0xdaf   : > { %v7191_v57 = vadd.s32 %v3082_v13, %v3080_v2 }
 0xdb1   : > { %vm3115_vm7 = vcmp.eq.s32.totalorder %v6701_v21, %v7191_v57 }
 0xdb2   : > { %v7199_v17 = vsel %vm3115_vm7, inf, %v7142_v6 }
 0xdb3   : > { %v3141_v59 = vsel %vm3033_vm9, %v7199_v17, inf }
 0xdb4   : > { %v3094_v18 = vpop.xlane.xlu2 %3093  ;;  %3142 = vmin.xlane.f32.xlu2 %v3141_v59  ;;  %v7247_v22 = vpop.eup %6294 }
 0xdb5   : > { %v3095_v5 = vcvt.f32.s32 %v3094_v18  ;;  %v3119_v18 = vadd.f32 1e-08, %v7161_v26  ;;  %v3126_v15 = vsel %vm3114_vm5, %v7247_v22, 0.0 }
 0xdb7   : > { %v7203_v20 = vadd.s32 %v3097_v19, %v3095_v5 }
 0xdb9   : > { %vm3116_vm8 = vcmp.eq.s32.totalorder %v6701_v21, %v7203_v20 }
 0xdba   : > { %v7211_v23 = vsel %vm3116_vm8, inf, %v7146_v60 }
 0xdbb   : > { %v3144_v6 = vsel %vm3033_vm9, %v7211_v23, inf }
 0xdbc   : > { %v3109_v27 = vpop.xlane.xlu0 %3108  ;;  %3145 = vmin.xlane.f32.xlu0 %v3144_v6 }
 0xdbd   : > { %v3110_v30 = vcvt.f32.s32 %v3109_v27 }
 0xdbf   : > { %v7215_v31 = vadd.s32 %v3112_v29, %v3110_v30 }
 0xdc1   : > { %vm3117_vm2 = vcmp.eq.s32.totalorder %v6701_v21, %v7215_v31  ;;  %v7315_v31 = vld [vmem:[%s1270_s2] sm:$0x7]  ;;  %s8231_s2 = sld [smem:[#allocation13_spill]] }
 0xdc2   : > { %v7223_v28 = vsel %vm3117_vm2, inf, %v7150_v14  ;;  %5861 = vmatpush.msk.msra.mxu1 %vm1407_vm0, %v7315_v31 }
 0xdc3   : > { %v3147_v60 = vsel %vm3033_vm9, %v7223_v28, inf }
 0xdc4   : > { %3148 = vmin.xlane.f32.xlu1 %v3147_v60 }
 0xe1f   : > { %v3140_v34 = vpop.xlane.xlu1 %3139 }
 0xe20   : > { %vm3150_vm10 = vcmp.le.f32.partialorder %v7187_v0, %v3140_v34  ;;  %v3222_v12 = vadd.f32 1e-08, %v3140_v34 }
 0xe21   : > { %v3154_v38 = vsel %vm3150_vm10, %v6701_v21, 16 }
 0xe22   : > { %v3158_v50 = vsel %vm3033_vm9, %v3154_v38, 2147483647  ;;  %6296 = vrcp.f32 %v3222_v12 }
 0xe23   : > { %v3160_v35 = vshra.s32 %v3158_v50, 16  ;;  %v3159_v53 = vand.u32 65535, %v3158_v50  ;;  %6298 = vrcp.f32 %v3119_v18  ;;  %v3120_v50 = vadd.f32 1e-08, %v7167_v42 }
 0xe25   : > { %v3162_v37 = vcvt.s32.f32 %v3160_v35  ;;  %v3161_v40 = vcvt.s32.f32 %v3159_v53 }
 0xe27   : > { %v3143_v39 = vpop.xlane.xlu2 %3142  ;;  %3163 = vmin.xlane.f32.xlu2 %v3162_v37 }
 0xe28   : > { %vm3151_vm11 = vcmp.le.f32.partialorder %v7199_v17, %v3143_v39  ;;  %v3223_v19 = vadd.f32 1e-08, %v3143_v39  ;;  %v7249_v6 = vpop.eup %6296 }
 0xe29   : > { %v3155_v14 = vsel %vm3151_vm11, %v6701_v21, 16 }
 0xe2a   : > { %v3173_v43 = vsel %vm3033_vm9, %v3155_v14, 2147483647  ;;  %6300 = vrcp.f32 %v3223_v19 }
 0xe2b   : > { %v3175_v44 = vshra.s32 %v3173_v43, 16  ;;  %v3174_v62 = vand.u32 65535, %v3173_v43  ;;  %6302 = vrcp.f32 %v3120_v50  ;;  %v3606_v50 = vld [vmem:[%s7311_s1 + $0x28] sm:$0xff] }
 0xe2d   : > { %v3177_v32 = vcvt.s32.f32 %v3175_v44  ;;  %v3176_v1 = vcvt.s32.f32 %v3174_v62 }
 0xe2f   : > { %v7233_v33 = vpop.xlane.xlu0 %3145  ;;  %3178 = vmin.xlane.f32.xlu0 %v3177_v32 }
 0xe30   : > { %vm3152_vm12 = vcmp.le.f32.partialorder %v7211_v23, %v7233_v33  ;;  %v3224_v10 = vadd.f32 1e-08, %v7233_v33 }
 0xe31   : > { %v3156_v47 = vsel %vm3152_vm12, %v6701_v21, 16 }
 0xe32   : > { %v3188_v24 = vsel %vm3033_vm9, %v3156_v47, 2147483647  ;;  %6304 = vrcp.f32 %v3224_v10 }
 0xe33   : > { %v3190_v25 = vshra.s32 %v3188_v24, 16  ;;  %v3189_v4 = vand.u32 65535, %v3188_v24  ;;  %v3121_v24 = vadd.f32 1e-08, %v7173_v46 }
 0xe35   : > { %v3192_v45 = vcvt.s32.f32 %v3190_v25  ;;  %v3191_v54 = vcvt.s32.f32 %v3189_v4  ;;  %6306 = vrcp.f32 %v3121_v24  ;;  %v3601_v4 = vld [vmem:[%s7311_s1] sm:$0xff] }
 0xe36   : > { %5862 = vmatmul.msk.f32.vlgmr.msra.gmra.mxu1 %vm1403_vm1, %v3601_v4  ;;  %v3718_v24 = vmul.f32 %v3601_v4, %v3601_v4 }
 0xe37   : > { %3193 = vmin.xlane.f32.xlu1 %v3192_v45  ;;  %v7239_v48 = vpop.xlane.xlu1 %3148 }
 0xe38   : > { %vm3153_vm13 = vcmp.le.f32.partialorder %v7223_v28, %v7239_v48  ;;  %v3225_v57 = vadd.f32 1e-08, %v7239_v48 }
 0xe39   : > { %v3157_v49 = vsel %vm3153_vm13, %v6701_v21, 16 }
 0xe3a   : > { %v3203_v58 = vsel %vm3033_vm9, %v3157_v49, 2147483647  ;;  %6308 = vrcp.f32 %v3225_v57 }
 0xe3b   : > { %v3205_v51 = vshra.s32 %v3203_v58, 16  ;;  %v3204_v8 = vand.u32 65535, %v3203_v58 }
 0xe3d   : > { %v3207_v52 = vcvt.s32.f32 %v3205_v51  ;;  %v3206_v9 = vcvt.s32.f32 %v3204_v8  ;;  %v3602_v8 = vld [vmem:[%s7311_s1 + $0x8] sm:$0xff] }
 0xe3e   : > { %5863 = vmatmul.msk.f32.gmra.mxu1 %vm1403_vm1, %v3602_v8 }
 0xe3f   : > { %3208 = vmin.xlane.f32.xlu2 %v3207_v52 }
 0xe9a   : > { %v3164_v56 = vpop.xlane.xlu2 %3163 }
 0xe9b   : > { %vm3165_vm14 = vcmp.eq.f32.partialorder %v3162_v37, %v3164_v56  ;;  %v3170_v13 = vcvt.f32.s32 %v3164_v56  ;;  %v7263_v37 = vpop.eup %6298 }
 0xe9c   : > { %v3166_v61 = vsel %vm3165_vm14, %v3161_v40, inf  ;;  %v7265_v39 = vpop.eup %6300 }
 0xe9d   : > { %3167 = vmin.xlane.f32.xlu0 %v3166_v61  ;;  %v3171_v16 = vshll.u32 %v3170_v13, 16 }
 0xea2   : > { %v3179_v63 = vpop.xlane.xlu0 %3178 }
 0xea3   : > { %vm3180_vm15 = vcmp.eq.f32.partialorder %v3177_v32, %v3179_v63  ;;  %v3185_v27 = vcvt.f32.s32 %v3179_v63 }
 0xea4   : > { %v3181_v3 = vsel %vm3180_vm15, %v3176_v1, inf }
 0xea5   : > { %3182 = vmin.xlane.f32.xlu1 %v3181_v3  ;;  %v3186_v34 = vshll.u32 %v3185_v27, 16 }
 0xeaa   : > { %v3194_v7 = vpop.xlane.xlu1 %3193 }
 0xeab   : > { %vm3195_vm3 = vcmp.eq.f32.partialorder %v3192_v45, %v3194_v7  ;;  %v3200_v14 = vcvt.f32.s32 %v3194_v7  ;;  %v7279_v45 = vpop.eup %6302 }
 0xeac   : > { %v3196_v55 = vsel %vm3195_vm3, %v3191_v54, inf  ;;  %v7281_v49 = vpop.eup %6304 }
 0xead   : > { %3197 = vmin.xlane.f32.xlu2 %v3196_v55  ;;  %v3201_v33 = vshll.u32 %v3200_v14, 16  ;;  %v7293_v40 = vpop.eup %6306  ;;  %v3607_v14 = vld [vmem:[%s7311_s1 + $0x30] sm:$0xff] }
 0xeae   : > { %v7295_v61 = vpop.eup %6308 }
 0xeb2   : > { %v3209_v41 = vpop.xlane.xlu2 %3208 }
 0xeb3   : > { %vm3210_vm4 = vcmp.eq.f32.partialorder %v3207_v52, %v3209_v41  ;;  %v3215_v58 = vcvt.f32.s32 %v3209_v41 }
 0xeb4   : > { %v3211_v36 = vsel %vm3210_vm4, %v3206_v9, inf  ;;  %vm3751_vm4 = vcmask 256000  }
 0xeb5   : > { %3212 = vmin.xlane.f32.xlu0 %v3211_v36  ;;  %v3216_v20 = vshll.u32 %v3215_v58, 16 }
 0xf10   : > { %v3168_v2 = vpop.xlane.xlu0 %3167 }
 0xf11   : > { %v3169_v59 = vcvt.f32.s32 %v3168_v2 }
 0xf13   : > { %v3172_v5 = vadd.s32 %v3171_v16, %v3169_v59 }
 0xf15   : > { %vm3218_vm10 = vcmp.eq.s32.totalorder %v6701_v21, %v3172_v5 }
 0xf16   : > { %v3238_v29 = vsel %vm3218_vm10, inf, %v7187_v0  ;;  %v7258_v30 = vsel %vm3218_vm10, %v7249_v6, %v3126_v15  ;;  %v3127_v0 = vsel %vm3115_vm7, %v7263_v37, 0.0 }
 0xf17   : > { %v3242_v26 = vsel %vm3033_vm9, %v3238_v29, inf }
 0xf18   : > { %3243 = vmin.xlane.f32.xlu1 %v3242_v26  ;;  %v3183_v60 = vpop.xlane.xlu1 %3182  ;;  %v3603_v26 = vld [vmem:[%s7311_s1 + $0x10] sm:$0xff] }
 0xf19   : > { %v3184_v38 = vcvt.f32.s32 %v3183_v60  ;;  %5864 = vmatmul.msk.f32.gmra.mxu1 %vm1403_vm1, %v3603_v26  ;;  %v3604_v60 = vld [vmem:[%s7311_s1 + $0x18] sm:$0xff] }
 0xf1b   : > { %v3187_v35 = vadd.s32 %v3186_v34, %v3184_v38  ;;  %v3605_v34 = vld [vmem:[%s7311_s1 + $0x20] sm:$0xff] }
 0xf1c   : > { %v3722_v4 = vmul.f32 %v3605_v34, %v3605_v34 }
 0xf1d   : > { %vm3219_vm5 = vcmp.eq.s32.totalorder %v6701_v21, %v3187_v35 }
 0xf1e   : > { %v3239_v43 = vsel %vm3219_vm5, inf, %v7199_v17  ;;  %v7274_v42 = vsel %vm3219_vm5, %v7265_v39, %v3127_v0  ;;  %v3128_v17 = vsel %vm3116_vm8, %v7279_v45, 0.0 }
 0xf1f   : > { %v3245_v44 = vsel %vm3033_vm9, %v3239_v43, inf }
 0xf20   : > { %v3198_v32 = vpop.xlane.xlu2 %3197  ;;  %3246 = vmin.xlane.f32.xlu2 %v3245_v44 }
 0xf21   : > { %v3199_v47 = vcvt.f32.s32 %v3198_v32  ;;  %5865 = vmatmul.msk.f32.gmra.mxu1 %vm1403_vm1, %v3604_v60 }
 0xf23   : > { %v3202_v25 = vadd.s32 %v3201_v33, %v3199_v47 }
 0xf25   : > { %vm3220_vm7 = vcmp.eq.s32.totalorder %v6701_v21, %v3202_v25 }
 0xf26   : > { %v3240_v51 = vsel %vm3220_vm7, inf, %v7211_v23  ;;  %v7290_v46 = vsel %vm3220_vm7, %v7281_v49, %v3128_v17  ;;  %v3129_v23 = vsel %vm3117_vm2, %v7293_v40, 0.0  ;;  %v3726_v17 = vsel %vm1403_vm1, %v3718_v24, 0.0 }
 0xf27   : > { %v3248_v48 = vsel %vm3033_vm9, %v3240_v51, inf  ;;  %vm3793_vm7 = vcmask 261120  }
 0xf28   : > { %v3213_v52 = vpop.xlane.xlu0 %3212  ;;  %3249 = vmin.xlane.f32.xlu0 %v3248_v48  ;;  %v3719_v48 = vmul.f32 %v3602_v8, %v3602_v8  ;;  %v3724_v8 = vmul.f32 %v3607_v14, %v3607_v14 }
 0xf29   : > { %v3214_v53 = vcvt.f32.s32 %v3213_v52  ;;  %5866 = vmatmul.msk.f32.gmra.mxu1 %vm1403_vm1, %v3605_v34  ;;  %v3721_v52 = vmul.f32 %v3604_v60, %v3604_v60 }
 0xf2b   : > { %v3217_v56 = vadd.s32 %v3216_v20, %v3214_v53 }
 0xf2d   : > { %vm3221_vm8 = vcmp.eq.s32.totalorder %v6701_v21, %v3217_v56  ;;  %v3729_v56 = vsel %vm1403_vm1, %v3719_v48, 0.0 }
 0xf2e   : > { %v3241_v62 = vsel %vm3221_vm8, inf, %v7223_v28  ;;  %v7304_v63 = vsel %vm3221_vm8, %v7295_v61, %v3129_v23  ;;  %v3735_v23 = vsel %vm1403_vm1, %v3721_v52, 0.0 }
 0xf2f   : > { %v3251_v1 = vsel %vm3033_vm9, %v3241_v62, inf }
 0xf30   : > { %3252 = vmin.xlane.f32.xlu1 %v3251_v1  ;;  %v3720_v1 = vmul.f32 %v3603_v26, %v3603_v26 }
 0xf31   : > { %5867 = vmatmul.msk.f32.gmra.mxu1 %vm1403_vm1, %v3606_v50 }
 0xf39   : > { %5868 = vmatmul.msk.f32.gmra.mxu1 %vm1403_vm1, %v3607_v14 }
 0xf8b   : > { %v7313_v3 = vpop.xlane.xlu1 %3243 }
 0xf8c   : > { %vm3254_vm2 = vcmp.le.f32.partialorder %v3238_v29, %v7313_v3 }
 0xf8d   : > { %v3258_v28 = vsel %vm3254_vm2, %v6701_v21, 16 }
 0xf8e   : > { %v3262_v7 = vsel %vm3033_vm9, %v3258_v28, 2147483647  ;;  %v3732_v28 = vsel %vm1403_vm1, %v3720_v1, 0.0 }
 0xf8f   : > { %v3264_v54 = vshra.s32 %v3262_v7, 16  ;;  %v3263_v38 = vand.u32 65535, %v3262_v7  ;;  %v3738_v7 = vsel %vm1403_vm1, %v3722_v4, 0.0 }
 0xf91   : > { %v3266_v55 = vcvt.s32.f32 %v3264_v54  ;;  %v3265_v35 = vcvt.s32.f32 %v3263_v38  ;;  %v3723_v54 = vmul.f32 %v3606_v50, %v3606_v50 }
 0xf93   : > { %v7325_v41 = vpop.xlane.xlu2 %3246  ;;  %3267 = vmin.xlane.f32.xlu2 %v3266_v55 }
 0xf94   : > { %vm3255_vm11 = vcmp.le.f32.partialorder %v3239_v43, %v7325_v41  ;;  %v3327_v34 = vadd.f32 1e-08, %v7325_v41 }
 0xf95   : > { %v3259_v9 = vsel %vm3255_vm11, %v6701_v21, 16 }
 0xf96   : > { %v3277_v36 = vsel %vm3033_vm9, %v3259_v9, 2147483647  ;;  %v3744_v9 = vsel %vm1403_vm1, %v3724_v8, 0.0 }
 0xf97   : > { %v3279_v11 = vshra.s32 %v3277_v36, 16  ;;  %v3278_v43 = vand.u32 65535, %v3277_v36  ;;  %v3694_v36 = vpop.f32.mrf.mxu1 }
 0xf98   : > { %v3759_v24 = vmul.f32 2.0, %v3694_v36 }
 0xf99   : > { %v3281_v12 = vcvt.s32.f32 %v3279_v11  ;;  %v3280_v32 = vcvt.s32.f32 %v3278_v43  ;;  %v3750_v11 = vmul.f32 %v7315_v31, %v7315_v31 }
 0xf9b   : > { %v7331_v13 = vpop.xlane.xlu0 %3249  ;;  %3282 = vmin.xlane.f32.xlu0 %v3281_v12 }
 0xf9c   : > { %vm3256_vm0 = vcmp.le.f32.partialorder %v3240_v51, %v7331_v13  ;;  %v3328_v52 = vadd.f32 1e-08, %v7331_v13 }
 0xf9d   : > { %v3260_v2 = vsel %vm3256_vm0, %v6701_v21, 16 }
 0xf9e   : > { %v3292_v16 = vsel %vm3033_vm9, %v3260_v2, 2147483647 }
 0xf9f   : > { %v3294_v59 = vshra.s32 %v3292_v16, 16  ;;  %v3293_v47 = vand.u32 65535, %v3292_v16  ;;  %v3697_v2 = vpop.f32.mrf.mxu1  ;;  %v3752_v16 = vsel %vm3751_vm4, %v3750_v11, 0.0 }
 0xfa0   : > { %v3760_v1 = vmul.f32 2.0, %v3697_v2 }
 0xfa1   : > { %v3296_v18 = vcvt.s32.f32 %v3294_v59  ;;  %v3295_v25 = vcvt.s32.f32 %v3293_v47  ;;  %v3326_v59 = vadd.f32 1e-08, %v7313_v3 }
 0xfa3   : > { %3297 = vmin.xlane.f32.xlu1 %v3296_v18  ;;  %v7336_v19 = vpop.xlane.xlu1 %3252  ;;  %6310 = vrcp.f32 %v3326_v59 }
 0xfa4   : > { %vm3257_vm12 = vcmp.le.f32.partialorder %v3241_v62, %v7336_v19  ;;  %6312 = vrcp.f32 %v3327_v34 }
 0xfa5   : > { %v3261_v5 = vsel %vm3257_vm12, %v6701_v21, 16  ;;  %6314 = vrcp.f32 %v3328_v52 }
 0xfa6   : > { %v3307_v15 = vsel %vm3033_vm9, %v3261_v5, 2147483647 }
 0xfa7   : > { %v3309_v27 = vshra.s32 %v3307_v15, 16  ;;  %v3308_v51 = vand.u32 65535, %v3307_v15  ;;  %v3700_v60 = vpop.f32.mrf.mxu1 }
 0xfa9   : > { %v3311_v29 = vcvt.s32.f32 %v3309_v27  ;;  %v3310_v53 = vcvt.s32.f32 %v3308_v51  ;;  %v7373_v50 = vpop.eup %6310 }
 0xfaa   : > { %v7379_v41 = vpop.eup %6312 }
 0xfab   : > { %3312 = vmin.xlane.f32.xlu2 %v3311_v29 }
 0xfaf   : > { %v3703_v47 = vpop.f32.mrf.mxu1 }
0x1006   : > { %v3268_v10 = vpop.xlane.xlu2 %3267 }
0x1007   : > { %vm3269_vm13 = vcmp.eq.f32.partialorder %v3266_v55, %v3268_v10  ;;  %v3741_v55 = vsel %vm1403_vm1, %v3723_v54, 0.0  ;;  %v3274_v5 = vcvt.f32.s32 %v3268_v10 }
0x1008   : > { %v3270_v0 = vsel %vm3269_vm13, %v3265_v35, inf }
0x1009   : > { %3271 = vmin.xlane.f32.xlu0 %v3270_v0 }
0x100e   : > { %v7351_v44 = vpop.xlane.xlu0 %3282 }
0x100f   : > { %vm3284_vm14 = vcmp.eq.f32.partialorder %v3281_v12, %v7351_v44  ;;  %v3608_v12 = vld [vmem:[%s7311_s1 + $0x38] sm:$0xff]  ;;  %v3289_v35 = vcvt.f32.s32 %v7351_v44  ;;  %s8232_s1 = sld [smem:[#allocation15_spill]] }
0x1010   : > { %v3285_v33 = vsel %vm3284_vm14, %v3280_v32, inf  ;;  %5869 = vmatmul.msk.f32.gmra.mxu1 %vm1403_vm1, %v3608_v12  ;;  %v3725_v11 = vmul.f32 %v3608_v12, %v3608_v12 }
0x1011   : > { %3286 = vmin.xlane.f32.xlu1 %v3285_v33  ;;  %v3290_v14 = vshll.u32 %v3289_v35, 16 }
0x1012   : > { %v3747_v34 = vsel %vm1403_vm1, %v3725_v11, 0.0  ;;  %v6126_v11 = vld [vmem:[%s8228_s7] sm:$0xff] }
0x1016   : > { %v7354_v57 = vpop.xlane.xlu1 %3297 }
0x1017   : > { %vm3299_vm15 = vcmp.eq.f32.partialorder %v3296_v18, %v7354_v57  ;;  %v3753_v18 = vrot.slane %v3752_v16, 4  ;;  %v3304_v51 = vcvt.f32.s32 %v7354_v57  ;;  %v3762_v57 = vmul.f32 2.0, %v3703_v47 }
0x1018   : > { %v3300_v58 = vsel %vm3299_vm15, %v3295_v25, inf }
0x1019   : > { %3301 = vmin.xlane.f32.xlu2 %v3300_v58  ;;  %3727 = vadd.xlane.f32.xlu1 %v3726_v17  ;;  %v3754_v15 = vadd.f32 %v3753_v18, %v3752_v16  ;;  %v6136_v16 = vld [vmem:[%s8227_s28 + $0x30] sm:$0xff] }
0x101b   : > { %v3755_v38 = vrot.slane %v3754_v15, 2 }
0x101d   : > { %v3756_v10 = vadd.f32 %v3755_v38, %v3754_v15  ;;  %v3761_v15 = vmul.f32 2.0, %v3700_v60  ;;  %v6135_v60 = vld [vmem:[%s8227_s28 + $0x28] sm:$0xff] }
0x101e   : > { %v7358_v20 = vpop.xlane.xlu2 %3312 }
0x101f   : > { %vm3314_vm3 = vcmp.eq.f32.partialorder %v3311_v29, %v7358_v20  ;;  %v3275_v29 = vshll.u32 %v3274_v5, 16  ;;  %v3757_v32 = vrot.slane %v3756_v10, 1  ;;  %v7400_v5 = vpop.eup %6314 }
0x1020   : > { %v3315_v62 = vsel %vm3314_vm3, %v3310_v53, inf  ;;  %v3329_v53 = vadd.f32 1e-08, %v7336_v19 }
0x1021   : > { %3316 = vmin.xlane.f32.xlu0 %v3315_v62  ;;  %3730 = vadd.xlane.f32.xlu2 %v3729_v56  ;;  %v7384_v25 = vadd.f32 %v3757_v32, %v3756_v10  ;;  %v3319_v62 = vcvt.f32.s32 %v7358_v20 }
0x1022   : > { %3736 = vadd.xlane.f32.xlu1 %v3735_v23  ;;  %6316 = vrcp.f32 %v3329_v53 }
0x1023   : > { %v3320_v8 = vshll.u32 %v3319_v62, 16 }
0x1029   : > { %3733 = vadd.xlane.f32.xlu0 %v3732_v28  ;;  %3739 = vadd.xlane.f32.xlu2 %v3738_v7  ;;  %v3706_v28 = vpop.f32.mrf.mxu1 }
0x102a   : > { %v3763_v12 = vmul.f32 2.0, %v3706_v28 }
0x1031   : > { %3742 = vadd.xlane.f32.xlu0 %v3741_v55  ;;  %v6137_v55 = vld [vmem:[%s8227_s28 + $0x38] sm:$0xff] }
0x1032   : > { %3487 = vmatpush.bf16.msra.mxu2 %v6137_v55  ;;  %v6129_v55 = vld [vmem:[%s8228_s7 + $0x18] sm:$0xff] }
0x1033   : > { %3424 = vmatpush.bf16.msrb.mxu0 %v6129_v55  ;;  %v3237_v55 = vadd.f32 %v7295_v61, %v7293_v40 }
0x1036   : > { %3488 = vmatpush.bf16.msra.mxu2 %v6136_v16 }
0x1039   : > { %3745 = vadd.xlane.f32.xlu0 %v3744_v9 }
0x103a   : > { %3489 = vmatpush.bf16.msra.mxu2 %v6135_v60 }
0x107c   : > { %v3272_v27 = vpop.xlane.xlu0 %3271 }
0x107d   : > { %v3273_v26 = vcvt.f32.s32 %v3272_v27 }
0x107f   : > { %v3276_v31 = vadd.s32 %v3275_v29, %v3273_v26  ;;  %v7403_v29 = vpop.eup %6316 }
0x1081   : > { %vm3322_vm10 = vcmp.eq.s32.totalorder %v6701_v21, %v3276_v31 }
0x1082   : > { %v3334_v3 = vsel %vm3322_vm10, %v7373_v50, %v7258_v30 }
0x1084   : > { %v3287_v0 = vpop.xlane.xlu1 %3286 }
0x1085   : > { %v3288_v43 = vcvt.f32.s32 %v3287_v0  ;;  %v3709_v0 = vpop.f32.mrf.mxu1 }
0x1087   : > { %v3291_v33 = vadd.s32 %v3290_v14, %v3288_v43 }
0x1089   : > { %vm3323_vm5 = vcmp.eq.s32.totalorder %v6701_v21, %v3291_v33 }
0x108a   : > { %v3335_v44 = vsel %vm3323_vm5, %v7379_v41, %v7274_v42  ;;  %v3305_v42 = vshll.u32 %v3304_v51, 16 }
0x108b   : > { %v3342_v17 = vpack.c.bf16 %v3335_v44, %v3334_v3 }
0x108c   : > { %v3302_v30 = vpop.xlane.xlu2 %3301  ;;  %v3728_v58 = vpop.xlane.xlu1 %3727 }
0x108d   : > { %v3767_v48 = vsub.f32 %v3728_v58, %v3759_v24  ;;  %5769 = vmatmul.msk.bf16.vlgmr.msra.gmra.mxu3 %vm3033_vm9, %v3342_v17  ;;  %v3303_v56 = vcvt.f32.s32 %v3302_v30  ;;  %v3764_v17 = vmul.f32 2.0, %v3709_v0  ;;  %v3712_v52 = vpop.f32.mrf.mxu1 }
0x108f   : > { %v3775_v23 = vadd.f32 %v3767_v48, %v7384_v25  ;;  %v3306_v7 = vadd.s32 %v3305_v42, %v3303_v56 }
0x1091   : > { %v7392_v4 = vmax.f32 %v3775_v23, 0.0  ;;  %vm3324_vm8 = vcmp.eq.s32.totalorder %v6701_v21, %v3306_v7  ;;  %v3765_v23 = vmul.f32 2.0, %v3712_v52 }
0x1092   : > { %v3336_v31 = vsel %vm3324_vm8, %v7400_v5, %v7290_v46 }
0x1093   : > { %v3794_v13 = vsel %vm3793_vm7, %v7392_v4, inf }
0x1094   : > { %v3317_v19 = vpop.xlane.xlu0 %3316  ;;  %v3731_v54 = vpop.xlane.xlu2 %3730  ;;  %3795 = vmin.xlane.f32.xlu1 %v3794_v13  ;;  %v6134_v13 = vld [vmem:[%s8227_s28 + $0x20] sm:$0xff] }
0x1095   : > { %v3318_v9 = vcvt.f32.s32 %v3317_v19  ;;  %v3768_v36 = vsub.f32 %v3731_v54, %v3760_v1  ;;  %v3737_v20 = vpop.xlane.xlu1 %3736  ;;  %3490 = vmatpush.bf16.msra.mxu2 %v6134_v13  ;;  %v6133_v19 = vld [vmem:[%s8227_s28 + $0x18] sm:$0xff]  ;;  %v6132_v54 = vld [vmem:[%s8227_s28 + $0x10] sm:$0xff] }
0x1096   : > { %v3770_v2 = vsub.f32 %v3737_v20, %v3762_v57  ;;  %v6127_v20 = vld [vmem:[%s8228_s7 + $0x8] sm:$0xff] }
0x1097   : > { %v3321_v59 = vadd.s32 %v3320_v8, %v3318_v9  ;;  %v3776_v18 = vadd.f32 %v3768_v36, %v7384_v25  ;;  %v6131_v8 = vld [vmem:[%s8227_s28 + $0x8] sm:$0xff]  ;;  %v6128_v9 = vld [vmem:[%s8228_s7 + $0x10] sm:$0xff]  ;;  %v6130_v36 = vld [vmem:[%s8227_s28] sm:$0xff] }
0x1098   : > { %v3778_v27 = vadd.f32 %v3770_v2, %v7384_v25  ;;  %3425 = vmatpush.bf16.msrb.mxu0 %v6128_v9  ;;  %v6124_v2 = vld [vmem:[%s1287_s18] sm:$0xff] }
0x1099   : > { %vm3325_vm2 = vcmp.eq.s32.totalorder %v6701_v21, %v3321_v59  ;;  %v7406_v26 = vmax.f32 %v3776_v18, 0.0  ;;  %3491 = vmatpush.bf16.msra.mxu2 %v6133_v19  ;;  %v3715_v18 = vpop.f32.mrf.mxu1 }
0x109a   : > { %v7409_v38 = vmax.f32 %v3778_v27, 0.0  ;;  %v3337_v35 = vsel %vm3325_vm2, %v7403_v29, %v7304_v63  ;;  %v3234_v27 = vadd.f32 %v7249_v6, %v7247_v22 }
0x109b   : > { %v3797_v3 = vsel %vm3793_vm7, %v7406_v26, inf  ;;  %v3343_v10 = vpack.c.bf16 %v3337_v35, %v3336_v31  ;;  %v3766_v31 = vmul.f32 2.0, %v3715_v18 }
0x109c   : > { %v3734_v14 = vpop.xlane.xlu0 %3733  ;;  %v3740_v43 = vpop.xlane.xlu2 %3739  ;;  %3748 = vadd.xlane.f32.xlu1 %v3747_v34  ;;  %3798 = vmin.xlane.f32.xlu2 %v3797_v3  ;;  %v3803_v32 = vsel %vm3793_vm7, %v7409_v38, inf  ;;  %v3235_v34 = vadd.f32 %v7265_v39, %v7263_v37  ;;  %v3338_v60 = vadd.f32 %v7373_v50, %v3234_v27  ;;  %v6125_v37 = vld [vmem:[%s1287_s18 + $0x8] sm:$0xff]  ;;  %s8234_s18 = sld [smem:[#allocation18_spill]] }
0x109d   : > { %v3769_v33 = vsub.f32 %v3734_v14, %v3761_v15  ;;  %v3771_v47 = vsub.f32 %v3740_v43, %v3763_v12  ;;  %3804 = vmin.xlane.f32.xlu0 %v3803_v32  ;;  %5770 = vmatmul.msk.bf16.gmra.mxu3 %vm3033_vm9, %v3343_v10 }
0x109e   : > { %3492 = vmatpush.bf16.msra.mxu2 %v6132_v54  ;;  %3426 = vmatpush.bf16.msrb.mxu0 %v6127_v20  ;;  %v3339_v3 = vadd.f32 %v7379_v41, %v3235_v34  ;;  %6318 = vrcp.f32 %v3338_v60  ;;  %v3341_v20 = vadd.f32 %v7403_v29, %v3237_v55 }
0x109f   : > { %v3777_v46 = vadd.f32 %v3769_v33, %v7384_v25  ;;  %v3779_v63 = vadd.f32 %v3771_v47, %v7384_v25 }
0x10a0   : > { %6320 = vrcp.f32 %v3339_v3 }
0x10a1   : > { %v7423_v24 = vmax.f32 %v3777_v46, 0.0  ;;  %v7425_v44 = vmax.f32 %v3779_v63, 0.0 }
0x10a2   : > { %3493 = vmatpush.bf16.msra.mxu2 %v6131_v8  ;;  %3427 = vmatpush.bf16.msrb.mxu0 %v6126_v11 }
0x10a3   : > { %v3800_v30 = vsel %vm3793_vm7, %v7423_v24, inf  ;;  %v3806_v58 = vsel %vm3793_vm7, %v7425_v44, inf }
0x10a4   : > { %v3743_v51 = vpop.xlane.xlu0 %3742  ;;  %3801 = vmin.xlane.f32.xlu2 %v3800_v30  ;;  %3807 = vmin.xlane.f32.xlu1 %v3806_v58  ;;  %v6319_v30 = vpop.eup %6318 }
0x10a5   : > { %v3772_v48 = vsub.f32 %v3743_v51, %v3764_v17  ;;  %5795 = vmatmul.msk.bf16.vlgmr.msrb.gmra.mxu0 %vm2505_vm6, %v6124_v2 }
0x10a6   : > { %3494 = vmatpush.bf16.msra.mxu2 %v6130_v36 }
0x10a7   : > { %v3780_v53 = vadd.f32 %v3772_v48, %v7384_v25  ;;  %v6321_v48 = vpop.eup %6320 }
0x10a9   : > { %v7432_v56 = vmax.f32 %v3780_v53, 0.0 }
0x10ab   : > { %v3809_v42 = vsel %vm3793_vm7, %v7432_v56, inf }
0x10ac   : > { %v3746_v62 = vpop.xlane.xlu0 %3745  ;;  %3810 = vmin.xlane.f32.xlu2 %v3809_v42 }
0x10ad   : > { %v3773_v1 = vsub.f32 %v3746_v62, %v3765_v23 }
0x10af   : > { %v3781_v28 = vadd.f32 %v3773_v1, %v7384_v25 }
0x10b1   : > { %v7437_v57 = vmax.f32 %v3781_v28, 0.0 }
0x10b3   : > { %v3812_v7 = vsel %vm3793_vm7, %v7437_v57, inf }
0x10b4   : > { %3813 = vmin.xlane.f32.xlu2 %v3812_v7  ;;  %v3236_v7 = vadd.f32 %v7281_v49, %v7279_v45 }
0x10b5   : > { %5796 = vmatmul.msk.bf16.gmra.mxu0 %vm2505_vm6, %v6125_v37  ;;  %v6143_v37 = vld [vmem:[%s8230_s16 + $0x28] sm:$0xff] }
0x10b6   : > { %v3340_v36 = vadd.f32 %v7400_v5, %v3236_v7 }
0x10b8   : > { %6322 = vrcp.f32 %v3340_v36 }
0x10b9   : > { %6324 = vrcp.f32 %v3341_v20 }
0x10be   : > { %v6323_v11 = vpop.eup %6322 }
0x1107   : > { %v7454_v16 = vpop.xlane.xlu1 %3795 }
0x1108   : > { %vm3818_vm1 = vcmp.le.f32.partialorder %v7392_v4, %v7454_v16 }
0x1109   : > { %v3826_v59 = vsel %vm3818_vm1, %v6701_v21, 32 }
0x110a   : > { %v7460_v15 = vsel %vm3793_vm7, %v3826_v59, 2147483647  ;;  %v6325_v59 = vpop.eup %6324 }
0x110b   : > { %v3836_v12 = vshra.s32 %v7460_v15, 16 }
0x110d   : > { %v7467_v35 = vcvt.s32.f32 %v3836_v12 }
0x110f   : > { %v3749_v10 = vpop.xlane.xlu1 %3748  ;;  %v7471_v0 = vpop.xlane.xlu2 %3798  ;;  %3839 = vmin.xlane.f32.xlu0 %v7467_v35 }
0x1110   : > { %v3774_v14 = vsub.f32 %v3749_v10, %v3766_v31  ;;  %vm3819_vm9 = vcmp.le.f32.partialorder %v7406_v26, %v7471_v0  ;;  %v7476_v22 = vpop.xlane.xlu0 %3804  ;;  %v3360_v6 = vpop.f32.mrf.mxu3 }
0x1111   : > { %v3827_v39 = vsel %vm3819_vm9, %v6701_v21, 32  ;;  %vm3821_vm11 = vcmp.le.f32.partialorder %v7409_v38, %v7476_v22  ;;  %v3374_v53 = vmul.f32 %v6319_v30, %v3360_v6  ;;  %v6144_v6 = vld [vmem:[%s8230_s16 + $0x30] sm:$0xff] }
0x1112   : > { %v3782_v50 = vadd.f32 %v3774_v14, %v7384_v25  ;;  %v3829_v41 = vsel %vm3821_vm11, %v6701_v21, 32  ;;  %v7484_v43 = vsel %vm3793_vm7, %v3827_v39, 2147483647  ;;  %v6145_v14 = vld [vmem:[%s8230_s16 + $0x38] sm:$0xff]  ;;  %v6142_v39 = vld [vmem:[%s8230_s16 + $0x20] sm:$0xff]  ;;  %v6140_v30 = vld [vmem:[%s8230_s16 + $0x10] sm:$0xff] }
0x1113   : > { %v3851_v32 = vshra.s32 %v7484_v43, 16  ;;  %v7488_v33 = vsel %vm3793_vm7, %v3829_v41, 2147483647  ;;  %3570 = vmatpush.bf16.msrb.mxu3 %v6145_v14  ;;  %v6141_v41 = vld [vmem:[%s8230_s16 + $0x18] sm:$0xff]  ;;  %v6264_v14 = vld [vmem:[%s8231_s2] ss:$0 sm:$0xff] }
0x1114   : > { %v7490_v47 = vmax.f32 %v3782_v50, 0.0  ;;  %v3881_v46 = vshra.s32 %v7488_v33, 16  ;;  %v3835_v50 = vand.u32 65535, %v7460_v15  ;;  %s8235_s2 = sld [smem:[#allocation17_spill]] }
0x1115   : > { %v7494_v63 = vcvt.s32.f32 %v3851_v32 }
0x1116   : > { %v7496_v25 = vcvt.s32.f32 %v3881_v46  ;;  %v3815_v17 = vsel %vm3793_vm7, %v7490_v47, inf  ;;  %v3837_v46 = vcvt.s32.f32 %v3835_v50 }
0x1117   : > { %v7500_v58 = vpop.xlane.xlu2 %3801  ;;  %3854 = vmin.xlane.f32.xlu1 %v7494_v63  ;;  %v7503_v51 = vpop.xlane.xlu1 %3807  ;;  %3816 = vmin.xlane.f32.xlu0 %v3815_v17 }
0x1118   : > { %vm3820_vm0 = vcmp.le.f32.partialorder %v7423_v24, %v7500_v58  ;;  %vm3822_vm12 = vcmp.le.f32.partialorder %v7425_v44, %v7503_v51  ;;  %3884 = vmin.xlane.f32.xlu2 %v7496_v25  ;;  %v3362_v52 = vpop.f32.mrf.mxu3  ;;  %3571 = vmatpush.bf16.msrb.mxu3 %v6144_v6 }
0x1119   : > { %v3828_v23 = vsel %vm3820_vm0, %v6701_v21, 32  ;;  %v3830_v42 = vsel %vm3822_vm12, %v6701_v21, 32  ;;  %v3375_v62 = vmul.f32 %v6321_v48, %v3362_v52  ;;  %v3850_v48 = vand.u32 65535, %v7484_v43 }
0x111a   : > { %v7513_v1 = vsel %vm3793_vm7, %v3828_v23, 2147483647  ;;  %v7516_v28 = vsel %vm3793_vm7, %v3830_v42, 2147483647  ;;  %v3880_v52 = vand.u32 65535, %v7488_v33 }
0x111b   : > { %v3378_v13 = vpack.c.bf16 %v3375_v62, %v3374_v53  ;;  %v3866_v19 = vshra.s32 %v7513_v1, 16  ;;  %v3896_v54 = vshra.s32 %v7516_v28, 16  ;;  %v6139_v53 = vld [vmem:[%s8230_s16 + $0x8] sm:$0xff]  ;;  %v3852_v42 = vcvt.s32.f32 %v3850_v48 }
0x111c   : > { %3572 = vmatpush.bf16.msrb.mxu3 %v6143_v37  ;;  %v3865_v55 = vand.u32 65535, %v7513_v1 }
0x111d   : > { %3495 = vmatmul.bf16.vlgmr.msra.gmra.mxu2 %v3378_v13  ;;  %v7524_v8 = vcvt.s32.f32 %v3866_v19  ;;  %v7526_v9 = vcvt.s32.f32 %v3896_v54  ;;  %v6138_v19 = vld [vmem:[%s8230_s16] sm:$0xff] }
0x111f   : > { %3869 = vmin.xlane.f32.xlu1 %v7524_v8  ;;  %v7531_v45 = vpop.xlane.xlu2 %3810  ;;  %3899 = vmin.xlane.f32.xlu0 %v7526_v9 }
0x1120   : > { %vm3823_vm13 = vcmp.le.f32.partialorder %v7432_v56, %v7531_v45  ;;  %v3365_v49 = vpop.f32.mrf.mxu3  ;;  %3573 = vmatpush.bf16.msrb.mxu3 %v6142_v39 }
0x1121   : > { %v3831_v40 = vsel %vm3823_vm13, %v6701_v21, 32  ;;  %v3376_v27 = vmul.f32 %v6323_v11, %v3365_v49  ;;  %v3895_v49 = vand.u32 65535, %v7516_v28 }
0x1122   : > { %v7538_v61 = vsel %vm3793_vm7, %v3831_v40, 2147483647  ;;  %v3429_v11 = vpop.f32.mrf.mxu0 }
0x1123   : > { %v3911_v5 = vshra.s32 %v7538_v61, 16  ;;  %v3910_v1 = vand.u32 65535, %v7538_v61 }
0x1124   : > { %3574 = vmatpush.bf16.msrb.mxu3 %v6141_v41 }
0x1125   : > { %v7541_v29 = vcvt.s32.f32 %v3911_v5  ;;  %v3897_v5 = vcvt.s32.f32 %v3895_v49 }
0x1127   : > { %3914 = vmin.xlane.f32.xlu1 %v7541_v29  ;;  %v7544_v2 = vpop.xlane.xlu2 %3813 }
0x1128   : > { %vm3824_vm14 = vcmp.le.f32.partialorder %v7437_v57, %v7544_v2  ;;  %v3367_v18 = vpop.f32.mrf.mxu3  ;;  %3575 = vmatpush.bf16.msrb.mxu3 %v6140_v30 }
0x1129   : > { %v3832_v12 = vsel %vm3824_vm14, %v6701_v21, 32  ;;  %v3377_v34 = vmul.f32 %v6325_v59, %v3367_v18 }
0x112a   : > { %v7550_v31 = vsel %vm3793_vm7, %v3832_v12, 2147483647  ;;  %v3431_v61 = vpop.f32.mrf.mxu0 }
0x112b   : > { %v3379_v60 = vpack.c.bf16 %v3377_v34, %v3376_v27  ;;  %v3926_v3 = vshra.s32 %v7550_v31, 16  ;;  %v3912_v27 = vcvt.s32.f32 %v3910_v1  ;;  %v3925_v28 = vand.u32 65535, %v7550_v31 }
0x112c   : > { %3576 = vmatpush.bf16.msrb.mxu3 %v6139_v53 }
0x112d   : > { %3500 = vmatmul.bf16.gmra.mxu2 %v3379_v60  ;;  %v7553_v10 = vcvt.s32.f32 %v3926_v3 }
0x112f   : > { %3929 = vmin.xlane.f32.xlu1 %v7553_v10 }
0x1130   : > { %3577 = vmatpush.bf16.msrb.mxu3 %v6138_v19 }
0x1132   : > { %v3434_v50 = vpop.f32.mrf.mxu0 }
0x113a   : > { %v3436_v48 = vpop.f32.mrf.mxu0 }
0x1182   : > { %v7562_v32 = vpop.xlane.xlu0 %3839 }
0x1183   : > { %vm3841_vm15 = vcmp.eq.f32.partialorder %v7467_v35, %v7562_v32  ;;  %v3882_v35 = vcvt.s32.f32 %v3880_v52 }
0x1184   : > { %v3842_v17 = vsel %vm3841_vm15, %v3837_v46, inf }
0x1185   : > { %3843 = vmin.xlane.f32.xlu2 %v3842_v17 }
0x118a   : > { %v7570_v15 = vpop.xlane.xlu1 %3854  ;;  %v7572_v23 = vpop.xlane.xlu0 %3816 }
0x118b   : > { %v7574_v62 = vpop.xlane.xlu2 %3884  ;;  %vm3825_vm3 = vcmp.le.f32.partialorder %v7490_v47, %v7572_v23  ;;  %vm3856_vm4 = vcmp.eq.f32.partialorder %v7494_v63, %v7570_v15  ;;  %v3861_v49 = vcvt.f32.s32 %v7570_v15 }
0x118c   : > { %v3833_v43 = vsel %vm3825_vm3, %v6701_v21, 32  ;;  %vm3886_vm10 = vcmp.eq.f32.partialorder %v7496_v25, %v7574_v62  ;;  %v3857_v33 = vsel %vm3856_vm4, %v3852_v42, inf  ;;  %v3867_v25 = vcvt.s32.f32 %v3865_v55 }
0x118d   : > { %v3887_v7 = vsel %vm3886_vm10, %v3882_v35, inf  ;;  %3858 = vmin.xlane.f32.xlu0 %v3857_v33  ;;  %v7584_v13 = vsel %vm3793_vm7, %v3833_v43, 2147483647 }
0x118e   : > { %3888 = vmin.xlane.f32.xlu1 %v3887_v7  ;;  %v3941_v54 = vshra.s32 %v7584_v13, 16  ;;  %v3846_v7 = vcvt.f32.s32 %v7562_v32  ;;  %v3940_v15 = vand.u32 65535, %v7584_v13 }
0x1190   : > { %v7589_v63 = vcvt.s32.f32 %v3941_v54  ;;  %v3847_v54 = vshll.u32 %v3846_v7, 16 }
0x1192   : > { %v7591_v36 = vpop.xlane.xlu1 %3869  ;;  %3944 = vmin.xlane.f32.xlu2 %v7589_v63  ;;  %v7594_v20 = vpop.xlane.xlu0 %3899 }
0x1193   : > { %vm3871_vm5 = vcmp.eq.f32.partialorder %v7524_v8, %v7591_v36  ;;  %vm3901_vm8 = vcmp.eq.f32.partialorder %v7526_v9, %v7594_v20  ;;  %v3927_v9 = vcvt.s32.f32 %v3925_v28 }
0x1194   : > { %v3872_v40 = vsel %vm3871_vm5, %v3867_v25, inf  ;;  %v3902_v59 = vsel %vm3901_vm8, %v3897_v5, inf }
0x1195   : > { %3873 = vmin.xlane.f32.xlu0 %v3872_v40  ;;  %v3891_v40 = vcvt.f32.s32 %v7574_v62 }
0x119a   : > { %v7602_v18 = vpop.xlane.xlu1 %3914  ;;  %3903 = vmin.xlane.f32.xlu2 %v3902_v59 }
0x119b   : > { %vm3916_vm2 = vcmp.eq.f32.partialorder %v7541_v29, %v7602_v18 }
0x119c   : > { %v3917_v8 = vsel %vm3916_vm2, %v3912_v27, inf }
0x119d   : > { %3918 = vmin.xlane.f32.xlu0 %v3917_v8  ;;  %v3892_v8 = vshll.u32 %v3891_v40, 16 }
0x11a0   : > { %v3496_v12 = vpop.f32.mrf.mxu2 }
0x11a1   : > { %v3497_v3 = vadd.f32 %v3496_v12, %v3429_v11  ;;  %v3862_v11 = vshll.u32 %v3861_v49, 16 }
0x11a2   : > { %v7607_v34 = vpop.xlane.xlu1 %3929 }
0x11a3   : > { %vm3931_vm1 = vcmp.eq.f32.partialorder %v7553_v10, %v7607_v34  ;;  %v3509_v37 = vadd.f32 %v6264_v14, %v3497_v3 }
0x11a4   : > { %v3932_v60 = vsel %vm3931_vm1, %v3927_v9, inf  ;;  %v3876_v9 = vcvt.f32.s32 %v7591_v36 }
0x11a5   : > { %3933 = vmin.xlane.f32.xlu0 %v3932_v60  ;;  %v3513_v41 = vmax.f32 %v3509_v37, 0.0  ;;  %v3906_v37 = vcvt.f32.s32 %v7594_v20 }
0x11a8   : > { %v3498_v6 = vpop.f32.mrf.mxu2 }
0x11a9   : > { %v3499_v39 = vadd.f32 %v3498_v6, %v3431_v61  ;;  %v3942_v61 = vcvt.s32.f32 %v3940_v15  ;;  %v3877_v6 = vshll.u32 %v3876_v9, 16 }
0x11ab   : > { %v3510_v29 = vadd.f32 %v6264_v14, %v3499_v39 }
0x11ad   : > { %v3514_v46 = vmax.f32 %v3510_v29, 0.0 }
0x11af   : > { %v3517_v31 = vpack.c.bf16 %v3514_v46, %v3513_v41 }
0x11b0   : > { %v3501_v17 = vpop.f32.mrf.mxu2 }
0x11b1   : > { %3578 = vmatmul.bf16.vlgmr.msrb.gmra.mxu3 %v3517_v31  ;;  %v3502_v30 = vadd.f32 %v3501_v17, %v3434_v50  ;;  %v3907_v50 = vshll.u32 %v3906_v37, 16 }
0x11b3   : > { %v3511_v53 = vadd.f32 %v6264_v14, %v3502_v30 }
0x11b5   : > { %v3515_v35 = vmax.f32 %v3511_v53, 0.0  ;;  %v3936_v53 = vcvt.f32.s32 %v7607_v34 }
0x11b8   : > { %v3503_v52 = vpop.f32.mrf.mxu2 }
0x11b9   : > { %v3504_v42 = vadd.f32 %v3503_v52, %v3436_v48 }
0x11bb   : > { %v3512_v10 = vadd.f32 %v6264_v14, %v3504_v42 }
0x11bd   : > { %v3516_v43 = vmax.f32 %v3512_v10, 0.0 }
0x11bf   : > { %v3518_v33 = vpack.c.bf16 %v3516_v43, %v3515_v35  ;;  %v3937_v35 = vshll.u32 %v3936_v53, 16 }
0x11c1   : > { %3583 = vmatmul.bf16.gmra.mxu3 %v3518_v33 }
0x11f8   : > { %v3844_v19 = vpop.xlane.xlu2 %3843 }
0x11f9   : > { %v3845_v55 = vcvt.f32.s32 %v3844_v19  ;;  %v6265_v19 = vld [vmem:[%s8232_s1] ss:$0 sm:$0xff]  ;;  %s8236_s1 = sld [smem:[#allocation20_spill]] }
0x11fb   : > { %v7613_v25 = vadd.s32 %v3847_v54, %v3845_v55 }
0x11fd   : > { %vm3954_vm9 = vcmp.eq.s32.totalorder %v6701_v21, %v7613_v25  ;;  %v3964_v25 = vadd.f32 1e-08, %v7500_v58  ;;  %v3966_v58 = vadd.f32 1e-08, %v7503_v51 }
0x11fe   : > { %v7623_v1 = vsel %vm3954_vm9, inf, %v7392_v4 }
0x11ff   : > { %v4002_v32 = vsel %vm3793_vm7, %v7623_v1, inf }
0x1200   : > { %4003 = vmin.xlane.f32.xlu1 %v4002_v32  ;;  %v3859_v5 = vpop.xlane.xlu0 %3858 }
0x1201   : > { %v3889_v59 = vpop.xlane.xlu1 %3888  ;;  %v3860_v27 = vcvt.f32.s32 %v3859_v5 }
0x1202   : > { %v3890_v28 = vcvt.f32.s32 %v3889_v59 }
0x1203   : > { %v7628_v12 = vadd.s32 %v3862_v11, %v3860_v27 }
0x1204   : > { %v7630_v62 = vadd.s32 %v3892_v8, %v3890_v28 }
0x1205   : > { %v7633_v4 = vpop.xlane.xlu2 %3944  ;;  %vm3955_vm11 = vcmp.eq.s32.totalorder %v6701_v21, %v7628_v12 }
0x1206   : > { %vm3957_vm0 = vcmp.eq.s32.totalorder %v6701_v21, %v7630_v62  ;;  %vm3946_vm12 = vcmp.eq.f32.partialorder %v7589_v63, %v7633_v4  ;;  %v7645_v13 = vsel %vm3955_vm11, inf, %v7406_v26 }
0x1207   : > { %v7651_v36 = vsel %vm3957_vm0, inf, %v7409_v38  ;;  %v3947_v60 = vsel %vm3946_vm12, %v3942_v61, inf  ;;  %v4005_v3 = vsel %vm3793_vm7, %v7645_v13, inf  ;;  %v3921_v38 = vcvt.f32.s32 %v7602_v18 }
0x1208   : > { %v4011_v14 = vsel %vm3793_vm7, %v7651_v36, inf  ;;  %3948 = vmin.xlane.f32.xlu1 %v3947_v60  ;;  %4006 = vmin.xlane.f32.xlu2 %v4005_v3  ;;  %v3874_v63 = vpop.xlane.xlu0 %3873 }
0x1209   : > { %4012 = vmin.xlane.f32.xlu0 %v4011_v14  ;;  %v3875_v26 = vcvt.f32.s32 %v3874_v63  ;;  %v3922_v18 = vshll.u32 %v3921_v38, 16 }
0x120b   : > { %v7658_v39 = vadd.s32 %v3877_v6, %v3875_v26  ;;  %v3951_v6 = vcvt.f32.s32 %v7633_v4 }
0x120d   : > { %v3904_v29 = vpop.xlane.xlu2 %3903  ;;  %vm3956_vm13 = vcmp.eq.s32.totalorder %v6701_v21, %v7658_v39 }
0x120e   : > { %v3905_v41 = vcvt.f32.s32 %v3904_v29  ;;  %v7667_v46 = vsel %vm3956_vm13, inf, %v7423_v24  ;;  %v3952_v29 = vshll.u32 %v3951_v6, 16 }
0x120f   : > { %v4008_v31 = vsel %vm3793_vm7, %v7667_v46, inf }
0x1210   : > { %v7671_v20 = vadd.s32 %v3907_v50, %v3905_v41  ;;  %4009 = vmin.xlane.f32.xlu2 %v4008_v31  ;;  %v3919_v17 = vpop.xlane.xlu0 %3918 }
0x1211   : > { %v3920_v30 = vcvt.f32.s32 %v3919_v17 }
0x1212   : > { %vm3958_vm14 = vcmp.eq.s32.totalorder %v6701_v21, %v7671_v20 }
0x1213   : > { %v7675_v48 = vadd.s32 %v3922_v18, %v3920_v30  ;;  %v7681_v24 = vsel %vm3958_vm14, inf, %v7425_v44 }
0x1214   : > { %v4014_v52 = vsel %vm3793_vm7, %v7681_v24, inf }
0x1215   : > { %4015 = vmin.xlane.f32.xlu1 %v4014_v52  ;;  %vm3959_vm15 = vcmp.eq.s32.totalorder %v6701_v21, %v7675_v48 }
0x1216   : > { %v7692_v42 = vsel %vm3959_vm15, inf, %v7432_v56 }
0x1217   : > { %v4017_v44 = vsel %vm3793_vm7, %v7692_v42, inf }
0x1218   : > { %4018 = vmin.xlane.f32.xlu2 %v4017_v44  ;;  %v3934_v10 = vpop.xlane.xlu0 %3933 }
0x1219   : > { %v3935_v43 = vcvt.f32.s32 %v3934_v10 }
0x121b   : > { %v7696_v33 = vadd.s32 %v3937_v35, %v3935_v43 }
0x121d   : > { %vm3960_vm3 = vcmp.eq.s32.totalorder %v6701_v21, %v7696_v33  ;;  %v3969_v33 = vadd.f32 1e-08, %v7572_v23 }
0x121e   : > { %v7704_v34 = vsel %vm3960_vm3, inf, %v7437_v57 }
0x121f   : > { %v4020_v56 = vsel %vm3793_vm7, %v7704_v34, inf }
0x1220   : > { %4021 = vmin.xlane.f32.xlu2 %v4020_v56 }
0x1234   : > { %v3579_v7 = vpop.f32.mrf.mxu3 }
0x1235   : > { %v3580_v54 = vadd.f32 %v6265_v19, %v3579_v7 }
0x1237   : > { %v3589_v40 = vmax.f32 %v3580_v54, 0.0 }
0x123c   : > { %v3581_v55 = vpop.f32.mrf.mxu3 }
0x123d   : > { %v3582_v49 = vadd.f32 %v6265_v19, %v3581_v55 }
0x123f   : > { %v3590_v32 = vmax.f32 %v3582_v49, 0.0 }
0x1241   : > { %v6173_v5 = vpack.c.bf16 %v3590_v32, %v3589_v40 }
0x1243   : > { %6174 = vst [vmem:[#allocation2] sm:$0xff] %v6173_v5  }
0x1244   : > { %v3584_v11 = vpop.f32.mrf.mxu3 }
0x1245   : > { %v3585_v59 = vadd.f32 %v6265_v19, %v3584_v11 }
0x1247   : > { %v3591_v8 = vmax.f32 %v3585_v59, 0.0 }
0x124a   : > { %v6146_v61 = vld [vmem:[#allocation2] sm:$0xff] }
0x124c   : > { %v3586_v27 = vpop.f32.mrf.mxu3 }
0x124d   : > { %v3587_v15 = vadd.f32 %v6265_v19, %v3586_v27 }
0x124f   : > { %v3592_v57 = vmax.f32 %v3587_v15, 0.0 }
0x1251   : > { %v6178_v28 = vpack.c.bf16 %v3592_v57, %v3591_v8 }
0x1253   : > { %6200 = vst [vmem:[#allocation2 + $0x8] sm:$0xff] %v6178_v28  }
0x125a   : > { %v6147_v9 = vld [vmem:[#allocation2 + $0x8] sm:$0xff] }
0x125b   : > { %4444 = vmatpush.bf16.msra.mxu0 %v6147_v9 }
0x125f   : > { %4445 = vmatpush.bf16.msra.mxu0 %v6146_v61 }
0x1273   : > { %v7709_v60 = vpop.xlane.xlu1 %4003 }
0x1274   : > { %vm4026_vm4 = vcmp.le.f32.partialorder %v7623_v1, %v7709_v60 }
0x1275   : > { %v4034_v3 = vsel %vm4026_vm4, %v6701_v21, 32 }
0x1276   : > { %v4042_v14 = vsel %vm3793_vm7, %v4034_v3, 2147483647 }
0x1277   : > { %v4044_v63 = vshra.s32 %v4042_v14, 16 }
0x1279   : > { %v4046_v26 = vcvt.s32.f32 %v4044_v63  ;;  %v4043_v63 = vand.u32 65535, %v4042_v14 }
0x127b   : > { %4047 = vmin.xlane.f32.xlu0 %v4046_v26  ;;  %v3949_v37 = vpop.xlane.xlu1 %3948  ;;  %v7716_v38 = vpop.xlane.xlu2 %4006 }
0x127c   : > { %v3950_v50 = vcvt.f32.s32 %v3949_v37  ;;  %vm4027_vm10 = vcmp.le.f32.partialorder %v7645_v13, %v7716_v38  ;;  %v7720_v41 = vpop.xlane.xlu0 %4012  ;;  %v4045_v37 = vcvt.s32.f32 %v4043_v63 }
0x127d   : > { %v4035_v31 = vsel %vm4027_vm10, %v6701_v21, 32  ;;  %vm4029_vm5 = vcmp.le.f32.partialorder %v7651_v36, %v7720_v41 }
0x127e   : > { %v7725_v17 = vadd.s32 %v3952_v29, %v3950_v50  ;;  %v4037_v4 = vsel %vm4029_vm5, %v6701_v21, 32  ;;  %v4057_v18 = vsel %vm3793_vm7, %v4035_v31, 2147483647 }
0x127f   : > { %v4059_v30 = vshra.s32 %v4057_v18, 16  ;;  %v4087_v52 = vsel %vm3793_vm7, %v4037_v4, 2147483647  ;;  %v4058_v50 = vand.u32 65535, %v4057_v18 }
0x1280   : > { %vm3961_vm8 = vcmp.eq.s32.totalorder %v6701_v21, %v7725_v17  ;;  %v4089_v53 = vshra.s32 %v4087_v52, 16  ;;  %v4088_v31 = vand.u32 65535, %v4087_v52 }
0x1281   : > { %v7736_v44 = vsel %vm3961_vm8, inf, %v7490_v47  ;;  %v4061_v10 = vcvt.s32.f32 %v4059_v30 }
0x1282   : > { %v4023_v35 = vsel %vm3793_vm7, %v7736_v44, inf  ;;  %v4091_v43 = vcvt.s32.f32 %v4089_v53  ;;  %v4060_v53 = vcvt.s32.f32 %v4058_v50  ;;  %v4090_v14 = vcvt.s32.f32 %v4088_v31 }
0x1283   : > { %4024 = vmin.xlane.f32.xlu0 %v4023_v35  ;;  %4062 = vmin.xlane.f32.xlu1 %v4061_v10  ;;  %v7740_v56 = vpop.xlane.xlu2 %4009 }
0x1284   : > { %vm4028_vm2 = vcmp.le.f32.partialorder %v7667_v46, %v7740_v56  ;;  %4092 = vmin.xlane.f32.xlu2 %v4091_v43 }
0x1285   : > { %v4036_v7 = vsel %vm4028_vm2, %v6701_v21, 32 }
0x1286   : > { %v4072_v19 = vsel %vm3793_vm7, %v4036_v7, 2147483647 }
0x1287   : > { %v4074_v54 = vshra.s32 %v4072_v19, 16 }
0x1288   : > { %v7746_v47 = vpop.xlane.xlu1 %4015 }
0x1289   : > { %vm4030_vm1 = vcmp.le.f32.partialorder %v7681_v24, %v7746_v47  ;;  %v4076_v55 = vcvt.s32.f32 %v4074_v54 }
0x128a   : > { %v4038_v49 = vsel %vm4030_vm1, %v6701_v21, 32 }
0x128b   : > { %4077 = vmin.xlane.f32.xlu1 %v4076_v55  ;;  %v7751_v40 = vpop.xlane.xlu2 %4018  ;;  %v4102_v32 = vsel %vm3793_vm7, %v4038_v49, 2147483647  ;;  %v4073_v49 = vand.u32 65535, %v4072_v19 }
0x128c   : > { %vm4031_vm12 = vcmp.le.f32.partialorder %v7692_v42, %v7751_v40  ;;  %v4104_v5 = vshra.s32 %v4102_v32, 16 }
0x128d   : > { %v4039_v11 = vsel %vm4031_vm12, %v6701_v21, 32 }
0x128e   : > { %v4106_v59 = vcvt.s32.f32 %v4104_v5  ;;  %v4117_v27 = vsel %vm3793_vm7, %v4039_v11, 2147483647 }
0x128f   : > { %v4119_v15 = vshra.s32 %v4117_v27, 16 }
0x1290   : > { %4107 = vmin.xlane.f32.xlu0 %v4106_v59 }
0x1291   : > { %v4121_v8 = vcvt.s32.f32 %v4119_v15  ;;  %v4103_v15 = vand.u32 65535, %v4102_v32 }
0x1293   : > { %4122 = vmin.xlane.f32.xlu1 %v4121_v8  ;;  %v7758_v57 = vpop.xlane.xlu2 %4021  ;;  %v4105_v63 = vcvt.s32.f32 %v4103_v15 }
0x1294   : > { %vm4032_vm4 = vcmp.le.f32.partialorder %v7704_v34, %v7758_v57 }
0x1295   : > { %v4040_v28 = vsel %vm4032_vm4, %v6701_v21, 32 }
0x1296   : > { %v4132_v9 = vsel %vm3793_vm7, %v4040_v28, 2147483647  ;;  %v4118_v28 = vand.u32 65535, %v4117_v27 }
0x1297   : > { %v4134_v61 = vshra.s32 %v4132_v9, 16  ;;  %v4133_v31 = vand.u32 65535, %v4132_v9  ;;  %v3963_v9 = vadd.f32 1e-08, %v7471_v0 }
0x1299   : > { %v4136_v3 = vcvt.s32.f32 %v4134_v61  ;;  %v4135_v32 = vcvt.s32.f32 %v4133_v31 }
0x129b   : > { %4137 = vmin.xlane.f32.xlu1 %v4136_v3 }
0x12ee   : > { %v4048_v6 = vpop.xlane.xlu0 %4047 }
0x12ef   : > { %vm4049_vm10 = vcmp.eq.f32.partialorder %v4046_v26, %v4048_v6 }
0x12f0   : > { %v4050_v29 = vsel %vm4049_vm10, %v4045_v37, inf }
0x12f1   : > { %4051 = vmin.xlane.f32.xlu2 %v4050_v29  ;;  %v4120_v29 = vcvt.s32.f32 %v4118_v28 }
0x12f6   : > { %v7764_v4 = vpop.xlane.xlu1 %4062  ;;  %v7766_v30 = vpop.xlane.xlu0 %4024 }
0x12f7   : > { %v7768_v35 = vpop.xlane.xlu2 %4092  ;;  %vm4033_vm5 = vcmp.le.f32.partialorder %v7736_v44, %v7766_v30  ;;  %vm4064_vm2 = vcmp.eq.f32.partialorder %v4061_v10, %v7764_v4  ;;  %v4075_v10 = vcvt.s32.f32 %v4073_v49 }
0x12f8   : > { %v4041_v7 = vsel %vm4033_vm5, %v6701_v21, 32  ;;  %v4065_v26 = vsel %vm4064_vm2, %v4060_v53, inf  ;;  %vm4094_vm1 = vcmp.eq.f32.partialorder %v4091_v43, %v7768_v35  ;;  %v3962_v53 = vadd.f32 1e-08, %v7454_v16 }
0x12f9   : > { %4066 = vmin.xlane.f32.xlu0 %v4065_v26  ;;  %v4095_v18 = vsel %vm4094_vm1, %v4090_v14, inf  ;;  %v7776_v52 = vsel %vm3793_vm7, %v4041_v7, 2147483647  ;;  %v4054_v14 = vcvt.f32.s32 %v4048_v6  ;;  %v3965_v7 = vadd.f32 1e-08, %v7476_v22 }
0x12fa   : > { %4096 = vmin.xlane.f32.xlu1 %v4095_v18  ;;  %v4149_v54 = vshra.s32 %v7776_v52, 16  ;;  %6326 = vrcp.f32 %v3962_v53  ;;  %v4171_v22 = vadd.f32 1e-08, %v7716_v38  ;;  %v4099_v0 = vcvt.f32.s32 %v7768_v35 }
0x12fb   : > { %v4055_v26 = vshll.u32 %v4054_v14, 16  ;;  %v4148_v35 = vand.u32 65535, %v7776_v52 }
0x12fc   : > { %v7779_v5 = vcvt.s32.f32 %v4149_v54 }
0x12fe   : > { %v7781_v11 = vpop.xlane.xlu1 %4077  ;;  %4152 = vmin.xlane.f32.xlu2 %v7779_v5 }
0x12ff   : > { %vm4079_vm12 = vcmp.eq.f32.partialorder %v4076_v55, %v7781_v11 }
0x1300   : > { %v4080_v43 = vsel %vm4079_vm12, %v4075_v10, inf  ;;  %v7798_v49 = vpop.eup %6326 }
0x1301   : > { %4081 = vmin.xlane.f32.xlu0 %v4080_v43  ;;  %v3978_v16 = vsel %vm3954_vm9, %v7798_v49, 0.0 }
0x1303   : > { %v7785_v61 = vpop.xlane.xlu0 %4107 }
0x1304   : > { %vm4109_vm4 = vcmp.eq.f32.partialorder %v4106_v59, %v7785_v61  ;;  %v4170_v59 = vadd.f32 1e-08, %v7709_v60  ;;  %v4069_v60 = vcvt.f32.s32 %v7764_v4 }
0x1305   : > { %v4110_v37 = vsel %vm4109_vm4, %v4105_v63, inf }
0x1306   : > { %v7788_v19 = vpop.xlane.xlu1 %4122  ;;  %4111 = vmin.xlane.f32.xlu2 %v4110_v37  ;;  %6328 = vrcp.f32 %v4170_v59  ;;  %v4070_v4 = vshll.u32 %v4069_v60, 16  ;;  %v4100_v37 = vshll.u32 %v4099_v0, 16  ;;  %v4150_v59 = vcvt.s32.f32 %v4148_v35 }
0x1307   : > { %vm4124_vm10 = vcmp.eq.f32.partialorder %v4121_v8, %v7788_v19  ;;  %6330 = vrcp.f32 %v3965_v7  ;;  %v4129_v0 = vcvt.f32.s32 %v7788_v19 }
0x1308   : > { %v4125_v50 = vsel %vm4124_vm10, %v4120_v29, inf  ;;  %6332 = vrcp.f32 %v3963_v9 }
0x1309   : > { %4126 = vmin.xlane.f32.xlu0 %v4125_v50  ;;  %v4130_v19 = vshll.u32 %v4129_v0, 16 }
0x130c   : > { %v7801_v10 = vpop.eup %6328 }
0x130d   : > { %v7821_v63 = vpop.eup %6330 }
0x130e   : > { %v7791_v55 = vpop.xlane.xlu1 %4137  ;;  %v7824_v31 = vpop.eup %6332 }
0x130f   : > { %vm4139_vm5 = vcmp.eq.f32.partialorder %v4136_v3, %v7791_v55  ;;  %v4173_v3 = vadd.f32 1e-08, %v7720_v41  ;;  %v3979_v52 = vsel %vm3955_vm11, %v7824_v31, 0.0 }
0x1310   : > { %v4140_v27 = vsel %vm4139_vm5, %v4135_v32, inf  ;;  %v3981_v32 = vsel %vm3957_vm0, %v7821_v63, 0.0 }
0x1311   : > { %4141 = vmin.xlane.f32.xlu0 %v4140_v27  ;;  %6334 = vrcp.f32 %v4173_v3 }
0x1312   : > { %6336 = vrcp.f32 %v4171_v22 }
0x1313   : > { %6338 = vrcp.f32 %v3964_v25 }
0x1317   : > { %v7839_v14 = vpop.eup %6334 }
0x1318   : > { %v7847_v12 = vpop.eup %6336 }
0x1319   : > { %v7864_v3 = vpop.eup %6338 }
0x1364   : > { %v4052_v8 = vpop.xlane.xlu2 %4051 }
0x1365   : > { %v4053_v18 = vcvt.f32.s32 %v4052_v8 }
0x1367   : > { %v4056_v54 = vadd.s32 %v4055_v26, %v4053_v18  ;;  %v4174_v26 = vadd.f32 1e-08, %v7746_v47  ;;  %v4175_v47 = vadd.f32 1e-08, %v7751_v40 }
0x1369   : > { %vm4162_vm2 = vcmp.eq.s32.totalorder %v6701_v21, %v4056_v54 }
0x136a   : > { %v7812_v6 = vsel %vm4162_vm2, inf, %v7623_v1  ;;  %v7815_v41 = vsel %vm4162_vm2, %v7801_v10, %v3978_v16  ;;  %v4172_v1 = vadd.f32 1e-08, %v7740_v56  ;;  %v4084_v56 = vcvt.f32.s32 %v7781_v11 }
0x136b   : > { %v4210_v15 = vsel %vm3793_vm7, %v7812_v6, inf  ;;  %v4114_v16 = vcvt.f32.s32 %v7785_v61 }
0x136c   : > { %4211 = vmin.xlane.f32.xlu1 %v4210_v15  ;;  %v4067_v38 = vpop.xlane.xlu0 %4066  ;;  %6340 = vrcp.f32 %v4172_v1  ;;  %v4085_v9 = vshll.u32 %v4084_v56, 16  ;;  %v4144_v56 = vcvt.f32.s32 %v7791_v55 }
0x136d   : > { %v4097_v43 = vpop.xlane.xlu1 %4096  ;;  %v4068_v28 = vcvt.f32.s32 %v4067_v38  ;;  %6342 = vrcp.f32 %v3966_v58  ;;  %v4115_v25 = vshll.u32 %v4114_v16, 16 }
0x136e   : > { %v4098_v29 = vcvt.f32.s32 %v4097_v43  ;;  %6344 = vrcp.f32 %v4174_v26  ;;  %v4145_v48 = vshll.u32 %v4144_v56, 16 }
0x136f   : > { %v4071_v50 = vadd.s32 %v4070_v4, %v4068_v28 }
0x1370   : > { %v4101_v27 = vadd.s32 %v4100_v37, %v4098_v29  ;;  %v3968_v37 = vadd.f32 1e-08, %v7544_v2 }
0x1371   : > { %v7836_v53 = vpop.xlane.xlu2 %4152  ;;  %vm4163_vm9 = vcmp.eq.s32.totalorder %v6701_v21, %v4071_v50  ;;  %v4176_v50 = vadd.f32 1e-08, %v7758_v57 }
0x1372   : > { %vm4165_vm1 = vcmp.eq.s32.totalorder %v6701_v21, %v4101_v27  ;;  %vm4154_vm0 = vcmp.eq.f32.partialorder %v7779_v5, %v7836_v53  ;;  %v7845_v51 = vsel %vm4163_vm9, inf, %v7645_v13  ;;  %v7861_v13 = vsel %vm4163_vm9, %v7847_v12, %v3979_v52  ;;  %v7868_v60 = vpop.eup %6340 }
0x1373   : > { %v7850_v62 = vsel %vm4165_vm1, inf, %v7651_v36  ;;  %v7853_v11 = vsel %vm4165_vm1, %v7839_v14, %v3981_v32  ;;  %v4155_v7 = vsel %vm4154_vm0, %v4150_v59, inf  ;;  %v4213_v8 = vsel %vm3793_vm7, %v7845_v51, inf  ;;  %v7884_v28 = vpop.eup %6342 }
0x1374   : > { %v4219_v5 = vsel %vm3793_vm7, %v7850_v62, inf  ;;  %4156 = vmin.xlane.f32.xlu1 %v4155_v7  ;;  %4214 = vmin.xlane.f32.xlu2 %v4213_v8  ;;  %v4082_v18 = vpop.xlane.xlu0 %4081  ;;  %v3967_v36 = vadd.f32 1e-08, %v7531_v45  ;;  %v3980_v45 = vsel %vm3956_vm13, %v7864_v3, 0.0  ;;  %v7886_v1 = vpop.eup %6344 }
0x1375   : > { %4220 = vmin.xlane.f32.xlu0 %v4219_v5  ;;  %v4083_v54 = vcvt.f32.s32 %v4082_v18 }
0x1376   : > { %6346 = vrcp.f32 %v3967_v36 }
0x1377   : > { %v4086_v22 = vadd.s32 %v4085_v9, %v4083_v54  ;;  %6348 = vrcp.f32 %v4175_v47  ;;  %v4177_v47 = vadd.f32 1e-08, %v7766_v30 }
0x1378   : > { %6350 = vrcp.f32 %v3968_v37 }
0x1379   : > { %v4112_v15 = vpop.xlane.xlu2 %4111  ;;  %vm4164_vm11 = vcmp.eq.s32.totalorder %v6701_v21, %v4086_v22  ;;  %6352 = vrcp.f32 %v4176_v50 }
0x137a   : > { %v4113_v61 = vcvt.f32.s32 %v4112_v15  ;;  %v7877_v38 = vsel %vm4164_vm11, inf, %v7667_v46  ;;  %v7880_v40 = vsel %vm4164_vm11, %v7868_v60, %v3980_v45  ;;  %v3982_v46 = vsel %vm3958_vm14, %v7884_v28, 0.0 }
0x137b   : > { %v4216_v4 = vsel %vm3793_vm7, %v7877_v38, inf  ;;  %v4159_v45 = vcvt.f32.s32 %v7836_v53  ;;  %6354 = vrcp.f32 %v3969_v33 }
0x137c   : > { %v4116_v43 = vadd.s32 %v4115_v25, %v4113_v61  ;;  %4217 = vmin.xlane.f32.xlu2 %v4216_v4  ;;  %v4127_v39 = vpop.xlane.xlu0 %4126  ;;  %v7894_v29 = vpop.eup %6346  ;;  %6356 = vrcp.f32 %v4177_v47 }
0x137d   : > { %v4128_v35 = vcvt.f32.s32 %v4127_v39  ;;  %v7905_v52 = vpop.eup %6348  ;;  %v3983_v20 = vsel %vm3959_vm15, %v7894_v29, 0.0 }
0x137e   : > { %vm4166_vm13 = vcmp.eq.s32.totalorder %v6701_v21, %v4116_v43  ;;  %v7921_v55 = vpop.eup %6350 }
0x137f   : > { %v4131_v58 = vadd.s32 %v4130_v19, %v4128_v35  ;;  %v7898_v32 = vsel %vm4166_vm13, inf, %v7681_v24  ;;  %v7901_v27 = vsel %vm4166_vm13, %v7886_v1, %v3982_v46  ;;  %v7923_v5 = vpop.eup %6352 }
0x1380   : > { %v4222_v2 = vsel %vm3793_vm7, %v7898_v32, inf }
0x1381   : > { %4223 = vmin.xlane.f32.xlu1 %v4222_v2  ;;  %vm4167_vm14 = vcmp.eq.s32.totalorder %v6701_v21, %v4131_v58  ;;  %v7961_v39 = vpop.eup %6354 }
0x1382   : > { %v7914_v24 = vsel %vm4167_vm14, inf, %v7692_v42  ;;  %v7917_v57 = vsel %vm4167_vm14, %v7905_v52, %v3983_v20  ;;  %v3984_v42 = vsel %vm3960_vm3, %v7921_v55, 0.0  ;;  %v7964_v37 = vpop.eup %6356 }
0x1383   : > { %v4225_v59 = vsel %vm3793_vm7, %v7914_v24, inf }
0x1384   : > { %4226 = vmin.xlane.f32.xlu2 %v4225_v59  ;;  %v4142_v7 = vpop.xlane.xlu0 %4141 }
0x1385   : > { %v4143_v8 = vcvt.f32.s32 %v4142_v7 }
0x1387   : > { %v4146_v26 = vadd.s32 %v4145_v48, %v4143_v8 }
0x1389   : > { %vm4168_vm15 = vcmp.eq.s32.totalorder %v6701_v21, %v4146_v26 }
0x138a   : > { %v7931_v18 = vsel %vm4168_vm15, inf, %v7704_v34  ;;  %v7934_v36 = vsel %vm4168_vm15, %v7923_v5, %v3984_v42 }
0x138b   : > { %v4228_v9 = vsel %vm3793_vm7, %v7931_v18, inf }
0x138c   : > { %4229 = vmin.xlane.f32.xlu2 %v4228_v9 }
0x13df   : > { %v7938_v54 = vpop.xlane.xlu1 %4211 }
0x13e0   : > { %vm4234_vm12 = vcmp.le.f32.partialorder %v7812_v6, %v7938_v54  ;;  %v4160_v6 = vshll.u32 %v4159_v45, 16 }
0x13e1   : > { %v4242_v16 = vsel %vm4234_vm12, %v6701_v21, 32 }
0x13e2   : > { %v7946_v34 = vsel %vm3793_vm7, %v4242_v16, 2147483647 }
0x13e3   : > { %v4252_v22 = vshra.s32 %v7946_v34, 16 }
0x13e5   : > { %v4254_v0 = vcvt.s32.f32 %v4252_v22 }
0x13e7   : > { %4255 = vmin.xlane.f32.xlu0 %v4254_v0  ;;  %v4157_v15 = vpop.xlane.xlu1 %4156  ;;  %v7950_v25 = vpop.xlane.xlu2 %4214 }
0x13e8   : > { %v4158_v23 = vcvt.f32.s32 %v4157_v15  ;;  %vm4235_vm3 = vcmp.le.f32.partialorder %v7845_v51, %v7950_v25  ;;  %v7954_v30 = vpop.xlane.xlu0 %4220  ;;  %v3985_v51 = vsel %vm3961_vm8, %v7961_v39, 0.0 }
0x13e9   : > { %v4243_v61 = vsel %vm4235_vm3, %v6701_v21, 32  ;;  %vm4237_vm4 = vcmp.le.f32.partialorder %v7850_v62, %v7954_v30 }
0x13ea   : > { %v4161_v53 = vadd.s32 %v4160_v6, %v4158_v23  ;;  %v4245_v4 = vsel %vm4237_vm4, %v6701_v21, 32  ;;  %v4265_v43 = vsel %vm3793_vm7, %v4243_v61, 2147483647  ;;  %v4251_v23 = vand.u32 65535, %v7946_v34 }
0x13eb   : > { %v4267_v19 = vshra.s32 %v4265_v43, 16  ;;  %v4295_v35 = vsel %vm3793_vm7, %v4245_v4, 2147483647 }
0x13ec   : > { %vm4169_vm10 = vcmp.eq.s32.totalorder %v6701_v21, %v4161_v53  ;;  %v4297_v62 = vshra.s32 %v4295_v35, 16  ;;  %v4253_v53 = vcvt.s32.f32 %v4251_v23 }
0x13ed   : > { %v4209_v46 = vsel %vm4169_vm10, inf, %v7736_v44  ;;  %v7973_v50 = vsel %vm4169_vm10, %v7964_v37, %v3985_v51  ;;  %v4269_v58 = vcvt.s32.f32 %v4267_v19  ;;  %v4266_v19 = vand.u32 65535, %v4265_v43 }
0x13ee   : > { %v4231_v2 = vsel %vm3793_vm7, %v4209_v46, inf  ;;  %v4299_v20 = vcvt.s32.f32 %v4297_v62  ;;  %v4296_v51 = vand.u32 65535, %v4295_v35 }
0x13ef   : > { %4232 = vmin.xlane.f32.xlu0 %v4231_v2  ;;  %4270 = vmin.xlane.f32.xlu1 %v4269_v58  ;;  %v7976_v56 = vpop.xlane.xlu2 %4217 }
0x13f0   : > { %vm4236_vm5 = vcmp.le.f32.partialorder %v7877_v38, %v7976_v56  ;;  %4300 = vmin.xlane.f32.xlu2 %v4299_v20 }
0x13f1   : > { %v4244_v17 = vsel %vm4236_vm5, %v6701_v21, 32 }
0x13f2   : > { %v4280_v59 = vsel %vm3793_vm7, %v4244_v17, 2147483647 }
0x13f3   : > { %v4282_v44 = vshra.s32 %v4280_v59, 16  ;;  %v4281_v35 = vand.u32 65535, %v4280_v59 }
0x13f4   : > { %v7982_v7 = vpop.xlane.xlu1 %4223 }
0x13f5   : > { %vm4238_vm8 = vcmp.le.f32.partialorder %v7898_v32, %v7982_v7  ;;  %v4284_v48 = vcvt.s32.f32 %v4282_v44  ;;  %v4298_v44 = vcvt.s32.f32 %v4296_v51 }
0x13f6   : > { %v4246_v8 = vsel %vm4238_vm8, %v6701_v21, 32 }
0x13f7   : > { %4285 = vmin.xlane.f32.xlu1 %v4284_v48  ;;  %v7987_v26 = vpop.xlane.xlu2 %4226  ;;  %v4310_v42 = vsel %vm3793_vm7, %v4246_v8, 2147483647 }
0x13f8   : > { %vm4239_vm2 = vcmp.le.f32.partialorder %v7914_v24, %v7987_v26  ;;  %v4312_v38 = vshra.s32 %v4310_v42, 16 }
0x13f9   : > { %v4247_v9 = vsel %vm4239_vm2, %v6701_v21, 32 }
0x13fa   : > { %v4314_v33 = vcvt.s32.f32 %v4312_v38  ;;  %v4325_v16 = vsel %vm3793_vm7, %v4247_v9, 2147483647 }
0x13fb   : > { %v4327_v47 = vshra.s32 %v4325_v16, 16 }
0x13fc   : > { %4315 = vmin.xlane.f32.xlu0 %v4314_v33 }
0x13fd   : > { %v4329_v32 = vcvt.s32.f32 %v4327_v47 }
0x13ff   : > { %4330 = vmin.xlane.f32.xlu1 %v4329_v32  ;;  %v7994_v22 = vpop.xlane.xlu2 %4229 }
0x1400   : > { %vm4240_vm9 = vcmp.le.f32.partialorder %v7931_v18, %v7994_v22  ;;  %v4268_v18 = vcvt.s32.f32 %v4266_v19 }
0x1401   : > { %v4248_v45 = vsel %vm4240_vm9, %v6701_v21, 32 }
0x1402   : > { %v4340_v15 = vsel %vm3793_vm7, %v4248_v45, 2147483647  ;;  %v4283_v45 = vcvt.s32.f32 %v4281_v35 }
0x1403   : > { %v4342_v24 = vshra.s32 %v4340_v15, 16  ;;  %v4341_v51 = vand.u32 65535, %v4340_v15 }
0x1405   : > { %v4344_v6 = vcvt.s32.f32 %v4342_v24  ;;  %v4326_v24 = vand.u32 65535, %v4325_v16 }
0x1407   : > { %4345 = vmin.xlane.f32.xlu1 %v4344_v6  ;;  %v4328_v59 = vcvt.s32.f32 %v4326_v24  ;;  %v4381_v24 = vadd.f32 1e-08, %v7954_v30 }
0x145a   : > { %v4256_v61 = vpop.xlane.xlu0 %4255 }
0x145b   : > { %vm4257_vm1 = vcmp.eq.f32.partialorder %v4254_v0, %v4256_v61 }
0x145c   : > { %v4258_v4 = vsel %vm4257_vm1, %v4253_v53, inf }
0x145d   : > { %4259 = vmin.xlane.f32.xlu2 %v4258_v4 }
0x1462   : > { %v4271_v62 = vpop.xlane.xlu1 %4270  ;;  %v8001_v2 = vpop.xlane.xlu0 %4232 }
0x1463   : > { %v4301_v17 = vpop.xlane.xlu2 %4300  ;;  %vm4241_vm0 = vcmp.le.f32.partialorder %v4209_v46, %v8001_v2  ;;  %vm4272_vm11 = vcmp.eq.f32.partialorder %v4269_v58, %v4271_v62  ;;  %v4311_v46 = vand.u32 65535, %v4310_v42  ;;  %v4343_v42 = vcvt.s32.f32 %v4341_v51 }
0x1464   : > { %v4249_v8 = vsel %vm4241_vm0, %v6701_v21, 32  ;;  %v4273_v38 = vsel %vm4272_vm11, %v4268_v18, inf  ;;  %vm4302_vm13 = vcmp.eq.f32.partialorder %v4299_v20, %v4301_v17  ;;  %v4378_v18 = vadd.f32 1e-08, %v7938_v54 }
0x1465   : > { %4274 = vmin.xlane.f32.xlu0 %v4273_v38  ;;  %v4303_v34 = vsel %vm4302_vm13, %v4298_v44, inf  ;;  %v4355_v0 = vsel %vm3793_vm7, %v4249_v8, 2147483647  ;;  %v4313_v20 = vcvt.s32.f32 %v4311_v46  ;;  %v4277_v15 = vcvt.f32.s32 %v4271_v62 }
0x1466   : > { %4304 = vmin.xlane.f32.xlu1 %v4303_v34  ;;  %v4357_v43 = vshra.s32 %v4355_v0, 16  ;;  %6358 = vrcp.f32 %v4378_v18  ;;  %v4379_v34 = vadd.f32 1e-08, %v7950_v25  ;;  %v4307_v54 = vcvt.f32.s32 %v4301_v17 }
0x1467   : > { %v4380_v25 = vadd.f32 1e-08, %v7976_v56 }
0x1468   : > { %v4359_v9 = vcvt.s32.f32 %v4357_v43  ;;  %6360 = vrcp.f32 %v4379_v34  ;;  %v4308_v62 = vshll.u32 %v4307_v54, 16 }
0x1469   : > { %6362 = vrcp.f32 %v4381_v24 }
0x146a   : > { %v8006_v47 = vpop.xlane.xlu1 %4285  ;;  %4360 = vmin.xlane.f32.xlu2 %v4359_v9  ;;  %6364 = vrcp.f32 %v4380_v25 }
0x146b   : > { %vm4287_vm14 = vcmp.eq.f32.partialorder %v4284_v48, %v8006_v47 }
0x146c   : > { %v4288_v58 = vsel %vm4287_vm14, %v4283_v45, inf  ;;  %v8020_v43 = vpop.eup %6358  ;;  %v4278_v45 = vshll.u32 %v4277_v15, 16 }
0x146d   : > { %4289 = vmin.xlane.f32.xlu0 %v4288_v58 }
0x146f   : > { %v8009_v23 = vpop.xlane.xlu0 %4315 }
0x1470   : > { %vm4317_vm15 = vcmp.eq.f32.partialorder %v4314_v33, %v8009_v23  ;;  %v4262_v33 = vcvt.f32.s32 %v4256_v61  ;;  %v4356_v61 = vand.u32 65535, %v4355_v0 }
0x1471   : > { %v4318_v53 = vsel %vm4317_vm15, %v4313_v20, inf }
0x1472   : > { %v8012_v4 = vpop.xlane.xlu1 %4330  ;;  %4319 = vmin.xlane.f32.xlu2 %v4318_v53  ;;  %v4263_v8 = vshll.u32 %v4262_v33, 16  ;;  %v4358_v17 = vcvt.s32.f32 %v4356_v61  ;;  %v6155_v33 = vld [vmem:[%s8233_s10 + $0x38] sm:$0xff] }
0x1473   : > { %vm4332_vm12 = vcmp.eq.f32.partialorder %v4329_v32, %v8012_v4  ;;  %4538 = vmatpush.bf16.msrb.mxu2 %v6155_v33 }
0x1474   : > { %v4333_v19 = vsel %vm4332_vm12, %v4328_v59, inf  ;;  %v8027_v59 = vpop.eup %6360 }
0x1475   : > { %4334 = vmin.xlane.f32.xlu0 %v4333_v19  ;;  %v4292_v19 = vcvt.f32.s32 %v8006_v47  ;;  %v4382_v47 = vadd.f32 1e-08, %v7982_v7  ;;  %v4337_v7 = vcvt.f32.s32 %v8012_v4 }
0x1477   : > { %6366 = vrcp.f32 %v4382_v47  ;;  %v4338_v61 = vshll.u32 %v4337_v7, 16 }
0x147a   : > { %v8015_v48 = vpop.xlane.xlu1 %4345 }
0x147b   : > { %vm4347_vm3 = vcmp.eq.f32.partialorder %v4344_v6, %v8015_v48 }
0x147c   : > { %v4348_v16 = vsel %vm4347_vm3, %v4343_v42, inf }
0x147d   : > { %4349 = vmin.xlane.f32.xlu1 %v4348_v16  ;;  %v4293_v16 = vshll.u32 %v4292_v19, 16  ;;  %v6150_v19 = vld [vmem:[%s8233_s10 + $0x10] sm:$0xff] }
0x14d0   : > { %v4260_v44 = vpop.xlane.xlu2 %4259 }
0x14d1   : > { %v4261_v38 = vcvt.f32.s32 %v4260_v44  ;;  %v4322_v44 = vcvt.f32.s32 %v8009_v23 }
0x14d3   : > { %v4264_v32 = vadd.s32 %v4263_v8, %v4261_v38  ;;  %v6154_v8 = vld [vmem:[%s8233_s10 + $0x30] sm:$0xff]  ;;  %v8043_v38 = vpop.eup %6362  ;;  %v4323_v15 = vshll.u32 %v4322_v44, 16 }
0x14d4   : > { %v8045_v34 = vpop.eup %6364  ;;  %4539 = vmatpush.bf16.msrb.mxu2 %v6154_v8  ;;  %v4195_v8 = vadd.f32 %v7847_v12, %v7824_v31  ;;  %v4196_v31 = vadd.f32 %v7868_v60, %v7864_v3  ;;  %v4199_v3 = vadd.f32 %v7905_v52, %v7894_v29  ;;  %v6163_v29 = vld [vmem:[%s8234_s18 + $0x38] sm:$0xff]  ;;  %v6162_v52 = vld [vmem:[%s8234_s18 + $0x30] sm:$0xff] }
0x14d5   : > { %vm4370_vm4 = vcmp.eq.s32.totalorder %v6701_v21, %v4264_v32  ;;  %4630 = vmatpush.bf16.msra.mxu3 %v6163_v29 }
0x14d6   : > { %v4394_v6 = vsel %vm4370_vm4, %v8020_v43, %v7815_v41 }
0x14d8   : > { %v4275_v35 = vpop.xlane.xlu0 %4274 }
0x14d9   : > { %v4305_v46 = vpop.xlane.xlu1 %4304  ;;  %v4276_v58 = vcvt.f32.s32 %v4275_v35  ;;  %4631 = vmatpush.bf16.msra.mxu3 %v6162_v52 }
0x14da   : > { %v4306_v20 = vcvt.f32.s32 %v4305_v46  ;;  %v8053_v46 = vpop.eup %6366 }
0x14db   : > { %v4279_v53 = vadd.s32 %v4278_v45, %v4276_v58 }
0x14dc   : > { %v4309_v30 = vadd.s32 %v4308_v62, %v4306_v20  ;;  %v6153_v20 = vld [vmem:[%s8233_s10 + $0x28] sm:$0xff]  ;;  %v6151_v62 = vld [vmem:[%s8233_s10 + $0x18] sm:$0xff] }
0x14dd   : > { %vm4371_vm10 = vcmp.eq.s32.totalorder %v6701_v21, %v4279_v53  ;;  %v8031_v41 = vpop.xlane.xlu2 %4360  ;;  %4540 = vmatpush.bf16.msrb.mxu2 %v6153_v20  ;;  %v6152_v53 = vld [vmem:[%s8233_s10 + $0x20] sm:$0xff]  ;;  %v6159_v20 = vld [vmem:[%s8234_s18 + $0x18] sm:$0xff] }
0x14de   : > { %v4395_v0 = vsel %vm4371_vm10, %v8027_v59, %v7861_v13  ;;  %vm4362_vm5 = vcmp.eq.f32.partialorder %v4359_v9, %v8031_v41  ;;  %v4383_v13 = vadd.f32 1e-08, %v7987_v26  ;;  %vm4373_vm8 = vcmp.eq.s32.totalorder %v6701_v21, %v4309_v30 }
0x14df   : > { %v4410_v56 = vpack.c.bf16 %v4395_v0, %v4394_v6  ;;  %v4363_v51 = vsel %vm4362_vm5, %v4358_v17, inf  ;;  %v4397_v23 = vsel %vm4373_vm8, %v8043_v38, %v7853_v11  ;;  %v6149_v17 = vld [vmem:[%s8233_s10 + $0x8] sm:$0xff]  ;;  %v6148_v0 = vld [vmem:[%s8233_s10] sm:$0xff]  ;;  %v4384_v30 = vadd.f32 1e-08, %v7994_v22 }
0x14e0   : > { %4364 = vmin.xlane.f32.xlu2 %v4363_v51  ;;  %v4290_v42 = vpop.xlane.xlu0 %4289  ;;  %6368 = vrcp.f32 %v4383_v13  ;;  %v4367_v47 = vcvt.f32.s32 %v8031_v41  ;;  %v4194_v22 = vadd.f32 %v7801_v10, %v7798_v49 }
0x14e1   : > { %v4291_v18 = vcvt.f32.s32 %v4290_v42  ;;  %5878 = vmatmul.msk.bf16.vlgmr.msra.gmra.mxu0 %vm3793_vm7, %v4410_v56  ;;  %4541 = vmatpush.bf16.msrb.mxu2 %v6152_v53  ;;  %v4385_v56 = vadd.f32 1e-08, %v8001_v2  ;;  %6370 = vrcp.f32 %v4384_v30  ;;  %v6158_v53 = vld [vmem:[%s8234_s18 + $0x10] sm:$0xff]  ;;  %v6156_v30 = vld [vmem:[%s8234_s18] sm:$0xff] }
0x14e2   : > { %v4368_v33 = vshll.u32 %v4367_v47, 16 }
0x14e3   : > { %v4294_v9 = vadd.s32 %v4293_v16, %v4291_v18  ;;  %6372 = vrcp.f32 %v4385_v56 }
0x14e5   : > { %vm4372_vm2 = vcmp.eq.s32.totalorder %v6701_v21, %v4294_v9  ;;  %v4320_v32 = vpop.xlane.xlu2 %4319  ;;  %4542 = vmatpush.bf16.msrb.mxu2 %v6151_v62  ;;  %v4200_v62 = vadd.f32 %v7923_v5, %v7921_v55 }
0x14e6   : > { %v4321_v6 = vcvt.f32.s32 %v4320_v32  ;;  %v4396_v26 = vsel %vm4372_vm2, %v8045_v34, %v7880_v40  ;;  %v8056_v40 = vpop.eup %6368  ;;  %v4402_v32 = vadd.f32 %v8020_v43, %v4194_v22  ;;  %v4404_v43 = vadd.f32 %v8045_v34, %v4196_v31  ;;  %v6165_v31 = vld [vmem:[%s8236_s1 + $0x8] sm:$0xff] }
0x14e7   : > { %v4411_v35 = vpack.c.bf16 %v4397_v23, %v4396_v26  ;;  %v8076_v9 = vpop.eup %6370 }
0x14e8   : > { %v4324_v45 = vadd.s32 %v4323_v15, %v4321_v6  ;;  %v4335_v54 = vpop.xlane.xlu0 %4334  ;;  %v4403_v15 = vadd.f32 %v8027_v59, %v4195_v8  ;;  %6374 = vrcp.f32 %v4402_v32 }
0x14e9   : > { %v4336_v4 = vcvt.f32.s32 %v4335_v54  ;;  %4543 = vmatpush.bf16.msrb.mxu2 %v6150_v19  ;;  %v4201_v19 = vadd.f32 %v7964_v37, %v7961_v39  ;;  %v6266_v37 = vld [vmem:[%s8235_s2] ss:$0 sm:$0xff]  ;;  %s8237_s2 = sld [smem:[#allocation19_spill]] }
0x14ea   : > { %vm4374_vm9 = vcmp.eq.s32.totalorder %v6701_v21, %v4324_v45  ;;  %6376 = vrcp.f32 %v4403_v15 }
0x14eb   : > { %v4339_v58 = vadd.s32 %v4338_v61, %v4336_v4  ;;  %v4398_v11 = vsel %vm4374_vm9, %v8053_v46, %v7901_v27 }
0x14ed   : > { %vm4375_vm1 = vcmp.eq.s32.totalorder %v6701_v21, %v4339_v58  ;;  %4544 = vmatpush.bf16.msrb.mxu2 %v6149_v17  ;;  %v4408_v17 = vadd.f32 %v8076_v9, %v4200_v62 }
0x14ee   : > { %v4399_v24 = vsel %vm4375_vm1, %v8056_v40, %v7917_v57  ;;  %v4352_v57 = vcvt.f32.s32 %v8015_v48  ;;  %v8078_v48 = vpop.eup %6372 }
0x14ef   : > { %v4412_v25 = vpack.c.bf16 %v4399_v24, %v4398_v11  ;;  %v6375_v49 = vpop.eup %6374 }
0x14f0   : > { %v4350_v27 = vpop.xlane.xlu1 %4349  ;;  %v4353_v42 = vshll.u32 %v4352_v57, 16  ;;  %v6377_v10 = vpop.eup %6376 }
0x14f1   : > { %5879 = vmatmul.msk.bf16.gmra.mxu0 %vm3793_vm7, %v4411_v35  ;;  %4545 = vmatpush.bf16.msrb.mxu2 %v6148_v0  ;;  %v4351_v51 = vcvt.f32.s32 %v4350_v27  ;;  %v6157_v0 = vld [vmem:[%s8234_s18 + $0x8] sm:$0xff]  ;;  %v4409_v27 = vadd.f32 %v8078_v48, %v4201_v19 }
0x14f3   : > { %v4354_v16 = vadd.s32 %v4353_v42, %v4351_v51 }
0x14f5   : > { %vm4376_vm0 = vcmp.eq.s32.totalorder %v6701_v21, %v4354_v16 }
0x14f6   : > { %v4400_v2 = vsel %vm4376_vm0, %v8076_v9, %v7934_v36 }
0x1501   : > { %5880 = vmatmul.msk.bf16.gmra.mxu0 %vm3793_vm7, %v4412_v25 }
0x1553   : > { %v4365_v18 = vpop.xlane.xlu2 %4364 }
0x1554   : > { %v4366_v44 = vcvt.f32.s32 %v4365_v18 }
0x1556   : > { %v4369_v13 = vadd.s32 %v4368_v33, %v4366_v44 }
0x1558   : > { %vm4377_vm11 = vcmp.eq.s32.totalorder %v6701_v21, %v4369_v13 }
0x1559   : > { %v4401_v41 = vsel %vm4377_vm11, %v8078_v48, %v7973_v50  ;;  %v4197_v50 = vadd.f32 %v7839_v14, %v7821_v63  ;;  %v4198_v63 = vadd.f32 %v7886_v1, %v7884_v28 }
0x155a   : > { %v4413_v7 = vpack.c.bf16 %v4401_v41, %v4400_v2 }
0x155b   : > { %v4405_v12 = vadd.f32 %v8043_v38, %v4197_v50  ;;  %v4406_v60 = vadd.f32 %v8053_v46, %v4198_v63  ;;  %v4407_v38 = vadd.f32 %v8056_v40, %v4199_v3  ;;  %v6161_v46 = vld [vmem:[%s8234_s18 + $0x28] sm:$0xff]  ;;  %v6160_v40 = vld [vmem:[%s8234_s18 + $0x20] sm:$0xff]  ;;  %v6167_v50 = vld [vmem:[%s8236_s1 + $0x18] sm:$0xff] }
0x155c   : > { %5881 = vmatmul.msk.bf16.gmra.mxu0 %vm3793_vm7, %v4413_v7  ;;  %4632 = vmatpush.bf16.msra.mxu3 %v6161_v46 }
0x155d   : > { %6378 = vrcp.f32 %v4405_v12  ;;  %4724 = vmatpush.bf16.msrb.mxu1 %v6167_v50 }
0x155e   : > { %v4447_v21 = vpop.f32.mrf.mxu0  ;;  %6380 = vrcp.f32 %v4404_v43  ;;  %v6164_v43 = vld [vmem:[%s8236_s1] sm:$0xff] }
0x155f   : > { %v4475_v36 = vmul.f32 %v6375_v49, %v4447_v21  ;;  %6382 = vrcp.f32 %v4406_v60 }
0x1560   : > { %6384 = vrcp.f32 %v4407_v38  ;;  %4633 = vmatpush.bf16.msra.mxu3 %v6160_v40 }
0x1561   : > { %6386 = vrcp.f32 %v4408_v17 }
0x1562   : > { %6388 = vrcp.f32 %v4409_v27  ;;  %v6169_v27 = vld [vmem:[%s6654_s9 + $0x8] sm:$0xff] }
0x1563   : > { %v6379_v35 = vpop.eup %6378  ;;  %4799 = vmatpush.bf16.msrb.mxu0 %v6169_v27 }
0x1564   : > { %v6381_v45 = vpop.eup %6380  ;;  %4634 = vmatpush.bf16.msra.mxu3 %v6159_v20 }
0x1565   : > { %v6383_v58 = vpop.eup %6382 }
0x1566   : > { %v4449_v6 = vpop.f32.mrf.mxu0  ;;  %v6385_v11 = vpop.eup %6384 }
0x1567   : > { %v4476_v26 = vmul.f32 %v6377_v10, %v4449_v6  ;;  %v6387_v56 = vpop.eup %6386 }
0x1568   : > { %4635 = vmatpush.bf16.msra.mxu3 %v6158_v53  ;;  %v6389_v51 = vpop.eup %6388 }
0x1569   : > { %v4483_v23 = vpack.c.bf16 %v4476_v26, %v4475_v36 }
0x156b   : > { %4546 = vmatmul.bf16.vlgmr.msrb.gmra.mxu2 %v4483_v23  ;;  %v6166_v23 = vld [vmem:[%s8236_s1 + $0x10] sm:$0xff] }
0x156c   : > { %4636 = vmatpush.bf16.msra.mxu3 %v6157_v0  ;;  %4725 = vmatpush.bf16.msrb.mxu1 %v6166_v23 }
0x156e   : > { %v4452_v59 = vpop.f32.mrf.mxu0 }
0x156f   : > { %v4477_v61 = vmul.f32 %v6381_v45, %v4452_v59 }
0x1570   : > { %4637 = vmatpush.bf16.msra.mxu3 %v6156_v30  ;;  %4726 = vmatpush.bf16.msrb.mxu1 %v6165_v31 }
0x1574   : > { %4727 = vmatpush.bf16.msrb.mxu1 %v6164_v43 }
0x1576   : > { %v4454_v54 = vpop.f32.mrf.mxu0 }
0x1577   : > { %v4478_v4 = vmul.f32 %v6379_v35, %v4454_v54 }
0x1579   : > { %v4484_v14 = vpack.c.bf16 %v4478_v4, %v4477_v61 }
0x157b   : > { %4551 = vmatmul.bf16.gmra.mxu2 %v4484_v14  ;;  %v6267_v14 = vld [vmem:[%s8237_s2] ss:$0 sm:$0xff]  ;;  %s8173_s2 = scalar_lea.vmem %s6664_s5, %s5981_s11 }
0x157e   : > { %v4457_v34 = vpop.f32.mrf.mxu0 }
0x157f   : > { %v4479_v1 = vmul.f32 %v6383_v58, %v4457_v34 }
0x1586   : > { %v4459_v28 = vpop.f32.mrf.mxu0 }
0x1587   : > { %v4480_v24 = vmul.f32 %v6385_v11, %v4459_v28 }
0x1589   : > { %v4485_v25 = vpack.c.bf16 %v4480_v24, %v4479_v1 }
0x158b   : > { %4556 = vmatmul.bf16.gmra.mxu2 %v4485_v25 }
0x15d9   : > { %v4462_v57 = vpop.f32.mrf.mxu0 }
0x15da   : > { %v4481_v55 = vmul.f32 %v6387_v56, %v4462_v57  ;;  %v6168_v57 = vld [vmem:[%s6654_s9] sm:$0xff] }
0x15db   : > { %4800 = vmatpush.bf16.msrb.mxu0 %v6168_v57 }
0x15e1   : > { %v4464_v42 = vpop.f32.mrf.mxu0 }
0x15e2   : > { %v4482_v5 = vmul.f32 %v6389_v51, %v4464_v42 }
0x15e4   : > { %v4486_v47 = vpack.c.bf16 %v4482_v5, %v4481_v55 }
0x15e6   : > { %4561 = vmatmul.bf16.gmra.mxu2 %v4486_v47 }
0x15ee   : > { %v4547_v39 = vpop.f32.mrf.mxu2 }
0x15ef   : > { %v4548_v16 = vadd.f32 %v6266_v37, %v4547_v39 }
0x15f1   : > { %v4567_v44 = vmax.f32 %v4548_v16, 0.0 }
0x15f6   : > { %v4549_v18 = vpop.f32.mrf.mxu2 }
0x15f7   : > { %v4550_v33 = vadd.f32 %v6266_v37, %v4549_v18 }
0x15f9   : > { %v4568_v13 = vmax.f32 %v4550_v33, 0.0 }
0x15fb   : > { %v4575_v9 = vpack.c.bf16 %v4568_v13, %v4567_v44 }
0x15fd   : > { %4638 = vmatmul.bf16.vlgmr.msra.gmra.mxu3 %v4575_v9 }
0x15fe   : > { %v4552_v48 = vpop.f32.mrf.mxu2 }
0x15ff   : > { %v4553_v22 = vadd.f32 %v6266_v37, %v4552_v48 }
0x1601   : > { %v4569_v8 = vmax.f32 %v4553_v22, 0.0 }
0x1606   : > { %v4554_v2 = vpop.f32.mrf.mxu2 }
0x1607   : > { %v4555_v41 = vadd.f32 %v6266_v37, %v4554_v2 }
0x1609   : > { %v4570_v7 = vmax.f32 %v4555_v41, 0.0 }
0x160b   : > { %v4576_v32 = vpack.c.bf16 %v4570_v7, %v4569_v8 }
0x160d   : > { %4643 = vmatmul.bf16.gmra.mxu3 %v4576_v32 }
0x160e   : > { %v4557_v15 = vpop.f32.mrf.mxu2 }
0x160f   : > { %v4558_v21 = vadd.f32 %v6266_v37, %v4557_v15 }
0x1611   : > { %v4571_v6 = vmax.f32 %v4558_v21, 0.0 }
0x1616   : > { %v4559_v49 = vpop.f32.mrf.mxu2 }
0x1617   : > { %v4560_v10 = vadd.f32 %v6266_v37, %v4559_v49 }
0x1619   : > { %v4572_v36 = vmax.f32 %v4560_v10, 0.0 }
0x161b   : > { %v4577_v26 = vpack.c.bf16 %v4572_v36, %v4571_v6 }
0x161d   : > { %4648 = vmatmul.bf16.gmra.mxu3 %v4577_v26 }
0x1669   : > { %v4562_v12 = vpop.f32.mrf.mxu2 }
0x166a   : > { %v4563_v59 = vadd.f32 %v6266_v37, %v4562_v12 }
0x166c   : > { %v4573_v54 = vmax.f32 %v4563_v59, 0.0 }
0x1671   : > { %v4564_v35 = vpop.f32.mrf.mxu2 }
0x1672   : > { %v4565_v45 = vadd.f32 %v6266_v37, %v4564_v35  ;;  %v6268_v37 = vld [vmem:[%s6649_s21] ss:$0 sm:$0xff] }
0x1674   : > { %v4574_v61 = vmax.f32 %v4565_v45, 0.0  ;;  %v6269_v45 = vld [vmem:[%s6659_s25] ss:$0 sm:$0xff] }
0x1676   : > { %v4578_v4 = vpack.c.bf16 %v4574_v61, %v4573_v54 }
0x1678   : > { %4653 = vmatmul.bf16.gmra.mxu3 %v4578_v4 }
0x1680   : > { %v4639_v63 = vpop.f32.mrf.mxu3 }
0x1681   : > { %v4640_v3 = vadd.f32 %v6267_v14, %v4639_v63 }
0x1683   : > { %v4659_v34 = vmax.f32 %v4640_v3, 0.0 }
0x1688   : > { %v4641_v60 = vpop.f32.mrf.mxu3 }
0x1689   : > { %v4642_v38 = vadd.f32 %v6267_v14, %v4641_v60 }
0x168b   : > { %v4660_v58 = vmax.f32 %v4642_v38, 0.0 }
0x168d   : > { %v4667_v11 = vpack.c.bf16 %v4660_v58, %v4659_v34 }
0x168f   : > { %5962 = vmatmul.msk.bf16.vlgmr.msrb.gmra.mxu1 %vm2505_vm6, %v4667_v11 }
0x1690   : > { %v4644_v28 = vpop.f32.mrf.mxu3 }
0x1691   : > { %v4645_v1 = vadd.f32 %v6267_v14, %v4644_v28 }
0x1693   : > { %v4661_v29 = vmax.f32 %v4645_v1, 0.0 }
0x1698   : > { %v4646_v24 = vpop.f32.mrf.mxu3 }
0x1699   : > { %v4647_v25 = vadd.f32 %v6267_v14, %v4646_v24 }
0x169b   : > { %v4662_v52 = vmax.f32 %v4647_v25, 0.0 }
0x169d   : > { %v4668_v46 = vpack.c.bf16 %v4662_v52, %v4661_v29 }
0x169f   : > { %5963 = vmatmul.msk.bf16.gmra.mxu1 %vm2505_vm6, %v4668_v46 }
0x16a0   : > { %v4649_v40 = vpop.f32.mrf.mxu3 }
0x16a1   : > { %v4650_v20 = vadd.f32 %v6267_v14, %v4649_v40 }
0x16a3   : > { %v4663_v19 = vmax.f32 %v4650_v20, 0.0 }
0x16a8   : > { %v4651_v53 = vpop.f32.mrf.mxu3 }
0x16a9   : > { %v4652_v62 = vadd.f32 %v6267_v14, %v4651_v53 }
0x16ab   : > { %v4664_v17 = vmax.f32 %v4652_v62, 0.0 }
0x16ad   : > { %v4669_v0 = vpack.c.bf16 %v4664_v17, %v4663_v19 }
0x16af   : > { %5964 = vmatmul.msk.bf16.gmra.mxu1 %vm2505_vm6, %v4669_v0 }
0x16fb   : > { %v4654_v30 = vpop.f32.mrf.mxu3 }
0x16fc   : > { %v4655_v56 = vadd.f32 %v6267_v14, %v4654_v30 }
0x16fe   : > { %v4665_v55 = vmax.f32 %v4655_v56, 0.0 }
0x1703   : > { %v4656_v51 = vpop.f32.mrf.mxu3 }
0x1704   : > { %v4657_v42 = vadd.f32 %v6267_v14, %v4656_v51 }
0x1706   : > { %v4666_v5 = vmax.f32 %v4657_v42, 0.0 }
0x1708   : > { %v4670_v47 = vpack.c.bf16 %v4666_v5, %v4665_v55 }
0x170a   : > { %5965 = vmatmul.msk.bf16.gmra.mxu1 %vm2505_vm6, %v4670_v47 }
0x170c   : > { %v4729_v39 = vpop.f32.mrf.mxu1 }
0x170d   : > { %v4730_v16 = vadd.f32 %v6268_v37, %v4729_v39 }
0x170f   : > { %v4749_v44 = vmax.f32 %v4730_v16, 0.0 }
0x1714   : > { %v4731_v18 = vpop.f32.mrf.mxu1 }
0x1715   : > { %v4732_v33 = vadd.f32 %v6268_v37, %v4731_v18 }
0x1717   : > { %v4750_v13 = vmax.f32 %v4732_v33, 0.0 }
0x1719   : > { %v4757_v9 = vpack.c.bf16 %v4750_v13, %v4749_v44 }
0x171b   : > { %5974 = vmatmul.msk.bf16.vlgmr.msrb.gmra.mxu0 %vm3793_vm7, %v4757_v9 }
0x171c   : > { %v4734_v48 = vpop.f32.mrf.mxu1 }
0x171d   : > { %v4735_v22 = vadd.f32 %v6268_v37, %v4734_v48 }
0x171f   : > { %v4751_v8 = vmax.f32 %v4735_v22, 0.0 }
0x1724   : > { %v4736_v2 = vpop.f32.mrf.mxu1 }
0x1725   : > { %v4737_v41 = vadd.f32 %v6268_v37, %v4736_v2 }
0x1727   : > { %v4752_v7 = vmax.f32 %v4737_v41, 0.0 }
0x1729   : > { %v4758_v32 = vpack.c.bf16 %v4752_v7, %v4751_v8 }
0x172b   : > { %5975 = vmatmul.msk.bf16.gmra.mxu0 %vm3793_vm7, %v4758_v32 }
0x172c   : > { %v4739_v15 = vpop.f32.mrf.mxu1 }
0x172d   : > { %v4740_v21 = vadd.f32 %v6268_v37, %v4739_v15 }
0x172f   : > { %v4753_v6 = vmax.f32 %v4740_v21, 0.0 }
0x1734   : > { %v4741_v49 = vpop.f32.mrf.mxu1 }
0x1735   : > { %v4742_v10 = vadd.f32 %v6268_v37, %v4741_v49 }
0x1737   : > { %v4754_v36 = vmax.f32 %v4742_v10, 0.0 }
0x1739   : > { %v4759_v26 = vpack.c.bf16 %v4754_v36, %v4753_v6 }
0x173b   : > { %5976 = vmatmul.msk.bf16.gmra.mxu0 %vm3793_vm7, %v4759_v26 }
0x1787   : > { %v4744_v50 = vpop.f32.mrf.mxu1 }
0x1788   : > { %v4745_v23 = vadd.f32 %v6268_v37, %v4744_v50 }
0x178a   : > { %v4755_v43 = vmax.f32 %v4745_v23, 0.0 }
0x178f   : > { %v4746_v31 = vpop.f32.mrf.mxu1 }
0x1790   : > { %v4747_v12 = vadd.f32 %v6268_v37, %v4746_v31 }
0x1792   : > { %v4756_v59 = vmax.f32 %v4747_v12, 0.0 }
0x1794   : > { %v4760_v35 = vpack.c.bf16 %v4756_v59, %v4755_v43 }
0x1796   : > { %5977 = vmatmul.msk.bf16.gmra.mxu0 %vm3793_vm7, %v4760_v35 }
0x1798   : > { %v4802_v54 = vpop.f32.mrf.mxu0 }
0x1799   : > { %v8136_v61 = vadd.f32 %v6269_v45, %v4802_v54 }
0x179b   : > { %4822 = vmax.xlane.f32.xlu0 %v8136_v61 }
0x17a0   : > { %v4804_v4 = vpop.f32.mrf.mxu0 }
0x17a1   : > { %v8139_v63 = vadd.f32 %v6269_v45, %v4804_v4 }
0x17a3   : > { %4824 = vmax.xlane.f32.xlu1 %v8139_v63 }
0x17a8   : > { %v4807_v14 = vpop.f32.mrf.mxu0 }
0x17a9   : > { %v8142_v3 = vadd.f32 %v6269_v45, %v4807_v14 }
0x17ab   : > { %4826 = vmax.xlane.f32.xlu2 %v8142_v3 }
0x17b0   : > { %v4809_v60 = vpop.f32.mrf.mxu0 }
0x17b1   : > { %v8145_v38 = vadd.f32 %v6269_v45, %v4809_v60 }
0x17b3   : > { %4828 = vmax.xlane.f32.xlu0 %v8145_v38 }
0x17b8   : > { %v4812_v34 = vpop.f32.mrf.mxu0 }
0x17b9   : > { %v8148_v58 = vadd.f32 %v6269_v45, %v4812_v34 }
0x17bb   : > { %4830 = vmax.xlane.f32.xlu1 %v8148_v58 }
0x17c0   : > { %v4814_v11 = vpop.f32.mrf.mxu0 }
0x17c1   : > { %v8151_v28 = vadd.f32 %v6269_v45, %v4814_v11 }
0x17c3   : > { %4832 = vmax.xlane.f32.xlu2 %v8151_v28 }
0x180e   : > { %v4823_v1 = vpop.xlane.xlu0 %4822 }
0x180f   : > { %v4838_v24 = vsub.f32 %v8136_v61, %v4823_v1 }
0x1811   : > { %v4846_v25 = vmul.f32 1.442695, %v4838_v24 }
0x1813   : > { %6390 = vpow2.f32 %v4846_v25  ;;  %v4817_v29 = vpop.f32.mrf.mxu0 }
0x1814   : > { %v8155_v52 = vadd.f32 %v6269_v45, %v4817_v29 }
0x1816   : > { %v4825_v46 = vpop.xlane.xlu1 %4824  ;;  %4834 = vmax.xlane.f32.xlu0 %v8155_v52 }
0x1817   : > { %v4839_v40 = vsub.f32 %v8139_v63, %v4825_v46 }
0x1819   : > { %v6391_v20 = vpop.eup %6390  ;;  %v4848_v53 = vmul.f32 1.442695, %v4839_v40 }
0x181a   : > { %4862 = vadd.xlane.f32.xlu2 %v6391_v20 }
0x181b   : > { %6392 = vpow2.f32 %v4848_v53  ;;  %v4819_v62 = vpop.f32.mrf.mxu0 }
0x181c   : > { %v8159_v19 = vadd.f32 %v6269_v45, %v4819_v62 }
0x181e   : > { %v4827_v17 = vpop.xlane.xlu2 %4826  ;;  %4836 = vmax.xlane.f32.xlu1 %v8159_v19 }
0x181f   : > { %v4840_v0 = vsub.f32 %v8142_v3, %v4827_v17 }
0x1821   : > { %v6393_v27 = vpop.eup %6392  ;;  %v4850_v57 = vmul.f32 1.442695, %v4840_v0 }
0x1822   : > { %4864 = vadd.xlane.f32.xlu0 %v6393_v27 }
0x1823   : > { %6394 = vpow2.f32 %v4850_v57 }
0x1826   : > { %v4829_v30 = vpop.xlane.xlu0 %4828 }
0x1827   : > { %v4841_v56 = vsub.f32 %v8145_v38, %v4829_v30 }
0x1829   : > { %v6395_v51 = vpop.eup %6394  ;;  %v4852_v42 = vmul.f32 1.442695, %v4841_v56 }
0x182a   : > { %4866 = vadd.xlane.f32.xlu1 %v6395_v51 }
0x182b   : > { %6396 = vpow2.f32 %v4852_v42 }
0x182e   : > { %v4831_v55 = vpop.xlane.xlu1 %4830 }
0x182f   : > { %v4842_v5 = vsub.f32 %v8148_v58, %v4831_v55 }
0x1831   : > { %v6397_v47 = vpop.eup %6396  ;;  %v4854_v39 = vmul.f32 1.442695, %v4842_v5 }
0x1832   : > { %4868 = vadd.xlane.f32.xlu2 %v6397_v47 }
0x1833   : > { %6398 = vpow2.f32 %v4854_v39 }
0x1836   : > { %v4833_v37 = vpop.xlane.xlu2 %4832 }
0x1837   : > { %v4843_v16 = vsub.f32 %v8151_v28, %v4833_v37 }
0x1839   : > { %v6399_v18 = vpop.eup %6398  ;;  %v4856_v33 = vmul.f32 1.442695, %v4843_v16 }
0x183a   : > { %4870 = vadd.xlane.f32.xlu0 %v6399_v18 }
0x183b   : > { %6400 = vpow2.f32 %v4856_v33 }
0x1841   : > { %v6401_v44 = vpop.eup %6400 }
0x1842   : > { %4872 = vadd.xlane.f32.xlu1 %v6401_v44 }
0x1889   : > { %v4835_v13 = vpop.xlane.xlu0 %4834 }
0x188a   : > { %v4844_v9 = vsub.f32 %v8155_v52, %v4835_v13 }
0x188c   : > { %v4858_v48 = vmul.f32 1.442695, %v4844_v9 }
0x188d   : > { %v4863_v22 = vpop.xlane.xlu2 %4862 }
0x188e   : > { %6402 = vpow2.f32 %v4858_v48 }
0x188f   : > { %6404 = vlog2.f32 %v4863_v22 }
0x1891   : > { %v4837_v2 = vpop.xlane.xlu1 %4836 }
0x1892   : > { %v4845_v41 = vsub.f32 %v8159_v19, %v4837_v2 }
0x1894   : > { %v6403_v8 = vpop.eup %6402  ;;  %v4860_v7 = vmul.f32 1.442695, %v4845_v41 }
0x1895   : > { %4874 = vadd.xlane.f32.xlu2 %v6403_v8  ;;  %v4865_v32 = vpop.xlane.xlu0 %4864  ;;  %v6405_v15 = vpop.eup %6404 }
0x1896   : > { %6406 = vpow2.f32 %v4860_v7  ;;  %v4879_v21 = vmul.f32 0.6931472, %v6405_v15 }
0x1897   : > { %6408 = vlog2.f32 %v4865_v32 }
0x1898   : > { %v4894_v36 = vadd.f32 %v4879_v21, %v4823_v1 }
0x189a   : > { %v4902_v23 = vsub.f32 %v8136_v61, %v4894_v36 }
0x189c   : > { %v6407_v49 = vpop.eup %6406 }
0x189d   : > { %v6409_v10 = vpop.eup %6408  ;;  %v4867_v6 = vpop.xlane.xlu1 %4866  ;;  %4876 = vadd.xlane.f32.xlu0 %v6407_v49 }
0x189e   : > { %v4881_v26 = vmul.f32 0.6931472, %v6409_v10  ;;  %6410 = vlog2.f32 %v4867_v6 }
0x18a0   : > { %v4895_v50 = vadd.f32 %v4881_v26, %v4825_v46 }
0x18a2   : > { %v4903_v31 = vsub.f32 %v8139_v63, %v4895_v50 }
0x18a4   : > { %v6183_v12 = vpack.c.bf16 %v4903_v31, %v4902_v23  ;;  %v6411_v59 = vpop.eup %6410 }
0x18a5   : > { %v4869_v43 = vpop.xlane.xlu2 %4868  ;;  %v4883_v35 = vmul.f32 0.6931472, %v6411_v59 }
0x18a6   : > { %6184 = vst [vmem:[%s8173_s2] sm:$0xff] %v6183_v12   ;;  %6412 = vlog2.f32 %v4869_v43 }
0x18a7   : > { %v4896_v54 = vadd.f32 %v4883_v35, %v4827_v17 }
0x18a9   : > { %v4904_v61 = vsub.f32 %v8142_v3, %v4896_v54 }
0x18ac   : > { %v6413_v45 = vpop.eup %6412 }
0x18ad   : > { %v4885_v4 = vmul.f32 0.6931472, %v6413_v45  ;;  %v4871_v14 = vpop.xlane.xlu0 %4870 }
0x18ae   : > { %6414 = vlog2.f32 %v4871_v14 }
0x18af   : > { %v4897_v60 = vadd.f32 %v4885_v4, %v4829_v30 }
0x18b1   : > { %v4905_v63 = vsub.f32 %v8145_v38, %v4897_v60 }
0x18b3   : > { %v6188_v34 = vpack.c.bf16 %v4905_v63, %v4904_v61 }
0x18b4   : > { %v6415_v1 = vpop.eup %6414 }
0x18b5   : > { %6201 = vst [vmem:[%s8173_s2 + $0x8] sm:$0xff] %v6188_v34   ;;  %v4873_v11 = vpop.xlane.xlu1 %4872  ;;  %v4887_v24 = vmul.f32 0.6931472, %v6415_v1 }
0x18b6   : > { %6416 = vlog2.f32 %v4873_v11 }
0x18b7   : > { %v4898_v29 = vadd.f32 %v4887_v24, %v4831_v55 }
0x18b9   : > { %v4906_v20 = vsub.f32 %v8148_v58, %v4898_v29 }
0x18bc   : > { %v6417_v25 = vpop.eup %6416 }
0x18bd   : > { %v4889_v46 = vmul.f32 0.6931472, %v6417_v25 }
0x18bf   : > { %v4899_v40 = vadd.f32 %v4889_v46, %v4833_v37 }
0x18c1   : > { %v4907_v53 = vsub.f32 %v8151_v28, %v4899_v40 }
0x18c3   : > { %v6193_v62 = vpack.c.bf16 %v4907_v53, %v4906_v20 }
0x18c5   : > { %6202 = vst [vmem:[%s8173_s2 + $0x10] sm:$0xff] %v6193_v62  }
0x1908   : > { %v4875_v3 = vpop.xlane.xlu2 %4874 }
0x1909   : > { %6418 = vlog2.f32 %v4875_v3 }
0x190f   : > { %v6419_v17 = vpop.eup %6418 }
0x1910   : > { %v4877_v38 = vpop.xlane.xlu0 %4876  ;;  %v4891_v0 = vmul.f32 0.6931472, %v6419_v17 }
0x1911   : > { %6420 = vlog2.f32 %v4877_v38 }
0x1912   : > { %v4900_v57 = vadd.f32 %v4891_v0, %v4835_v13 }
0x1914   : > { %v4908_v51 = vsub.f32 %v8155_v52, %v4900_v57 }
0x1917   : > { %v6421_v27 = vpop.eup %6420 }
0x1918   : > { %v4893_v30 = vmul.f32 0.6931472, %v6421_v27 }
0x191a   : > { %v4901_v56 = vadd.f32 %v4893_v30, %v4837_v2 }
0x191c   : > { %v4909_v42 = vsub.f32 %v8159_v19, %v4901_v56 }
0x191e   : > { %v6198_v58 = vpack.c.bf16 %v4909_v42, %v4908_v51 }
0x1920   : > { %6203 = vst [vmem:[%s8173_s2 + $0x18] sm:$0xff] %v6198_v58  }
0x1921 PF: > { %s81_s26 = sadd.s32 1, %s6444_s26   ;;  %s8238_s22 = smov %s6440_s23 }
0x1922   : > { %p78_p5 = scmp.ge.s32.totalorder %s81_s26, 4   ;;  %s8239_s23 = smov %s8241_s0 }
0x1924   :  { %80 = sbr.rel (!%p78_p5) target bundleno = 63 (0x3f), region = 262 }

</bundles_post_ra>
